<compile_context>
chip_gen: v7x
topology: tpu7x:2x2x1
jax: 0.10.0
libtpu: 0.0.40
codegen_flags: <defaults>
</compile_context>

<pallas_src>
import functools

import jax
import jax.numpy as jnp
import numpy as np
from jax.experimental import pallas as pl
from jax.experimental.pallas import tpu as pltpu


# -----------------------------------------------------------------------------
# Pallas kernel: one full TLSTM layer (entire sequence) per invocation.
# -----------------------------------------------------------------------------
def _tlstm_layer_kernel(x_ref, T_ref, wg_ref, ug_ref, bg_ref, wd_ref, bd_ref,
                        hout_ref, cout_ref, h_scr, c_scr, xg_scr):
    seq, b, in_dim = x_ref.shape
    hid = wd_ref.shape[0]

    # One big MXU call: input-side gate projections for every timestep at once.
    x_flat = x_ref[...].reshape(seq * b, in_dim)
    xg = jnp.dot(x_flat, wg_ref[...], preferred_element_type=jnp.float32)
    xg = xg + bg_ref[...]                                   # (seq*b, 4*hid)
    xg_scr[...] = xg.reshape(seq, b, 4 * hid)

    # initial_states is None in the reference module -> zeros.
    h_scr[...] = jnp.zeros_like(h_scr)
    c_scr[...] = jnp.zeros_like(c_scr)

    # Hoist constant weight loads out of the recurrence loop.
    ug = ug_ref[...]
    wd = wd_ref[...]
    bd = bd_ref[...]

    def step(t, carry):
        h = h_scr[...]                                      # (b, hid)
        c = c_scr[...]                                      # (b, hid)
        T = T_ref[t]                                        # (b, 1), = 1/log(t+2.7183)

        # Time-decayed cell-state decomposition.
        C_ST = jnp.tanh(jnp.dot(c, wd, preferred_element_type=jnp.float32) + bd)
        c = c - C_ST + T * C_ST

        # Fused gate pre-activations: one 4*hid-wide recurrent matmul.
        g = xg_scr[t] + jnp.dot(h, ug, preferred_element_type=jnp.float32)
        i = jax.nn.sigmoid(g[:, 0 * hid:1 * hid])
        f = jax.nn.sigmoid(g[:, 1 * hid:2 * hid])
        o = jax.nn.sigmoid(g[:, 2 * hid:3 * hid])
        Cg = jnp.tanh(g[:, 3 * hid:4 * hid])

        c = f * c + i * Cg
        h = o * jnp.tanh(c)

        h_scr[...] = h
        c_scr[...] = c
        hout_ref[t] = h.astype(hout_ref.dtype)
        cout_ref[t] = c.astype(cout_ref.dtype)
        return carry

    jax.lax.fori_loop(0, seq, step, 0, unroll=True)


def _tlstm_layer_pallas(x_sbd, T_sb1, Wg, Ug, Bg, Wd, Bd):
    """One TLSTM layer over the whole sequence.

    x_sbd : (seq, b, in_dim) float32
    T_sb1 : (seq, b, 1)      float32, precomputed 1/log(t + 2.7183)
    Wg    : (in_dim, 4*hid)  fused [Wi|Wf|Wog|Wc] (already transposed)
    Ug    : (hid, 4*hid)     fused [Ui|Uf|Uog|Uc]
    Bg    : (1, 4*hid)       fused linear-bias + extra gate bias
    Wd    : (hid, hid)       W_decomp
    Bd    : (1, hid)         W_decomp bias + b_decomp
    returns (h_seq, c_seq), each (seq, b, hid)
    """
    seq, b, in_dim = x_sbd.shape
    hid = Wd.shape[0]

    grid_spec = pltpu.PrefetchScalarGridSpec(
        num_scalar_prefetch=0,
        grid=(1,),
        in_specs=[
            pl.BlockSpec((seq, b, in_dim), lambda i: (0, 0, 0)),
            pl.BlockSpec((seq, b, 1), lambda i: (0, 0, 0)),
            pl.BlockSpec((in_dim, 4 * hid), lambda i: (0, 0)),
            pl.BlockSpec((hid, 4 * hid), lambda i: (0, 0)),
            pl.BlockSpec((1, 4 * hid), lambda i: (0, 0)),
            pl.BlockSpec((hid, hid), lambda i: (0, 0)),
            pl.BlockSpec((1, hid), lambda i: (0, 0)),
        ],
        out_specs=[
            pl.BlockSpec((seq, b, hid), lambda i: (0, 0, 0)),
            pl.BlockSpec((seq, b, hid), lambda i: (0, 0, 0)),
        ],
        scratch_shapes=[
            pltpu.VMEM((b, hid), jnp.float32),           # h carry
            pltpu.VMEM((b, hid), jnp.float32),           # c carry
            pltpu.VMEM((seq, b, 4 * hid), jnp.float32),  # precomputed x projections
        ],
    )

    h_seq, c_seq = pl.pallas_call(
        _tlstm_layer_kernel,
        out_shape=(
            jax.ShapeDtypeStruct((seq, b, hid), jnp.float32),
            jax.ShapeDtypeStruct((seq, b, hid), jnp.float32),
        ),
        grid_spec=grid_spec,
        compiler_params=pltpu.CompilerParams(
            dimension_semantics=("arbitrary",),
        ),
    )(x_sbd, T_sb1, Wg, Ug, Bg, Wd, Bd)
    return h_seq, c_seq


# -----------------------------------------------------------------------------
# Parameter construction (deterministic, matches nn.Module shapes).
# -----------------------------------------------------------------------------
def init_stacked_tlstm_params(key, input_size, hidden_size, num_layers):
    params = []
    for layer in range(num_layers):
        in_dim = input_size if layer == 0 else hidden_size
        keys = jax.random.split(jax.random.fold_in(key, layer), 8)
        # Per-gate weights (in, out) layout so the math is x @ W.
        W = 0.1 * jax.random.normal(keys[0], (4, in_dim, hidden_size), jnp.float32)
        U = 0.1 * jax.random.normal(keys[1], (4, hidden_size, hidden_size), jnp.float32)
        lin_b = 0.05 * jax.random.normal(keys[2], (4, hidden_size), jnp.float32)
        # bi/bf/bog/bc are zero-initialized in the module but trainable; make
        # them non-zero here so the fused-bias path is exercised.
        extra_b = 0.05 * jax.random.normal(keys[3], (4, hidden_size), jnp.float32)
        B = lin_b + extra_b                                      # (4, hid)
        Wd = 0.1 * jax.random.normal(keys[4], (hidden_size, hidden_size), jnp.float32)
        lin_bd = 0.05 * jax.random.normal(keys[5], (hidden_size,), jnp.float32)
        b_decomp = 0.05 * jax.random.normal(keys[6], (hidden_size,), jnp.float32)
        Bd = (lin_bd + b_decomp)[None, :]                        # (1, hid)

        # Fused/packed weights for the Pallas kernel: one 4*hid-wide gate block.
        Wg = jnp.concatenate([W[0], W[1], W[2], W[3]], axis=1)   # (in_dim, 4*hid)
        Ug = jnp.concatenate([U[0], U[1], U[2], U[3]], axis=1)   # (hid, 4*hid)
        Bg = B.reshape(1, 4 * hidden_size)                       # (1, 4*hid)

        params.append(dict(W=W, U=U, B=B, Wd=Wd, Bd=Bd, Wg=Wg, Ug=Ug, Bg=Bg))
    return params


# -----------------------------------------------------------------------------
# StackedTLSTM forward (wrapper gluing the per-layer Pallas calls).
# -----------------------------------------------------------------------------
@jax.jit
def stacked_tlstm_forward(inputs, timestamps, params):
    """inputs: (b, seq, embed), timestamps: (b, seq).

    Returns (final_output, states): final_output is (b, seq, hidden), states is
    a list of (hidden_states, cell_states), each (b, seq, hidden), one per
    layer -- matching the PyTorch module.
    """
    # Layout conversion once: (b, seq, *) -> (seq, b, *).
    x_sbd = jnp.transpose(inputs, (1, 0, 2))
    # T = 1/log(t + 2.7183) is identical for every layer -> compute once.
    T_sb1 = (1.0 / jnp.log(timestamps + 2.7183)).T[:, :, None]   # (seq, b, 1)

    curr = x_sbd
    raw_states = []
    for p in params:
        h_seq, c_seq = _tlstm_layer_pallas(curr, T_sb1, p["Wg"], p["Ug"],
                                           p["Bg"], p["Wd"], p["Bd"])
        raw_states.append((h_seq, c_seq))
        curr = h_seq                       # next layer consumes (seq, b, hid)

    # Transpose only the tensors we actually return, once, after the loop.
    states = [(jnp.transpose(h, (1, 0, 2)), jnp.transpose(c, (1, 0, 2)))
              for h, c in raw_states]
    final_output = states[-1][0]
    return final_output, states


# -----------------------------------------------------------------------------
# Pure-JAX reference (mirrors the PyTorch forward exactly), for verification.
# Uses the UNFUSED per-gate weights so the fusion/packing is validated too.
# -----------------------------------------------------------------------------
def _tlstm_layer_ref(x, ts, p):
    b, seq, _ = x.shape
    hid = p["Wd"].shape[0]

    def step(carry, inp):
        h, c = carry
        xs, t = inp                              # xs (b, in), t (b,)
        T = 1.0 / jnp.log(t[:, None] + 2.7183)
        C_ST = jnp.tanh(c @ p["Wd"] + p["Bd"])
        c = c - C_ST + T * C_ST
        i = jax.nn.sigmoid(xs @ p["W"][0] + h @ p["U"][0] + p["B"][0])
        f = jax.nn.sigmoid(xs @ p["W"][1] + h @ p["U"][1] + p["B"][1])
        o = jax.nn.sigmoid(xs @ p["W"][2] + h @ p["U"][2] + p["B"][2])
        Cg = jnp.tanh(xs @ p["W"][3] + h @ p["U"][3] + p["B"][3])
        c = f * c + i * Cg
        h = o * jnp.tanh(c)
        return (h, c), (h, c)

    h0 = jnp.zeros((b, hid), jnp.float32)
    c0 = jnp.zeros((b, hid), jnp.float32)
    _, (hs, cs) = jax.lax.scan(step, (h0, c0),
                               (jnp.swapaxes(x, 0, 1), jnp.swapaxes(ts, 0, 1)))
    return jnp.swapaxes(hs, 0, 1), jnp.swapaxes(cs, 0, 1)


def stacked_tlstm_ref(inputs, timestamps, params):
    curr = inputs
    states = []
    final_output = None
    for p in params:
        hs, cs = _tlstm_layer_ref(curr, timestamps, p)
        final_output = hs
        curr = hs
        states.append((hs, cs))
    return final_output, states


# -----------------------------------------------------------------------------
if __name__ == "__main__":
    batch, seq, input_size, hidden_size, num_layers = 8, 8, 16, 32, 2

    key = jax.random.PRNGKey(0)
    k_in, k_ts, k_par = jax.random.split(key, 3)
    inputs = jax.random.normal(k_in, (batch, seq, input_size), jnp.float32)
    # Elapsed times: strictly positive (real timestamp deltas).
    timestamps = jax.random.uniform(k_ts, (batch, seq), jnp.float32,
                                    minval=0.5, maxval=10.0)
    params = init_stacked_tlstm_params(k_par, input_size, hidden_size, num_layers)

    out, states = stacked_tlstm_forward(inputs, timestamps, params)
    out = jax.block_until_ready(out)

    # Sanity check against the pure-JAX reference.
    ref_out, ref_states = stacked_tlstm_ref(inputs, timestamps, params)
    np.testing.assert_allclose(np.asarray(out), np.asarray(ref_out),
                               rtol=1e-3, atol=1e-4)
    for (h_k, c_k), (h_r, c_r) in zip(states, ref_states):
        np.testing.assert_allclose(np.asarray(h_k), np.asarray(h_r),
                                   rtol=1e-3, atol=1e-4)
        np.testing.assert_allclose(np.asarray(c_k), np.asarray(c_r),
                                   rtol=1e-3, atol=1e-4)

    assert out.shape == (batch, seq, hidden_size)
    print("KERNEL_OK")
</pallas_src>

<mosaic_0001>
module attributes {stable_mosaic.version = 11 : i64} {
  func.func @_tlstm_layer_kernel(%arg0: i32, %arg1: memref<8x8x16xf32, #tpu.memory_space<vmem>>, %arg2: memref<8x8x1xf32, #tpu.memory_space<vmem>>, %arg3: memref<16x128xf32, #tpu.memory_space<vmem>>, %arg4: memref<32x128xf32, #tpu.memory_space<vmem>>, %arg5: memref<1x128xf32, #tpu.memory_space<vmem>>, %arg6: memref<32x32xf32, #tpu.memory_space<vmem>>, %arg7: memref<1x32xf32, #tpu.memory_space<vmem>>, %arg8: memref<8x8x32xf32, #tpu.memory_space<vmem>>, %arg9: memref<8x8x32xf32, #tpu.memory_space<vmem>>, %arg10: memref<8x32xf32, #tpu.memory_space<vmem>>, %arg11: memref<8x32xf32, #tpu.memory_space<vmem>>, %arg12: memref<8x8x128xf32, #tpu.memory_space<vmem>>) attributes {dimension_semantics = [#tpu.dimension_semantics<arbitrary>], iteration_bounds = array<i64: 1>, scalar_prefetch = 0 : i64, scratch_operands = 3 : i64, tpu.core_type = #tpu.core_type<tc>, window_params = [{pipeline_mode = #tpu.pipeline_mode<synchronous>, transform_indices = @transform_0, window_bounds = array<i64: 8, 8, 16>}, {pipeline_mode = #tpu.pipeline_mode<synchronous>, transform_indices = @transform_1, window_bounds = array<i64: 8, 8, 1>}, {pipeline_mode = #tpu.pipeline_mode<synchronous>, transform_indices = @transform_2, window_bounds = array<i64: 16, 128>}, {pipeline_mode = #tpu.pipeline_mode<synchronous>, transform_indices = @transform_3, window_bounds = array<i64: 32, 128>}, {pipeline_mode = #tpu.pipeline_mode<synchronous>, transform_indices = @transform_4, window_bounds = array<i64: 1, 128>}, {pipeline_mode = #tpu.pipeline_mode<synchronous>, transform_indices = @transform_5, window_bounds = array<i64: 32, 32>}, {pipeline_mode = #tpu.pipeline_mode<synchronous>, transform_indices = @transform_6, window_bounds = array<i64: 1, 32>}, {pipeline_mode = #tpu.pipeline_mode<synchronous>, transform_indices = @transform_7, window_bounds = array<i64: 8, 8, 32>}, {pipeline_mode = #tpu.pipeline_mode<synchronous>, transform_indices = @transform_8, window_bounds = array<i64: 8, 8, 32>}]} {
    %c0 = arith.constant 0 : index
    %c0_0 = arith.constant 0 : index
    %c0_1 = arith.constant 0 : index
    %0 = vector.load %arg1[%c0, %c0_0, %c0_1] : memref<8x8x16xf32, #tpu.memory_space<vmem>>, vector<8x8x16xf32>
    %1 = vector.shape_cast %0 : vector<8x8x16xf32> to vector<64x16xf32>
    %c0_2 = arith.constant 0 : index
    %c0_3 = arith.constant 0 : index
    %2 = vector.load %arg3[%c0_2, %c0_3] : memref<16x128xf32, #tpu.memory_space<vmem>>, vector<16x128xf32>
    %cst = arith.constant dense<0.000000e+00> : vector<64x128xf32>
    %3 = tpu.matmul %1, %2, %cst {dimension_numbers = #tpu.dot_dimension_numbers<[1], [0], [0], [1], [0, 0, 1, 1], [], []>} : vector<64x16xf32>, vector<16x128xf32>, vector<64x128xf32> -> vector<64x128xf32>
    %c0_4 = arith.constant 0 : index
    %c0_5 = arith.constant 0 : index
    %4 = vector.load %arg5[%c0_4, %c0_5] : memref<1x128xf32, #tpu.memory_space<vmem>>, vector<1x128xf32>
    %5 = vector.broadcast %4 : vector<1x128xf32> to vector<64x128xf32>
    %6 = arith.addf %3, %5 : vector<64x128xf32>
    %7 = vector.shape_cast %6 : vector<64x128xf32> to vector<8x8x128xf32>
    %c0_6 = arith.constant 0 : index
    %c0_7 = arith.constant 0 : index
    %c0_8 = arith.constant 0 : index
    %8 = vector.load %arg12[%c0_6, %c0_7, %c0_8] : memref<8x8x128xf32, #tpu.memory_space<vmem>>, vector<8x8x128xf32>
    tpu.vector_store %arg12[%c0_6, %c0_7, %c0_8], %7 {strides = array<i32>} : memref<8x8x128xf32, #tpu.memory_space<vmem>>, vector<8x8x128xf32>,
    %cst_9 = arith.constant 0.000000e+00 : f32
    %9 = vector.broadcast %cst_9 : f32 to vector<8x32xf32>
    %c0_10 = arith.constant 0 : index
    %c0_11 = arith.constant 0 : index
    %10 = vector.load %arg10[%c0_10, %c0_11] : memref<8x32xf32, #tpu.memory_space<vmem>>, vector<8x32xf32>
    tpu.vector_store %arg10[%c0_10, %c0_11], %9 {strides = array<i32>} : memref<8x32xf32, #tpu.memory_space<vmem>>, vector<8x32xf32>,
    %cst_12 = arith.constant 0.000000e+00 : f32
    %11 = vector.broadcast %cst_12 : f32 to vector<8x32xf32>
    %c0_13 = arith.constant 0 : index
    %c0_14 = arith.constant 0 : index
    %12 = vector.load %arg11[%c0_13, %c0_14] : memref<8x32xf32, #tpu.memory_space<vmem>>, vector<8x32xf32>
    tpu.vector_store %arg11[%c0_13, %c0_14], %11 {strides = array<i32>} : memref<8x32xf32, #tpu.memory_space<vmem>>, vector<8x32xf32>,
    %c0_15 = arith.constant 0 : index
    %c0_16 = arith.constant 0 : index
    %13 = vector.load %arg4[%c0_15, %c0_16] : memref<32x128xf32, #tpu.memory_space<vmem>>, vector<32x128xf32>
    %c0_17 = arith.constant 0 : index
    %c0_18 = arith.constant 0 : index
    %14 = vector.load %arg6[%c0_17, %c0_18] : memref<32x32xf32, #tpu.memory_space<vmem>>, vector<32x32xf32>
    %c0_19 = arith.constant 0 : index
    %c0_20 = arith.constant 0 : index
    %15 = vector.load %arg7[%c0_19, %c0_20] : memref<1x32xf32, #tpu.memory_space<vmem>>, vector<1x32xf32>
    %c0_i32 = arith.constant 0 : i32
    %c0_21 = arith.constant 0 : index
    %c0_22 = arith.constant 0 : index
    %16 = vector.load %arg10[%c0_21, %c0_22] : memref<8x32xf32, #tpu.memory_space<vmem>>, vector<8x32xf32>
    %c0_23 = arith.constant 0 : index
    %c0_24 = arith.constant 0 : index
    %17 = vector.load %arg11[%c0_23, %c0_24] : memref<8x32xf32, #tpu.memory_space<vmem>>, vector<8x32xf32>
    %18 = arith.index_cast %c0_i32 : i32 to index
    %c0_25 = arith.constant 0 : index
    %c0_26 = arith.constant 0 : index
    %19 = vector.load %arg2[%18, %c0_25, %c0_26] : memref<8x8x1xf32, #tpu.memory_space<vmem>>, vector<1x8x1xf32>
    %20 = vector.shape_cast %19 : vector<1x8x1xf32> to vector<8x1xf32>
    %cst_27 = arith.constant dense<0.000000e+00> : vector<8x32xf32>
    %21 = tpu.matmul %17, %14, %cst_27 {dimension_numbers = #tpu.dot_dimension_numbers<[1], [0], [0], [1], [0, 0, 1, 1], [], []>} : vector<8x32xf32>, vector<32x32xf32>, vector<8x32xf32> -> vector<8x32xf32>
    %22 = vector.broadcast %15 : vector<1x32xf32> to vector<8x32xf32>
    %23 = arith.addf %21, %22 : vector<8x32xf32>
    %24 = math.tanh %23 : vector<8x32xf32>
    %25 = arith.subf %17, %24 : vector<8x32xf32>
    %26 = vector.broadcast %20 : vector<8x1xf32> to vector<8x32xf32>
    %27 = arith.mulf %26, %24 : vector<8x32xf32>
    %28 = arith.addf %25, %27 : vector<8x32xf32>
    %29 = arith.index_cast %c0_i32 : i32 to index
    %c0_28 = arith.constant 0 : index
    %c0_29 = arith.constant 0 : index
    %30 = vector.load %arg12[%29, %c0_28, %c0_29] : memref<8x8x128xf32, #tpu.memory_space<vmem>>, vector<1x8x128xf32>
    %31 = vector.shape_cast %30 : vector<1x8x128xf32> to vector<8x128xf32>
    %cst_30 = arith.constant dense<0.000000e+00> : vector<8x128xf32>
    %32 = tpu.matmul %16, %13, %cst_30 {dimension_numbers = #tpu.dot_dimension_numbers<[1], [0], [0], [1], [0, 0, 1, 1], [], []>} : vector<8x32xf32>, vector<32x128xf32>, vector<8x128xf32> -> vector<8x128xf32>
    %33 = arith.addf %31, %32 : vector<8x128xf32>
    %34 = vector.extract_strided_slice %33 {offsets = [0, 0], sizes = [8, 32], strides = [1, 1]} : vector<8x128xf32> to vector<8x32xf32>
    %35 = arith.negf %34 : vector<8x32xf32>
    %36 = math.exp %35 : vector<8x32xf32>
    %cst_31 = arith.constant 1.000000e+00 : f32
    %37 = vector.broadcast %cst_31 : f32 to vector<8x32xf32>
    %38 = arith.addf %37, %36 : vector<8x32xf32>
    %39 = arith.divf %37, %38 : vector<8x32xf32>
    %40 = vector.extract_strided_slice %33 {offsets = [0, 32], sizes = [8, 32], strides = [1, 1]} : vector<8x128xf32> to vector<8x32xf32>
    %41 = arith.negf %40 : vector<8x32xf32>
    %42 = math.exp %41 : vector<8x32xf32>
    %cst_32 = arith.constant 1.000000e+00 : f32
    %43 = vector.broadcast %cst_32 : f32 to vector<8x32xf32>
    %44 = arith.addf %43, %42 : vector<8x32xf32>
    %45 = arith.divf %43, %44 : vector<8x32xf32>
    %46 = vector.extract_strided_slice %33 {offsets = [0, 64], sizes = [8, 32], strides = [1, 1]} : vector<8x128xf32> to vector<8x32xf32>
    %47 = arith.negf %46 : vector<8x32xf32>
    %48 = math.exp %47 : vector<8x32xf32>
    %cst_33 = arith.constant 1.000000e+00 : f32
    %49 = vector.broadcast %cst_33 : f32 to vector<8x32xf32>
    %50 = arith.addf %49, %48 : vector<8x32xf32>
    %51 = arith.divf %49, %50 : vector<8x32xf32>
    %52 = vector.extract_strided_slice %33 {offsets = [0, 96], sizes = [8, 32], strides = [1, 1]} : vector<8x128xf32> to vector<8x32xf32>
    %53 = math.tanh %52 : vector<8x32xf32>
    %54 = arith.mulf %45, %28 : vector<8x32xf32>
    %55 = arith.mulf %39, %53 : vector<8x32xf32>
    %56 = arith.addf %54, %55 : vector<8x32xf32>
    %57 = math.tanh %56 : vector<8x32xf32>
    %58 = arith.mulf %51, %57 : vector<8x32xf32>
    %c0_34 = arith.constant 0 : index
    %c0_35 = arith.constant 0 : index
    %59 = vector.load %arg10[%c0_34, %c0_35] : memref<8x32xf32, #tpu.memory_space<vmem>>, vector<8x32xf32>
    tpu.vector_store %arg10[%c0_34, %c0_35], %58 {strides = array<i32>} : memref<8x32xf32, #tpu.memory_space<vmem>>, vector<8x32xf32>,
    %c0_36 = arith.constant 0 : index
    %c0_37 = arith.constant 0 : index
    %60 = vector.load %arg11[%c0_36, %c0_37] : memref<8x32xf32, #tpu.memory_space<vmem>>, vector<8x32xf32>
    tpu.vector_store %arg11[%c0_36, %c0_37], %56 {strides = array<i32>} : memref<8x32xf32, #tpu.memory_space<vmem>>, vector<8x32xf32>,
    %61 = arith.index_cast %c0_i32 : i32 to index
    %c0_38 = arith.constant 0 : index
    %c0_39 = arith.constant 0 : index
    %62 = vector.load %arg8[%61, %c0_38, %c0_39] : memref<8x8x32xf32, #tpu.memory_space<vmem>>, vector<1x8x32xf32>
    %63 = vector.shape_cast %62 : vector<1x8x32xf32> to vector<8x32xf32>
    %64 = vector.shape_cast %58 : vector<8x32xf32> to vector<1x8x32xf32>
    tpu.vector_store %arg8[%61, %c0_38, %c0_39], %64 {strides = array<i32>} : memref<8x8x32xf32, #tpu.memory_space<vmem>>, vector<1x8x32xf32>,
    %65 = arith.index_cast %c0_i32 : i32 to index
    %c0_40 = arith.constant 0 : index
    %c0_41 = arith.constant 0 : index
    %66 = vector.load %arg9[%65, %c0_40, %c0_41] : memref<8x8x32xf32, #tpu.memory_space<vmem>>, vector<1x8x32xf32>
    %67 = vector.shape_cast %66 : vector<1x8x32xf32> to vector<8x32xf32>
    %68 = vector.shape_cast %56 : vector<8x32xf32> to vector<1x8x32xf32>
    tpu.vector_store %arg9[%65, %c0_40, %c0_41], %68 {strides = array<i32>} : memref<8x8x32xf32, #tpu.memory_space<vmem>>, vector<1x8x32xf32>,
    %c1_i32 = arith.constant 1 : i32
    %c0_42 = arith.constant 0 : index
    %c0_43 = arith.constant 0 : index
    %69 = vector.load %arg10[%c0_42, %c0_43] : memref<8x32xf32, #tpu.memory_space<vmem>>, vector<8x32xf32>
    %c0_44 = arith.constant 0 : index
    %c0_45 = arith.constant 0 : index
    %70 = vector.load %arg11[%c0_44, %c0_45] : memref<8x32xf32, #tpu.memory_space<vmem>>, vector<8x32xf32>
    %71 = arith.index_cast %c1_i32 : i32 to index
    %c0_46 = arith.constant 0 : index
    %c0_47 = arith.constant 0 : index
    %72 = vector.load %arg2[%71, %c0_46, %c0_47] : memref<8x8x1xf32, #tpu.memory_space<vmem>>, vector<1x8x1xf32>
    %73 = vector.shape_cast %72 : vector<1x8x1xf32> to vector<8x1xf32>
    %cst_48 = arith.constant dense<0.000000e+00> : vector<8x32xf32>
    %74 = tpu.matmul %70, %14, %cst_48 {dimension_numbers = #tpu.dot_dimension_numbers<[1], [0], [0], [1], [0, 0, 1, 1], [], []>} : vector<8x32xf32>, vector<32x32xf32>, vector<8x32xf32> -> vector<8x32xf32>
    %75 = vector.broadcast %15 : vector<1x32xf32> to vector<8x32xf32>
    %76 = arith.addf %74, %75 : vector<8x32xf32>
    %77 = math.tanh %76 : vector<8x32xf32>
    %78 = arith.subf %70, %77 : vector<8x32xf32>
    %79 = vector.broadcast %73 : vector<8x1xf32> to vector<8x32xf32>
    %80 = arith.mulf %79, %77 : vector<8x32xf32>
    %81 = arith.addf %78, %80 : vector<8x32xf32>
    %82 = arith.index_cast %c1_i32 : i32 to index
    %c0_49 = arith.constant 0 : index
    %c0_50 = arith.constant 0 : index
    %83 = vector.load %arg12[%82, %c0_49, %c0_50] : memref<8x8x128xf32, #tpu.memory_space<vmem>>, vector<1x8x128xf32>
    %84 = vector.shape_cast %83 : vector<1x8x128xf32> to vector<8x128xf32>
    %cst_51 = arith.constant dense<0.000000e+00> : vector<8x128xf32>
    %85 = tpu.matmul %69, %13, %cst_51 {dimension_numbers = #tpu.dot_dimension_numbers<[1], [0], [0], [1], [0, 0, 1, 1], [], []>} : vector<8x32xf32>, vector<32x128xf32>, vector<8x128xf32> -> vector<8x128xf32>
    %86 = arith.addf %84, %85 : vector<8x128xf32>
    %87 = vector.extract_strided_slice %86 {offsets = [0, 0], sizes = [8, 32], strides = [1, 1]} : vector<8x128xf32> to vector<8x32xf32>
    %88 = arith.negf %87 : vector<8x32xf32>
    %89 = math.exp %88 : vector<8x32xf32>
    %cst_52 = arith.constant 1.000000e+00 : f32
    %90 = vector.broadcast %cst_52 : f32 to vector<8x32xf32>
    %91 = arith.addf %90, %89 : vector<8x32xf32>
    %92 = arith.divf %90, %91 : vector<8x32xf32>
    %93 = vector.extract_strided_slice %86 {offsets = [0, 32], sizes = [8, 32], strides = [1, 1]} : vector<8x128xf32> to vector<8x32xf32>
    %94 = arith.negf %93 : vector<8x32xf32>
    %95 = math.exp %94 : vector<8x32xf32>
    %cst_53 = arith.constant 1.000000e+00 : f32
    %96 = vector.broadcast %cst_53 : f32 to vector<8x32xf32>
    %97 = arith.addf %96, %95 : vector<8x32xf32>
    %98 = arith.divf %96, %97 : vector<8x32xf32>
    %99 = vector.extract_strided_slice %86 {offsets = [0, 64], sizes = [8, 32], strides = [1, 1]} : vector<8x128xf32> to vector<8x32xf32>
    %100 = arith.negf %99 : vector<8x32xf32>
    %101 = math.exp %100 : vector<8x32xf32>
    %cst_54 = arith.constant 1.000000e+00 : f32
    %102 = vector.broadcast %cst_54 : f32 to vector<8x32xf32>
    %103 = arith.addf %102, %101 : vector<8x32xf32>
    %104 = arith.divf %102, %103 : vector<8x32xf32>
    %105 = vector.extract_strided_slice %86 {offsets = [0, 96], sizes = [8, 32], strides = [1, 1]} : vector<8x128xf32> to vector<8x32xf32>
    %106 = math.tanh %105 : vector<8x32xf32>
    %107 = arith.mulf %98, %81 : vector<8x32xf32>
    %108 = arith.mulf %92, %106 : vector<8x32xf32>
    %109 = arith.addf %107, %108 : vector<8x32xf32>
    %110 = math.tanh %109 : vector<8x32xf32>
    %111 = arith.mulf %104, %110 : vector<8x32xf32>
    %c0_55 = arith.constant 0 : index
    %c0_56 = arith.constant 0 : index
    %112 = vector.load %arg10[%c0_55, %c0_56] : memref<8x32xf32, #tpu.memory_space<vmem>>, vector<8x32xf32>
    tpu.vector_store %arg10[%c0_55, %c0_56], %111 {strides = array<i32>} : memref<8x32xf32, #tpu.memory_space<vmem>>, vector<8x32xf32>,
    %c0_57 = arith.constant 0 : index
    %c0_58 = arith.constant 0 : index
    %113 = vector.load %arg11[%c0_57, %c0_58] : memref<8x32xf32, #tpu.memory_space<vmem>>, vector<8x32xf32>
    tpu.vector_store %arg11[%c0_57, %c0_58], %109 {strides = array<i32>} : memref<8x32xf32, #tpu.memory_space<vmem>>, vector<8x32xf32>,
    %114 = arith.index_cast %c1_i32 : i32 to index
    %c0_59 = arith.constant 0 : index
    %c0_60 = arith.constant 0 : index
    %115 = vector.load %arg8[%114, %c0_59, %c0_60] : memref<8x8x32xf32, #tpu.memory_space<vmem>>, vector<1x8x32xf32>
    %116 = vector.shape_cast %115 : vector<1x8x32xf32> to vector<8x32xf32>
    %117 = vector.shape_cast %111 : vector<8x32xf32> to vector<1x8x32xf32>
    tpu.vector_store %arg8[%114, %c0_59, %c0_60], %117 {strides = array<i32>} : memref<8x8x32xf32, #tpu.memory_space<vmem>>, vector<1x8x32xf32>,
    %118 = arith.index_cast %c1_i32 : i32 to index
    %c0_61 = arith.constant 0 : index
    %c0_62 = arith.constant 0 : index
    %119 = vector.load %arg9[%118, %c0_61, %c0_62] : memref<8x8x32xf32, #tpu.memory_space<vmem>>, vector<1x8x32xf32>
    %120 = vector.shape_cast %119 : vector<1x8x32xf32> to vector<8x32xf32>
    %121 = vector.shape_cast %109 : vector<8x32xf32> to vector<1x8x32xf32>
    tpu.vector_store %arg9[%118, %c0_61, %c0_62], %121 {strides = array<i32>} : memref<8x8x32xf32, #tpu.memory_space<vmem>>, vector<1x8x32xf32>,
    %c2_i32 = arith.constant 2 : i32
    %c0_63 = arith.constant 0 : index
    %c0_64 = arith.constant 0 : index
    %122 = vector.load %arg10[%c0_63, %c0_64] : memref<8x32xf32, #tpu.memory_space<vmem>>, vector<8x32xf32>
    %c0_65 = arith.constant 0 : index
    %c0_66 = arith.constant 0 : index
    %123 = vector.load %arg11[%c0_65, %c0_66] : memref<8x32xf32, #tpu.memory_space<vmem>>, vector<8x32xf32>
    %124 = arith.index_cast %c2_i32 : i32 to index
    %c0_67 = arith.constant 0 : index
    %c0_68 = arith.constant 0 : index
    %125 = vector.load %arg2[%124, %c0_67, %c0_68] : memref<8x8x1xf32, #tpu.memory_space<vmem>>, vector<1x8x1xf32>
    %126 = vector.shape_cast %125 : vector<1x8x1xf32> to vector<8x1xf32>
    %cst_69 = arith.constant dense<0.000000e+00> : vector<8x32xf32>
    %127 = tpu.matmul %123, %14, %cst_69 {dimension_numbers = #tpu.dot_dimension_numbers<[1], [0], [0], [1], [0, 0, 1, 1], [], []>} : vector<8x32xf32>, vector<32x32xf32>, vector<8x32xf32> -> vector<8x32xf32>
    %128 = vector.broadcast %15 : vector<1x32xf32> to vector<8x32xf32>
    %129 = arith.addf %127, %128 : vector<8x32xf32>
    %130 = math.tanh %129 : vector<8x32xf32>
    %131 = arith.subf %123, %130 : vector<8x32xf32>
    %132 = vector.broadcast %126 : vector<8x1xf32> to vector<8x32xf32>
    %133 = arith.mulf %132, %130 : vector<8x32xf32>
    %134 = arith.addf %131, %133 : vector<8x32xf32>
    %135 = arith.index_cast %c2_i32 : i32 to index
    %c0_70 = arith.constant 0 : index
    %c0_71 = arith.constant 0 : index
    %136 = vector.load %arg12[%135, %c0_70, %c0_71] : memref<8x8x128xf32, #tpu.memory_space<vmem>>, vector<1x8x128xf32>
    %137 = vector.shape_cast %136 : vector<1x8x128xf32> to vector<8x128xf32>
    %cst_72 = arith.constant dense<0.000000e+00> : vector<8x128xf32>
    %138 = tpu.matmul %122, %13, %cst_72 {dimension_numbers = #tpu.dot_dimension_numbers<[1], [0], [0], [1], [0, 0, 1, 1], [], []>} : vector<8x32xf32>, vector<32x128xf32>, vector<8x128xf32> -> vector<8x128xf32>
    %139 = arith.addf %137, %138 : vector<8x128xf32>
    %140 = vector.extract_strided_slice %139 {offsets = [0, 0], sizes = [8, 32], strides = [1, 1]} : vector<8x128xf32> to vector<8x32xf32>
    %141 = arith.negf %140 : vector<8x32xf32>
    %142 = math.exp %141 : vector<8x32xf32>
    %cst_73 = arith.constant 1.000000e+00 : f32
    %143 = vector.broadcast %cst_73 : f32 to vector<8x32xf32>
    %144 = arith.addf %143, %142 : vector<8x32xf32>
    %145 = arith.divf %143, %144 : vector<8x32xf32>
    %146 = vector.extract_strided_slice %139 {offsets = [0, 32], sizes = [8, 32], strides = [1, 1]} : vector<8x128xf32> to vector<8x32xf32>
    %147 = arith.negf %146 : vector<8x32xf32>
    %148 = math.exp %147 : vector<8x32xf32>
    %cst_74 = arith.constant 1.000000e+00 : f32
    %149 = vector.broadcast %cst_74 : f32 to vector<8x32xf32>
    %150 = arith.addf %149, %148 : vector<8x32xf32>
    %151 = arith.divf %149, %150 : vector<8x32xf32>
    %152 = vector.extract_strided_slice %139 {offsets = [0, 64], sizes = [8, 32], strides = [1, 1]} : vector<8x128xf32> to vector<8x32xf32>
    %153 = arith.negf %152 : vector<8x32xf32>
    %154 = math.exp %153 : vector<8x32xf32>
    %cst_75 = arith.constant 1.000000e+00 : f32
    %155 = vector.broadcast %cst_75 : f32 to vector<8x32xf32>
    %156 = arith.addf %155, %154 : vector<8x32xf32>
    %157 = arith.divf %155, %156 : vector<8x32xf32>
    %158 = vector.extract_strided_slice %139 {offsets = [0, 96], sizes = [8, 32], strides = [1, 1]} : vector<8x128xf32> to vector<8x32xf32>
    %159 = math.tanh %158 : vector<8x32xf32>
    %160 = arith.mulf %151, %134 : vector<8x32xf32>
    %161 = arith.mulf %145, %159 : vector<8x32xf32>
    %162 = arith.addf %160, %161 : vector<8x32xf32>
    %163 = math.tanh %162 : vector<8x32xf32>
    %164 = arith.mulf %157, %163 : vector<8x32xf32>
    %c0_76 = arith.constant 0 : index
    %c0_77 = arith.constant 0 : index
    %165 = vector.load %arg10[%c0_76, %c0_77] : memref<8x32xf32, #tpu.memory_space<vmem>>, vector<8x32xf32>
    tpu.vector_store %arg10[%c0_76, %c0_77], %164 {strides = array<i32>} : memref<8x32xf32, #tpu.memory_space<vmem>>, vector<8x32xf32>,
    %c0_78 = arith.constant 0 : index
    %c0_79 = arith.constant 0 : index
    %166 = vector.load %arg11[%c0_78, %c0_79] : memref<8x32xf32, #tpu.memory_space<vmem>>, vector<8x32xf32>
    tpu.vector_store %arg11[%c0_78, %c0_79], %162 {strides = array<i32>} : memref<8x32xf32, #tpu.memory_space<vmem>>, vector<8x32xf32>,
    %167 = arith.index_cast %c2_i32 : i32 to index
    %c0_80 = arith.constant 0 : index
    %c0_81 = arith.constant 0 : index
    %168 = vector.load %arg8[%167, %c0_80, %c0_81] : memref<8x8x32xf32, #tpu.memory_space<vmem>>, vector<1x8x32xf32>
    %169 = vector.shape_cast %168 : vector<1x8x32xf32> to vector<8x32xf32>
    %170 = vector.shape_cast %164 : vector<8x32xf32> to vector<1x8x32xf32>
    tpu.vector_store %arg8[%167, %c0_80, %c0_81], %170 {strides = array<i32>} : memref<8x8x32xf32, #tpu.memory_space<vmem>>, vector<1x8x32xf32>,
    %171 = arith.index_cast %c2_i32 : i32 to index
    %c0_82 = arith.constant 0 : index
    %c0_83 = arith.constant 0 : index
    %172 = vector.load %arg9[%171, %c0_82, %c0_83] : memref<8x8x32xf32, #tpu.memory_space<vmem>>, vector<1x8x32xf32>
    %173 = vector.shape_cast %172 : vector<1x8x32xf32> to vector<8x32xf32>
    %174 = vector.shape_cast %162 : vector<8x32xf32> to vector<1x8x32xf32>
    tpu.vector_store %arg9[%171, %c0_82, %c0_83], %174 {strides = array<i32>} : memref<8x8x32xf32, #tpu.memory_space<vmem>>, vector<1x8x32xf32>,
    %c3_i32 = arith.constant 3 : i32
    %c0_84 = arith.constant 0 : index
    %c0_85 = arith.constant 0 : index
    %175 = vector.load %arg10[%c0_84, %c0_85] : memref<8x32xf32, #tpu.memory_space<vmem>>, vector<8x32xf32>
    %c0_86 = arith.constant 0 : index
    %c0_87 = arith.constant 0 : index
    %176 = vector.load %arg11[%c0_86, %c0_87] : memref<8x32xf32, #tpu.memory_space<vmem>>, vector<8x32xf32>
    %177 = arith.index_cast %c3_i32 : i32 to index
    %c0_88 = arith.constant 0 : index
    %c0_89 = arith.constant 0 : index
    %178 = vector.load %arg2[%177, %c0_88, %c0_89] : memref<8x8x1xf32, #tpu.memory_space<vmem>>, vector<1x8x1xf32>
    %179 = vector.shape_cast %178 : vector<1x8x1xf32> to vector<8x1xf32>
    %cst_90 = arith.constant dense<0.000000e+00> : vector<8x32xf32>
    %180 = tpu.matmul %176, %14, %cst_90 {dimension_numbers = #tpu.dot_dimension_numbers<[1], [0], [0], [1], [0, 0, 1, 1], [], []>} : vector<8x32xf32>, vector<32x32xf32>, vector<8x32xf32> -> vector<8x32xf32>
    %181 = vector.broadcast %15 : vector<1x32xf32> to vector<8x32xf32>
    %182 = arith.addf %180, %181 : vector<8x32xf32>
    %183 = math.tanh %182 : vector<8x32xf32>
    %184 = arith.subf %176, %183 : vector<8x32xf32>
    %185 = vector.broadcast %179 : vector<8x1xf32> to vector<8x32xf32>
    %186 = arith.mulf %185, %183 : vector<8x32xf32>
    %187 = arith.addf %184, %186 : vector<8x32xf32>
    %188 = arith.index_cast %c3_i32 : i32 to index
    %c0_91 = arith.constant 0 : index
    %c0_92 = arith.constant 0 : index
    %189 = vector.load %arg12[%188, %c0_91, %c0_92] : memref<8x8x128xf32, #tpu.memory_space<vmem>>, vector<1x8x128xf32>
    %190 = vector.shape_cast %189 : vector<1x8x128xf32> to vector<8x128xf32>
    %cst_93 = arith.constant dense<0.000000e+00> : vector<8x128xf32>
    %191 = tpu.matmul %175, %13, %cst_93 {dimension_numbers = #tpu.dot_dimension_numbers<[1], [0], [0], [1], [0, 0, 1, 1], [], []>} : vector<8x32xf32>, vector<32x128xf32>, vector<8x128xf32> -> vector<8x128xf32>
    %192 = arith.addf %190, %191 : vector<8x128xf32>
    %193 = vector.extract_strided_slice %192 {offsets = [0, 0], sizes = [8, 32], strides = [1, 1]} : vector<8x128xf32> to vector<8x32xf32>
    %194 = arith.negf %193 : vector<8x32xf32>
    %195 = math.exp %194 : vector<8x32xf32>
    %cst_94 = arith.constant 1.000000e+00 : f32
    %196 = vector.broadcast %cst_94 : f32 to vector<8x32xf32>
    %197 = arith.addf %196, %195 : vector<8x32xf32>
    %198 = arith.divf %196, %197 : vector<8x32xf32>
    %199 = vector.extract_strided_slice %192 {offsets = [0, 32], sizes = [8, 32], strides = [1, 1]} : vector<8x128xf32> to vector<8x32xf32>
    %200 = arith.negf %199 : vector<8x32xf32>
    %201 = math.exp %200 : vector<8x32xf32>
    %cst_95 = arith.constant 1.000000e+00 : f32
    %202 = vector.broadcast %cst_95 : f32 to vector<8x32xf32>
    %203 = arith.addf %202, %201 : vector<8x32xf32>
    %204 = arith.divf %202, %203 : vector<8x32xf32>
    %205 = vector.extract_strided_slice %192 {offsets = [0, 64], sizes = [8, 32], strides = [1, 1]} : vector<8x128xf32> to vector<8x32xf32>
    %206 = arith.negf %205 : vector<8x32xf32>
    %207 = math.exp %206 : vector<8x32xf32>
    %cst_96 = arith.constant 1.000000e+00 : f32
    %208 = vector.broadcast %cst_96 : f32 to vector<8x32xf32>
    %209 = arith.addf %208, %207 : vector<8x32xf32>
    %210 = arith.divf %208, %209 : vector<8x32xf32>
    %211 = vector.extract_strided_slice %192 {offsets = [0, 96], sizes = [8, 32], strides = [1, 1]} : vector<8x128xf32> to vector<8x32xf32>
    %212 = math.tanh %211 : vector<8x32xf32>
    %213 = arith.mulf %204, %187 : vector<8x32xf32>
    %214 = arith.mulf %198, %212 : vector<8x32xf32>
    %215 = arith.addf %213, %214 : vector<8x32xf32>
    %216 = math.tanh %215 : vector<8x32xf32>
    %217 = arith.mulf %210, %216 : vector<8x32xf32>
    %c0_97 = arith.constant 0 : index
    %c0_98 = arith.constant 0 : index
    %218 = vector.load %arg10[%c0_97, %c0_98] : memref<8x32xf32, #tpu.memory_space<vmem>>, vector<8x32xf32>
    tpu.vector_store %arg10[%c0_97, %c0_98], %217 {strides = array<i32>} : memref<8x32xf32, #tpu.memory_space<vmem>>, vector<8x32xf32>,
    %c0_99 = arith.constant 0 : index
    %c0_100 = arith.constant 0 : index
    %219 = vector.load %arg11[%c0_99, %c0_100] : memref<8x32xf32, #tpu.memory_space<vmem>>, vector<8x32xf32>
    tpu.vector_store %arg11[%c0_99, %c0_100], %215 {strides = array<i32>} : memref<8x32xf32, #tpu.memory_space<vmem>>, vector<8x32xf32>,
    %220 = arith.index_cast %c3_i32 : i32 to index
    %c0_101 = arith.constant 0 : index
    %c0_102 = arith.constant 0 : index
    %221 = vector.load %arg8[%220, %c0_101, %c0_102] : memref<8x8x32xf32, #tpu.memory_space<vmem>>, vector<1x8x32xf32>
    %222 = vector.shape_cast %221 : vector<1x8x32xf32> to vector<8x32xf32>
    %223 = vector.shape_cast %217 : vector<8x32xf32> to vector<1x8x32xf32>
    tpu.vector_store %arg8[%220, %c0_101, %c0_102], %223 {strides = array<i32>} : memref<8x8x32xf32, #tpu.memory_space<vmem>>, vector<1x8x32xf32>,
    %224 = arith.index_cast %c3_i32 : i32 to index
    %c0_103 = arith.constant 0 : index
    %c0_104 = arith.constant 0 : index
    %225 = vector.load %arg9[%224, %c0_103, %c0_104] : memref<8x8x32xf32, #tpu.memory_space<vmem>>, vector<1x8x32xf32>
    %226 = vector.shape_cast %225 : vector<1x8x32xf32> to vector<8x32xf32>
    %227 = vector.shape_cast %215 : vector<8x32xf32> to vector<1x8x32xf32>
    tpu.vector_store %arg9[%224, %c0_103, %c0_104], %227 {strides = array<i32>} : memref<8x8x32xf32, #tpu.memory_space<vmem>>, vector<1x8x32xf32>,
    %c4_i32 = arith.constant 4 : i32
    %c0_105 = arith.constant 0 : index
    %c0_106 = arith.constant 0 : index
    %228 = vector.load %arg10[%c0_105, %c0_106] : memref<8x32xf32, #tpu.memory_space<vmem>>, vector<8x32xf32>
    %c0_107 = arith.constant 0 : index
    %c0_108 = arith.constant 0 : index
    %229 = vector.load %arg11[%c0_107, %c0_108] : memref<8x32xf32, #tpu.memory_space<vmem>>, vector<8x32xf32>
    %230 = arith.index_cast %c4_i32 : i32 to index
    %c0_109 = arith.constant 0 : index
    %c0_110 = arith.constant 0 : index
    %231 = vector.load %arg2[%230, %c0_109, %c0_110] : memref<8x8x1xf32, #tpu.memory_space<vmem>>, vector<1x8x1xf32>
    %232 = vector.shape_cast %231 : vector<1x8x1xf32> to vector<8x1xf32>
    %cst_111 = arith.constant dense<0.000000e+00> : vector<8x32xf32>
    %233 = tpu.matmul %229, %14, %cst_111 {dimension_numbers = #tpu.dot_dimension_numbers<[1], [0], [0], [1], [0, 0, 1, 1], [], []>} : vector<8x32xf32>, vector<32x32xf32>, vector<8x32xf32> -> vector<8x32xf32>
    %234 = vector.broadcast %15 : vector<1x32xf32> to vector<8x32xf32>
    %235 = arith.addf %233, %234 : vector<8x32xf32>
    %236 = math.tanh %235 : vector<8x32xf32>
    %237 = arith.subf %229, %236 : vector<8x32xf32>
    %238 = vector.broadcast %232 : vector<8x1xf32> to vector<8x32xf32>
    %239 = arith.mulf %238, %236 : vector<8x32xf32>
    %240 = arith.addf %237, %239 : vector<8x32xf32>
    %241 = arith.index_cast %c4_i32 : i32 to index
    %c0_112 = arith.constant 0 : index
    %c0_113 = arith.constant 0 : index
    %242 = vector.load %arg12[%241, %c0_112, %c0_113] : memref<8x8x128xf32, #tpu.memory_space<vmem>>, vector<1x8x128xf32>
    %243 = vector.shape_cast %242 : vector<1x8x128xf32> to vector<8x128xf32>
    %cst_114 = arith.constant dense<0.000000e+00> : vector<8x128xf32>
    %244 = tpu.matmul %228, %13, %cst_114 {dimension_numbers = #tpu.dot_dimension_numbers<[1], [0], [0], [1], [0, 0, 1, 1], [], []>} : vector<8x32xf32>, vector<32x128xf32>, vector<8x128xf32> -> vector<8x128xf32>
    %245 = arith.addf %243, %244 : vector<8x128xf32>
    %246 = vector.extract_strided_slice %245 {offsets = [0, 0], sizes = [8, 32], strides = [1, 1]} : vector<8x128xf32> to vector<8x32xf32>
    %247 = arith.negf %246 : vector<8x32xf32>
    %248 = math.exp %247 : vector<8x32xf32>
    %cst_115 = arith.constant 1.000000e+00 : f32
    %249 = vector.broadcast %cst_115 : f32 to vector<8x32xf32>
    %250 = arith.addf %249, %248 : vector<8x32xf32>
    %251 = arith.divf %249, %250 : vector<8x32xf32>
    %252 = vector.extract_strided_slice %245 {offsets = [0, 32], sizes = [8, 32], strides = [1, 1]} : vector<8x128xf32> to vector<8x32xf32>
    %253 = arith.negf %252 : vector<8x32xf32>
    %254 = math.exp %253 : vector<8x32xf32>
    %cst_116 = arith.constant 1.000000e+00 : f32
    %255 = vector.broadcast %cst_116 : f32 to vector<8x32xf32>
    %256 = arith.addf %255, %254 : vector<8x32xf32>
    %257 = arith.divf %255, %256 : vector<8x32xf32>
    %258 = vector.extract_strided_slice %245 {offsets = [0, 64], sizes = [8, 32], strides = [1, 1]} : vector<8x128xf32> to vector<8x32xf32>
    %259 = arith.negf %258 : vector<8x32xf32>
    %260 = math.exp %259 : vector<8x32xf32>
    %cst_117 = arith.constant 1.000000e+00 : f32
    %261 = vector.broadcast %cst_117 : f32 to vector<8x32xf32>
    %262 = arith.addf %261, %260 : vector<8x32xf32>
    %263 = arith.divf %261, %262 : vector<8x32xf32>
    %264 = vector.extract_strided_slice %245 {offsets = [0, 96], sizes = [8, 32], strides = [1, 1]} : vector<8x128xf32> to vector<8x32xf32>
    %265 = math.tanh %264 : vector<8x32xf32>
    %266 = arith.mulf %257, %240 : vector<8x32xf32>
    %267 = arith.mulf %251, %265 : vector<8x32xf32>
    %268 = arith.addf %266, %267 : vector<8x32xf32>
    %269 = math.tanh %268 : vector<8x32xf32>
    %270 = arith.mulf %263, %269 : vector<8x32xf32>
    %c0_118 = arith.constant 0 : index
    %c0_119 = arith.constant 0 : index
    %271 = vector.load %arg10[%c0_118, %c0_119] : memref<8x32xf32, #tpu.memory_space<vmem>>, vector<8x32xf32>
    tpu.vector_store %arg10[%c0_118, %c0_119], %270 {strides = array<i32>} : memref<8x32xf32, #tpu.memory_space<vmem>>, vector<8x32xf32>,
    %c0_120 = arith.constant 0 : index
    %c0_121 = arith.constant 0 : index
    %272 = vector.load %arg11[%c0_120, %c0_121] : memref<8x32xf32, #tpu.memory_space<vmem>>, vector<8x32xf32>
    tpu.vector_store %arg11[%c0_120, %c0_121], %268 {strides = array<i32>} : memref<8x32xf32, #tpu.memory_space<vmem>>, vector<8x32xf32>,
    %273 = arith.index_cast %c4_i32 : i32 to index
    %c0_122 = arith.constant 0 : index
    %c0_123 = arith.constant 0 : index
    %274 = vector.load %arg8[%273, %c0_122, %c0_123] : memref<8x8x32xf32, #tpu.memory_space<vmem>>, vector<1x8x32xf32>
    %275 = vector.shape_cast %274 : vector<1x8x32xf32> to vector<8x32xf32>
    %276 = vector.shape_cast %270 : vector<8x32xf32> to vector<1x8x32xf32>
    tpu.vector_store %arg8[%273, %c0_122, %c0_123], %276 {strides = array<i32>} : memref<8x8x32xf32, #tpu.memory_space<vmem>>, vector<1x8x32xf32>,
    %277 = arith.index_cast %c4_i32 : i32 to index
    %c0_124 = arith.constant 0 : index
    %c0_125 = arith.constant 0 : index
    %278 = vector.load %arg9[%277, %c0_124, %c0_125] : memref<8x8x32xf32, #tpu.memory_space<vmem>>, vector<1x8x32xf32>
    %279 = vector.shape_cast %278 : vector<1x8x32xf32> to vector<8x32xf32>
    %280 = vector.shape_cast %268 : vector<8x32xf32> to vector<1x8x32xf32>
    tpu.vector_store %arg9[%277, %c0_124, %c0_125], %280 {strides = array<i32>} : memref<8x8x32xf32, #tpu.memory_space<vmem>>, vector<1x8x32xf32>,
    %c5_i32 = arith.constant 5 : i32
    %c0_126 = arith.constant 0 : index
    %c0_127 = arith.constant 0 : index
    %281 = vector.load %arg10[%c0_126, %c0_127] : memref<8x32xf32, #tpu.memory_space<vmem>>, vector<8x32xf32>
    %c0_128 = arith.constant 0 : index
    %c0_129 = arith.constant 0 : index
    %282 = vector.load %arg11[%c0_128, %c0_129] : memref<8x32xf32, #tpu.memory_space<vmem>>, vector<8x32xf32>
    %283 = arith.index_cast %c5_i32 : i32 to index
    %c0_130 = arith.constant 0 : index
    %c0_131 = arith.constant 0 : index
    %284 = vector.load %arg2[%283, %c0_130, %c0_131] : memref<8x8x1xf32, #tpu.memory_space<vmem>>, vector<1x8x1xf32>
    %285 = vector.shape_cast %284 : vector<1x8x1xf32> to vector<8x1xf32>
    %cst_132 = arith.constant dense<0.000000e+00> : vector<8x32xf32>
    %286 = tpu.matmul %282, %14, %cst_132 {dimension_numbers = #tpu.dot_dimension_numbers<[1], [0], [0], [1], [0, 0, 1, 1], [], []>} : vector<8x32xf32>, vector<32x32xf32>, vector<8x32xf32> -> vector<8x32xf32>
    %287 = vector.broadcast %15 : vector<1x32xf32> to vector<8x32xf32>
    %288 = arith.addf %286, %287 : vector<8x32xf32>
    %289 = math.tanh %288 : vector<8x32xf32>
    %290 = arith.subf %282, %289 : vector<8x32xf32>
    %291 = vector.broadcast %285 : vector<8x1xf32> to vector<8x32xf32>
    %292 = arith.mulf %291, %289 : vector<8x32xf32>
    %293 = arith.addf %290, %292 : vector<8x32xf32>
    %294 = arith.index_cast %c5_i32 : i32 to index
    %c0_133 = arith.constant 0 : index
    %c0_134 = arith.constant 0 : index
    %295 = vector.load %arg12[%294, %c0_133, %c0_134] : memref<8x8x128xf32, #tpu.memory_space<vmem>>, vector<1x8x128xf32>
    %296 = vector.shape_cast %295 : vector<1x8x128xf32> to vector<8x128xf32>
    %cst_135 = arith.constant dense<0.000000e+00> : vector<8x128xf32>
    %297 = tpu.matmul %281, %13, %cst_135 {dimension_numbers = #tpu.dot_dimension_numbers<[1], [0], [0], [1], [0, 0, 1, 1], [], []>} : vector<8x32xf32>, vector<32x128xf32>, vector<8x128xf32> -> vector<8x128xf32>
    %298 = arith.addf %296, %297 : vector<8x128xf32>
    %299 = vector.extract_strided_slice %298 {offsets = [0, 0], sizes = [8, 32], strides = [1, 1]} : vector<8x128xf32> to vector<8x32xf32>
    %300 = arith.negf %299 : vector<8x32xf32>
    %301 = math.exp %300 : vector<8x32xf32>
    %cst_136 = arith.constant 1.000000e+00 : f32
    %302 = vector.broadcast %cst_136 : f32 to vector<8x32xf32>
    %303 = arith.addf %302, %301 : vector<8x32xf32>
    %304 = arith.divf %302, %303 : vector<8x32xf32>
    %305 = vector.extract_strided_slice %298 {offsets = [0, 32], sizes = [8, 32], strides = [1, 1]} : vector<8x128xf32> to vector<8x32xf32>
    %306 = arith.negf %305 : vector<8x32xf32>
    %307 = math.exp %306 : vector<8x32xf32>
    %cst_137 = arith.constant 1.000000e+00 : f32
    %308 = vector.broadcast %cst_137 : f32 to vector<8x32xf32>
    %309 = arith.addf %308, %307 : vector<8x32xf32>
    %310 = arith.divf %308, %309 : vector<8x32xf32>
    %311 = vector.extract_strided_slice %298 {offsets = [0, 64], sizes = [8, 32], strides = [1, 1]} : vector<8x128xf32> to vector<8x32xf32>
    %312 = arith.negf %311 : vector<8x32xf32>
    %313 = math.exp %312 : vector<8x32xf32>
    %cst_138 = arith.constant 1.000000e+00 : f32
    %314 = vector.broadcast %cst_138 : f32 to vector<8x32xf32>
    %315 = arith.addf %314, %313 : vector<8x32xf32>
    %316 = arith.divf %314, %315 : vector<8x32xf32>
    %317 = vector.extract_strided_slice %298 {offsets = [0, 96], sizes = [8, 32], strides = [1, 1]} : vector<8x128xf32> to vector<8x32xf32>
    %318 = math.tanh %317 : vector<8x32xf32>
    %319 = arith.mulf %310, %293 : vector<8x32xf32>
    %320 = arith.mulf %304, %318 : vector<8x32xf32>
    %321 = arith.addf %319, %320 : vector<8x32xf32>
    %322 = math.tanh %321 : vector<8x32xf32>
    %323 = arith.mulf %316, %322 : vector<8x32xf32>
    %c0_139 = arith.constant 0 : index
    %c0_140 = arith.constant 0 : index
    %324 = vector.load %arg10[%c0_139, %c0_140] : memref<8x32xf32, #tpu.memory_space<vmem>>, vector<8x32xf32>
    tpu.vector_store %arg10[%c0_139, %c0_140], %323 {strides = array<i32>} : memref<8x32xf32, #tpu.memory_space<vmem>>, vector<8x32xf32>,
    %c0_141 = arith.constant 0 : index
    %c0_142 = arith.constant 0 : index
    %325 = vector.load %arg11[%c0_141, %c0_142] : memref<8x32xf32, #tpu.memory_space<vmem>>, vector<8x32xf32>
    tpu.vector_store %arg11[%c0_141, %c0_142], %321 {strides = array<i32>} : memref<8x32xf32, #tpu.memory_space<vmem>>, vector<8x32xf32>,
    %326 = arith.index_cast %c5_i32 : i32 to index
    %c0_143 = arith.constant 0 : index
    %c0_144 = arith.constant 0 : index
    %327 = vector.load %arg8[%326, %c0_143, %c0_144] : memref<8x8x32xf32, #tpu.memory_space<vmem>>, vector<1x8x32xf32>
    %328 = vector.shape_cast %327 : vector<1x8x32xf32> to vector<8x32xf32>
    %329 = vector.shape_cast %323 : vector<8x32xf32> to vector<1x8x32xf32>
    tpu.vector_store %arg8[%326, %c0_143, %c0_144], %329 {strides = array<i32>} : memref<8x8x32xf32, #tpu.memory_space<vmem>>, vector<1x8x32xf32>,
    %330 = arith.index_cast %c5_i32 : i32 to index
    %c0_145 = arith.constant 0 : index
    %c0_146 = arith.constant 0 : index
    %331 = vector.load %arg9[%330, %c0_145, %c0_146] : memref<8x8x32xf32, #tpu.memory_space<vmem>>, vector<1x8x32xf32>
    %332 = vector.shape_cast %331 : vector<1x8x32xf32> to vector<8x32xf32>
    %333 = vector.shape_cast %321 : vector<8x32xf32> to vector<1x8x32xf32>
    tpu.vector_store %arg9[%330, %c0_145, %c0_146], %333 {strides = array<i32>} : memref<8x8x32xf32, #tpu.memory_space<vmem>>, vector<1x8x32xf32>,
    %c6_i32 = arith.constant 6 : i32
    %c0_147 = arith.constant 0 : index
    %c0_148 = arith.constant 0 : index
    %334 = vector.load %arg10[%c0_147, %c0_148] : memref<8x32xf32, #tpu.memory_space<vmem>>, vector<8x32xf32>
    %c0_149 = arith.constant 0 : index
    %c0_150 = arith.constant 0 : index
    %335 = vector.load %arg11[%c0_149, %c0_150] : memref<8x32xf32, #tpu.memory_space<vmem>>, vector<8x32xf32>
    %336 = arith.index_cast %c6_i32 : i32 to index
    %c0_151 = arith.constant 0 : index
    %c0_152 = arith.constant 0 : index
    %337 = vector.load %arg2[%336, %c0_151, %c0_152] : memref<8x8x1xf32, #tpu.memory_space<vmem>>, vector<1x8x1xf32>
    %338 = vector.shape_cast %337 : vector<1x8x1xf32> to vector<8x1xf32>
    %cst_153 = arith.constant dense<0.000000e+00> : vector<8x32xf32>
    %339 = tpu.matmul %335, %14, %cst_153 {dimension_numbers = #tpu.dot_dimension_numbers<[1], [0], [0], [1], [0, 0, 1, 1], [], []>} : vector<8x32xf32>, vector<32x32xf32>, vector<8x32xf32> -> vector<8x32xf32>
    %340 = vector.broadcast %15 : vector<1x32xf32> to vector<8x32xf32>
    %341 = arith.addf %339, %340 : vector<8x32xf32>
    %342 = math.tanh %341 : vector<8x32xf32>
    %343 = arith.subf %335, %342 : vector<8x32xf32>
    %344 = vector.broadcast %338 : vector<8x1xf32> to vector<8x32xf32>
    %345 = arith.mulf %344, %342 : vector<8x32xf32>
    %346 = arith.addf %343, %345 : vector<8x32xf32>
    %347 = arith.index_cast %c6_i32 : i32 to index
    %c0_154 = arith.constant 0 : index
    %c0_155 = arith.constant 0 : index
    %348 = vector.load %arg12[%347, %c0_154, %c0_155] : memref<8x8x128xf32, #tpu.memory_space<vmem>>, vector<1x8x128xf32>
    %349 = vector.shape_cast %348 : vector<1x8x128xf32> to vector<8x128xf32>
    %cst_156 = arith.constant dense<0.000000e+00> : vector<8x128xf32>
    %350 = tpu.matmul %334, %13, %cst_156 {dimension_numbers = #tpu.dot_dimension_numbers<[1], [0], [0], [1], [0, 0, 1, 1], [], []>} : vector<8x32xf32>, vector<32x128xf32>, vector<8x128xf32> -> vector<8x128xf32>
    %351 = arith.addf %349, %350 : vector<8x128xf32>
    %352 = vector.extract_strided_slice %351 {offsets = [0, 0], sizes = [8, 32], strides = [1, 1]} : vector<8x128xf32> to vector<8x32xf32>
    %353 = arith.negf %352 : vector<8x32xf32>
    %354 = math.exp %353 : vector<8x32xf32>
    %cst_157 = arith.constant 1.000000e+00 : f32
    %355 = vector.broadcast %cst_157 : f32 to vector<8x32xf32>
    %356 = arith.addf %355, %354 : vector<8x32xf32>
    %357 = arith.divf %355, %356 : vector<8x32xf32>
    %358 = vector.extract_strided_slice %351 {offsets = [0, 32], sizes = [8, 32], strides = [1, 1]} : vector<8x128xf32> to vector<8x32xf32>
    %359 = arith.negf %358 : vector<8x32xf32>
    %360 = math.exp %359 : vector<8x32xf32>
    %cst_158 = arith.constant 1.000000e+00 : f32
    %361 = vector.broadcast %cst_158 : f32 to vector<8x32xf32>
    %362 = arith.addf %361, %360 : vector<8x32xf32>
    %363 = arith.divf %361, %362 : vector<8x32xf32>
    %364 = vector.extract_strided_slice %351 {offsets = [0, 64], sizes = [8, 32], strides = [1, 1]} : vector<8x128xf32> to vector<8x32xf32>
    %365 = arith.negf %364 : vector<8x32xf32>
    %366 = math.exp %365 : vector<8x32xf32>
    %cst_159 = arith.constant 1.000000e+00 : f32
    %367 = vector.broadcast %cst_159 : f32 to vector<8x32xf32>
    %368 = arith.addf %367, %366 : vector<8x32xf32>
    %369 = arith.divf %367, %368 : vector<8x32xf32>
    %370 = vector.extract_strided_slice %351 {offsets = [0, 96], sizes = [8, 32], strides = [1, 1]} : vector<8x128xf32> to vector<8x32xf32>
    %371 = math.tanh %370 : vector<8x32xf32>
    %372 = arith.mulf %363, %346 : vector<8x32xf32>
    %373 = arith.mulf %357, %371 : vector<8x32xf32>
    %374 = arith.addf %372, %373 : vector<8x32xf32>
    %375 = math.tanh %374 : vector<8x32xf32>
    %376 = arith.mulf %369, %375 : vector<8x32xf32>
    %c0_160 = arith.constant 0 : index
    %c0_161 = arith.constant 0 : index
    %377 = vector.load %arg10[%c0_160, %c0_161] : memref<8x32xf32, #tpu.memory_space<vmem>>, vector<8x32xf32>
    tpu.vector_store %arg10[%c0_160, %c0_161], %376 {strides = array<i32>} : memref<8x32xf32, #tpu.memory_space<vmem>>, vector<8x32xf32>,
    %c0_162 = arith.constant 0 : index
    %c0_163 = arith.constant 0 : index
    %378 = vector.load %arg11[%c0_162, %c0_163] : memref<8x32xf32, #tpu.memory_space<vmem>>, vector<8x32xf32>
    tpu.vector_store %arg11[%c0_162, %c0_163], %374 {strides = array<i32>} : memref<8x32xf32, #tpu.memory_space<vmem>>, vector<8x32xf32>,
    %379 = arith.index_cast %c6_i32 : i32 to index
    %c0_164 = arith.constant 0 : index
    %c0_165 = arith.constant 0 : index
    %380 = vector.load %arg8[%379, %c0_164, %c0_165] : memref<8x8x32xf32, #tpu.memory_space<vmem>>, vector<1x8x32xf32>
    %381 = vector.shape_cast %380 : vector<1x8x32xf32> to vector<8x32xf32>
    %382 = vector.shape_cast %376 : vector<8x32xf32> to vector<1x8x32xf32>
    tpu.vector_store %arg8[%379, %c0_164, %c0_165], %382 {strides = array<i32>} : memref<8x8x32xf32, #tpu.memory_space<vmem>>, vector<1x8x32xf32>,
    %383 = arith.index_cast %c6_i32 : i32 to index
    %c0_166 = arith.constant 0 : index
    %c0_167 = arith.constant 0 : index
    %384 = vector.load %arg9[%383, %c0_166, %c0_167] : memref<8x8x32xf32, #tpu.memory_space<vmem>>, vector<1x8x32xf32>
    %385 = vector.shape_cast %384 : vector<1x8x32xf32> to vector<8x32xf32>
    %386 = vector.shape_cast %374 : vector<8x32xf32> to vector<1x8x32xf32>
    tpu.vector_store %arg9[%383, %c0_166, %c0_167], %386 {strides = array<i32>} : memref<8x8x32xf32, #tpu.memory_space<vmem>>, vector<1x8x32xf32>,
    %c7_i32 = arith.constant 7 : i32
    %c0_168 = arith.constant 0 : index
    %c0_169 = arith.constant 0 : index
    %387 = vector.load %arg10[%c0_168, %c0_169] : memref<8x32xf32, #tpu.memory_space<vmem>>, vector<8x32xf32>
    %c0_170 = arith.constant 0 : index
    %c0_171 = arith.constant 0 : index
    %388 = vector.load %arg11[%c0_170, %c0_171] : memref<8x32xf32, #tpu.memory_space<vmem>>, vector<8x32xf32>
    %389 = arith.index_cast %c7_i32 : i32 to index
    %c0_172 = arith.constant 0 : index
    %c0_173 = arith.constant 0 : index
    %390 = vector.load %arg2[%389, %c0_172, %c0_173] : memref<8x8x1xf32, #tpu.memory_space<vmem>>, vector<1x8x1xf32>
    %391 = vector.shape_cast %390 : vector<1x8x1xf32> to vector<8x1xf32>
    %cst_174 = arith.constant dense<0.000000e+00> : vector<8x32xf32>
    %392 = tpu.matmul %388, %14, %cst_174 {dimension_numbers = #tpu.dot_dimension_numbers<[1], [0], [0], [1], [0, 0, 1, 1], [], []>} : vector<8x32xf32>, vector<32x32xf32>, vector<8x32xf32> -> vector<8x32xf32>
    %393 = vector.broadcast %15 : vector<1x32xf32> to vector<8x32xf32>
    %394 = arith.addf %392, %393 : vector<8x32xf32>
    %395 = math.tanh %394 : vector<8x32xf32>
    %396 = arith.subf %388, %395 : vector<8x32xf32>
    %397 = vector.broadcast %391 : vector<8x1xf32> to vector<8x32xf32>
    %398 = arith.mulf %397, %395 : vector<8x32xf32>
    %399 = arith.addf %396, %398 : vector<8x32xf32>
    %400 = arith.index_cast %c7_i32 : i32 to index
    %c0_175 = arith.constant 0 : index
    %c0_176 = arith.constant 0 : index
    %401 = vector.load %arg12[%400, %c0_175, %c0_176] : memref<8x8x128xf32, #tpu.memory_space<vmem>>, vector<1x8x128xf32>
    %402 = vector.shape_cast %401 : vector<1x8x128xf32> to vector<8x128xf32>
    %cst_177 = arith.constant dense<0.000000e+00> : vector<8x128xf32>
    %403 = tpu.matmul %387, %13, %cst_177 {dimension_numbers = #tpu.dot_dimension_numbers<[1], [0], [0], [1], [0, 0, 1, 1], [], []>} : vector<8x32xf32>, vector<32x128xf32>, vector<8x128xf32> -> vector<8x128xf32>
    %404 = arith.addf %402, %403 : vector<8x128xf32>
    %405 = vector.extract_strided_slice %404 {offsets = [0, 0], sizes = [8, 32], strides = [1, 1]} : vector<8x128xf32> to vector<8x32xf32>
    %406 = arith.negf %405 : vector<8x32xf32>
    %407 = math.exp %406 : vector<8x32xf32>
    %cst_178 = arith.constant 1.000000e+00 : f32
    %408 = vector.broadcast %cst_178 : f32 to vector<8x32xf32>
    %409 = arith.addf %408, %407 : vector<8x32xf32>
    %410 = arith.divf %408, %409 : vector<8x32xf32>
    %411 = vector.extract_strided_slice %404 {offsets = [0, 32], sizes = [8, 32], strides = [1, 1]} : vector<8x128xf32> to vector<8x32xf32>
    %412 = arith.negf %411 : vector<8x32xf32>
    %413 = math.exp %412 : vector<8x32xf32>
    %cst_179 = arith.constant 1.000000e+00 : f32
    %414 = vector.broadcast %cst_179 : f32 to vector<8x32xf32>
    %415 = arith.addf %414, %413 : vector<8x32xf32>
    %416 = arith.divf %414, %415 : vector<8x32xf32>
    %417 = vector.extract_strided_slice %404 {offsets = [0, 64], sizes = [8, 32], strides = [1, 1]} : vector<8x128xf32> to vector<8x32xf32>
    %418 = arith.negf %417 : vector<8x32xf32>
    %419 = math.exp %418 : vector<8x32xf32>
    %cst_180 = arith.constant 1.000000e+00 : f32
    %420 = vector.broadcast %cst_180 : f32 to vector<8x32xf32>
    %421 = arith.addf %420, %419 : vector<8x32xf32>
    %422 = arith.divf %420, %421 : vector<8x32xf32>
    %423 = vector.extract_strided_slice %404 {offsets = [0, 96], sizes = [8, 32], strides = [1, 1]} : vector<8x128xf32> to vector<8x32xf32>
    %424 = math.tanh %423 : vector<8x32xf32>
    %425 = arith.mulf %416, %399 : vector<8x32xf32>
    %426 = arith.mulf %410, %424 : vector<8x32xf32>
    %427 = arith.addf %425, %426 : vector<8x32xf32>
    %428 = math.tanh %427 : vector<8x32xf32>
    %429 = arith.mulf %422, %428 : vector<8x32xf32>
    %c0_181 = arith.constant 0 : index
    %c0_182 = arith.constant 0 : index
    %430 = vector.load %arg10[%c0_181, %c0_182] : memref<8x32xf32, #tpu.memory_space<vmem>>, vector<8x32xf32>
    tpu.vector_store %arg10[%c0_181, %c0_182], %429 {strides = array<i32>} : memref<8x32xf32, #tpu.memory_space<vmem>>, vector<8x32xf32>,
    %c0_183 = arith.constant 0 : index
    %c0_184 = arith.constant 0 : index
    %431 = vector.load %arg11[%c0_183, %c0_184] : memref<8x32xf32, #tpu.memory_space<vmem>>, vector<8x32xf32>
    tpu.vector_store %arg11[%c0_183, %c0_184], %427 {strides = array<i32>} : memref<8x32xf32, #tpu.memory_space<vmem>>, vector<8x32xf32>,
    %432 = arith.index_cast %c7_i32 : i32 to index
    %c0_185 = arith.constant 0 : index
    %c0_186 = arith.constant 0 : index
    %433 = vector.load %arg8[%432, %c0_185, %c0_186] : memref<8x8x32xf32, #tpu.memory_space<vmem>>, vector<1x8x32xf32>
    %434 = vector.shape_cast %433 : vector<1x8x32xf32> to vector<8x32xf32>
    %435 = vector.shape_cast %429 : vector<8x32xf32> to vector<1x8x32xf32>
    tpu.vector_store %arg8[%432, %c0_185, %c0_186], %435 {strides = array<i32>} : memref<8x8x32xf32, #tpu.memory_space<vmem>>, vector<1x8x32xf32>,
    %436 = arith.index_cast %c7_i32 : i32 to index
    %c0_187 = arith.constant 0 : index
    %c0_188 = arith.constant 0 : index
    %437 = vector.load %arg9[%436, %c0_187, %c0_188] : memref<8x8x32xf32, #tpu.memory_space<vmem>>, vector<1x8x32xf32>
    %438 = vector.shape_cast %437 : vector<1x8x32xf32> to vector<8x32xf32>
    %439 = vector.shape_cast %427 : vector<8x32xf32> to vector<1x8x32xf32>
    tpu.vector_store %arg9[%436, %c0_187, %c0_188], %439 {strides = array<i32>} : memref<8x8x32xf32, #tpu.memory_space<vmem>>, vector<1x8x32xf32>,
    %c8_i32 = arith.constant 8 : i32
    return
  }
  func.func @transform_0(%arg0: i32) -> (i32, i32, i32) {
    %c0_i32 = arith.constant 0 : i32
    %c0_i32_0 = arith.constant 0 : i32
    %c0_i32_1 = arith.constant 0 : i32
    %c0_i32_2 = arith.constant 0 : i32
    return %c0_i32, %c0_i32_0, %c0_i32_1 : i32, i32, i32
  }
  func.func @transform_1(%arg0: i32) -> (i32, i32, i32) {
    %c0_i32 = arith.constant 0 : i32
    %c0_i32_0 = arith.constant 0 : i32
    %c0_i32_1 = arith.constant 0 : i32
    %c0_i32_2 = arith.constant 0 : i32
    return %c0_i32, %c0_i32_0, %c0_i32_1 : i32, i32, i32
  }
  func.func @transform_2(%arg0: i32) -> (i32, i32) {
    %c0_i32 = arith.constant 0 : i32
    %c0_i32_0 = arith.constant 0 : i32
    %c0_i32_1 = arith.constant 0 : i32
    return %c0_i32, %c0_i32_0 : i32, i32
  }
  func.func @transform_3(%arg0: i32) -> (i32, i32) {
    %c0_i32 = arith.constant 0 : i32
    %c0_i32_0 = arith.constant 0 : i32
    %c0_i32_1 = arith.constant 0 : i32
    return %c0_i32, %c0_i32_0 : i32, i32
  }
  func.func @transform_4(%arg0: i32) -> (i32, i32) {
    %c0_i32 = arith.constant 0 : i32
    %c0_i32_0 = arith.constant 0 : i32
    %c0_i32_1 = arith.constant 0 : i32
    return %c0_i32, %c0_i32_0 : i32, i32
  }
  func.func @transform_5(%arg0: i32) -> (i32, i32) {
    %c0_i32 = arith.constant 0 : i32
    %c0_i32_0 = arith.constant 0 : i32
    %c0_i32_1 = arith.constant 0 : i32
    return %c0_i32, %c0_i32_0 : i32, i32
  }
  func.func @transform_6(%arg0: i32) -> (i32, i32) {
    %c0_i32 = arith.constant 0 : i32
    %c0_i32_0 = arith.constant 0 : i32
    %c0_i32_1 = arith.constant 0 : i32
    return %c0_i32, %c0_i32_0 : i32, i32
  }
  func.func @transform_7(%arg0: i32) -> (i32, i32, i32) {
    %c0_i32 = arith.constant 0 : i32
    %c0_i32_0 = arith.constant 0 : i32
    %c0_i32_1 = arith.constant 0 : i32
    %c0_i32_2 = arith.constant 0 : i32
    return %c0_i32, %c0_i32_0, %c0_i32_1 : i32, i32, i32
  }
  func.func @transform_8(%arg0: i32) -> (i32, i32, i32) {
    %c0_i32 = arith.constant 0 : i32
    %c0_i32_0 = arith.constant 0 : i32
    %c0_i32_1 = arith.constant 0 : i32
    %c0_i32_2 = arith.constant 0 : i32
    return %c0_i32, %c0_i32_0, %c0_i32_1 : i32, i32, i32
  }
}

module attributes {stable_mosaic.version = 11 : i64} {
  func.func @_tlstm_layer_kernel(%arg0: i32, %arg1: memref<8x8x32xf32, #tpu.memory_space<vmem>>, %arg2: memref<8x8x1xf32, #tpu.memory_space<vmem>>, %arg3: memref<32x128xf32, #tpu.memory_space<vmem>>, %arg4: memref<32x128xf32, #tpu.memory_space<vmem>>, %arg5: memref<1x128xf32, #tpu.memory_space<vmem>>, %arg6: memref<32x32xf32, #tpu.memory_space<vmem>>, %arg7: memref<1x32xf32, #tpu.memory_space<vmem>>, %arg8: memref<8x8x32xf32, #tpu.memory_space<vmem>>, %arg9: memref<8x8x32xf32, #tpu.memory_space<vmem>>, %arg10: memref<8x32xf32, #tpu.memory_space<vmem>>, %arg11: memref<8x32xf32, #tpu.memory_space<vmem>>, %arg12: memref<8x8x128xf32, #tpu.memory_space<vmem>>) attributes {dimension_semantics = [#tpu.dimension_semantics<arbitrary>], iteration_bounds = array<i64: 1>, scalar_prefetch = 0 : i64, scratch_operands = 3 : i64, tpu.core_type = #tpu.core_type<tc>, window_params = [{pipeline_mode = #tpu.pipeline_mode<synchronous>, transform_indices = @transform_0, window_bounds = array<i64: 8, 8, 32>}, {pipeline_mode = #tpu.pipeline_mode<synchronous>, transform_indices = @transform_1, window_bounds = array<i64: 8, 8, 1>}, {pipeline_mode = #tpu.pipeline_mode<synchronous>, transform_indices = @transform_2, window_bounds = array<i64: 32, 128>}, {pipeline_mode = #tpu.pipeline_mode<synchronous>, transform_indices = @transform_3, window_bounds = array<i64: 32, 128>}, {pipeline_mode = #tpu.pipeline_mode<synchronous>, transform_indices = @transform_4, window_bounds = array<i64: 1, 128>}, {pipeline_mode = #tpu.pipeline_mode<synchronous>, transform_indices = @transform_5, window_bounds = array<i64: 32, 32>}, {pipeline_mode = #tpu.pipeline_mode<synchronous>, transform_indices = @transform_6, window_bounds = array<i64: 1, 32>}, {pipeline_mode = #tpu.pipeline_mode<synchronous>, transform_indices = @transform_7, window_bounds = array<i64: 8, 8, 32>}, {pipeline_mode = #tpu.pipeline_mode<synchronous>, transform_indices = @transform_8, window_bounds = array<i64: 8, 8, 32>}]} {
    %c0 = arith.constant 0 : index
    %c0_0 = arith.constant 0 : index
    %c0_1 = arith.constant 0 : index
    %0 = vector.load %arg1[%c0, %c0_0, %c0_1] : memref<8x8x32xf32, #tpu.memory_space<vmem>>, vector<8x8x32xf32>
    %1 = vector.shape_cast %0 : vector<8x8x32xf32> to vector<64x32xf32>
    %c0_2 = arith.constant 0 : index
    %c0_3 = arith.constant 0 : index
    %2 = vector.load %arg3[%c0_2, %c0_3] : memref<32x128xf32, #tpu.memory_space<vmem>>, vector<32x128xf32>
    %cst = arith.constant dense<0.000000e+00> : vector<64x128xf32>
    %3 = tpu.matmul %1, %2, %cst {dimension_numbers = #tpu.dot_dimension_numbers<[1], [0], [0], [1], [0, 0, 1, 1], [], []>} : vector<64x32xf32>, vector<32x128xf32>, vector<64x128xf32> -> vector<64x128xf32>
    %c0_4 = arith.constant 0 : index
    %c0_5 = arith.constant 0 : index
    %4 = vector.load %arg5[%c0_4, %c0_5] : memref<1x128xf32, #tpu.memory_space<vmem>>, vector<1x128xf32>
    %5 = vector.broadcast %4 : vector<1x128xf32> to vector<64x128xf32>
    %6 = arith.addf %3, %5 : vector<64x128xf32>
    %7 = vector.shape_cast %6 : vector<64x128xf32> to vector<8x8x128xf32>
    %c0_6 = arith.constant 0 : index
    %c0_7 = arith.constant 0 : index
    %c0_8 = arith.constant 0 : index
    %8 = vector.load %arg12[%c0_6, %c0_7, %c0_8] : memref<8x8x128xf32, #tpu.memory_space<vmem>>, vector<8x8x128xf32>
    tpu.vector_store %arg12[%c0_6, %c0_7, %c0_8], %7 {strides = array<i32>} : memref<8x8x128xf32, #tpu.memory_space<vmem>>, vector<8x8x128xf32>,
    %cst_9 = arith.constant 0.000000e+00 : f32
    %9 = vector.broadcast %cst_9 : f32 to vector<8x32xf32>
    %c0_10 = arith.constant 0 : index
    %c0_11 = arith.constant 0 : index
    %10 = vector.load %arg10[%c0_10, %c0_11] : memref<8x32xf32, #tpu.memory_space<vmem>>, vector<8x32xf32>
    tpu.vector_store %arg10[%c0_10, %c0_11], %9 {strides = array<i32>} : memref<8x32xf32, #tpu.memory_space<vmem>>, vector<8x32xf32>,
    %cst_12 = arith.constant 0.000000e+00 : f32
    %11 = vector.broadcast %cst_12 : f32 to vector<8x32xf32>
    %c0_13 = arith.constant 0 : index
    %c0_14 = arith.constant 0 : index
    %12 = vector.load %arg11[%c0_13, %c0_14] : memref<8x32xf32, #tpu.memory_space<vmem>>, vector<8x32xf32>
    tpu.vector_store %arg11[%c0_13, %c0_14], %11 {strides = array<i32>} : memref<8x32xf32, #tpu.memory_space<vmem>>, vector<8x32xf32>,
    %c0_15 = arith.constant 0 : index
    %c0_16 = arith.constant 0 : index
    %13 = vector.load %arg4[%c0_15, %c0_16] : memref<32x128xf32, #tpu.memory_space<vmem>>, vector<32x128xf32>
    %c0_17 = arith.constant 0 : index
    %c0_18 = arith.constant 0 : index
    %14 = vector.load %arg6[%c0_17, %c0_18] : memref<32x32xf32, #tpu.memory_space<vmem>>, vector<32x32xf32>
    %c0_19 = arith.constant 0 : index
    %c0_20 = arith.constant 0 : index
    %15 = vector.load %arg7[%c0_19, %c0_20] : memref<1x32xf32, #tpu.memory_space<vmem>>, vector<1x32xf32>
    %c0_i32 = arith.constant 0 : i32
    %c0_21 = arith.constant 0 : index
    %c0_22 = arith.constant 0 : index
    %16 = vector.load %arg10[%c0_21, %c0_22] : memref<8x32xf32, #tpu.memory_space<vmem>>, vector<8x32xf32>
    %c0_23 = arith.constant 0 : index
    %c0_24 = arith.constant 0 : index
    %17 = vector.load %arg11[%c0_23, %c0_24] : memref<8x32xf32, #tpu.memory_space<vmem>>, vector<8x32xf32>
    %18 = arith.index_cast %c0_i32 : i32 to index
    %c0_25 = arith.constant 0 : index
    %c0_26 = arith.constant 0 : index
    %19 = vector.load %arg2[%18, %c0_25, %c0_26] : memref<8x8x1xf32, #tpu.memory_space<vmem>>, vector<1x8x1xf32>
    %20 = vector.shape_cast %19 : vector<1x8x1xf32> to vector<8x1xf32>
    %cst_27 = arith.constant dense<0.000000e+00> : vector<8x32xf32>
    %21 = tpu.matmul %17, %14, %cst_27 {dimension_numbers = #tpu.dot_dimension_numbers<[1], [0], [0], [1], [0, 0, 1, 1], [], []>} : vector<8x32xf32>, vector<32x32xf32>, vector<8x32xf32> -> vector<8x32xf32>
    %22 = vector.broadcast %15 : vector<1x32xf32> to vector<8x32xf32>
    %23 = arith.addf %21, %22 : vector<8x32xf32>
    %24 = math.tanh %23 : vector<8x32xf32>
    %25 = arith.subf %17, %24 : vector<8x32xf32>
    %26 = vector.broadcast %20 : vector<8x1xf32> to vector<8x32xf32>
    %27 = arith.mulf %26, %24 : vector<8x32xf32>
    %28 = arith.addf %25, %27 : vector<8x32xf32>
    %29 = arith.index_cast %c0_i32 : i32 to index
    %c0_28 = arith.constant 0 : index
    %c0_29 = arith.constant 0 : index
    %30 = vector.load %arg12[%29, %c0_28, %c0_29] : memref<8x8x128xf32, #tpu.memory_space<vmem>>, vector<1x8x128xf32>
    %31 = vector.shape_cast %30 : vector<1x8x128xf32> to vector<8x128xf32>
    %cst_30 = arith.constant dense<0.000000e+00> : vector<8x128xf32>
    %32 = tpu.matmul %16, %13, %cst_30 {dimension_numbers = #tpu.dot_dimension_numbers<[1], [0], [0], [1], [0, 0, 1, 1], [], []>} : vector<8x32xf32>, vector<32x128xf32>, vector<8x128xf32> -> vector<8x128xf32>
    %33 = arith.addf %31, %32 : vector<8x128xf32>
    %34 = vector.extract_strided_slice %33 {offsets = [0, 0], sizes = [8, 32], strides = [1, 1]} : vector<8x128xf32> to vector<8x32xf32>
    %35 = arith.negf %34 : vector<8x32xf32>
    %36 = math.exp %35 : vector<8x32xf32>
    %cst_31 = arith.constant 1.000000e+00 : f32
    %37 = vector.broadcast %cst_31 : f32 to vector<8x32xf32>
    %38 = arith.addf %37, %36 : vector<8x32xf32>
    %39 = arith.divf %37, %38 : vector<8x32xf32>
    %40 = vector.extract_strided_slice %33 {offsets = [0, 32], sizes = [8, 32], strides = [1, 1]} : vector<8x128xf32> to vector<8x32xf32>
    %41 = arith.negf %40 : vector<8x32xf32>
    %42 = math.exp %41 : vector<8x32xf32>
    %cst_32 = arith.constant 1.000000e+00 : f32
    %43 = vector.broadcast %cst_32 : f32 to vector<8x32xf32>
    %44 = arith.addf %43, %42 : vector<8x32xf32>
    %45 = arith.divf %43, %44 : vector<8x32xf32>
    %46 = vector.extract_strided_slice %33 {offsets = [0, 64], sizes = [8, 32], strides = [1, 1]} : vector<8x128xf32> to vector<8x32xf32>
    %47 = arith.negf %46 : vector<8x32xf32>
    %48 = math.exp %47 : vector<8x32xf32>
    %cst_33 = arith.constant 1.000000e+00 : f32
    %49 = vector.broadcast %cst_33 : f32 to vector<8x32xf32>
    %50 = arith.addf %49, %48 : vector<8x32xf32>
    %51 = arith.divf %49, %50 : vector<8x32xf32>
    %52 = vector.extract_strided_slice %33 {offsets = [0, 96], sizes = [8, 32], strides = [1, 1]} : vector<8x128xf32> to vector<8x32xf32>
    %53 = math.tanh %52 : vector<8x32xf32>
    %54 = arith.mulf %45, %28 : vector<8x32xf32>
    %55 = arith.mulf %39, %53 : vector<8x32xf32>
    %56 = arith.addf %54, %55 : vector<8x32xf32>
    %57 = math.tanh %56 : vector<8x32xf32>
    %58 = arith.mulf %51, %57 : vector<8x32xf32>
    %c0_34 = arith.constant 0 : index
    %c0_35 = arith.constant 0 : index
    %59 = vector.load %arg10[%c0_34, %c0_35] : memref<8x32xf32, #tpu.memory_space<vmem>>, vector<8x32xf32>
    tpu.vector_store %arg10[%c0_34, %c0_35], %58 {strides = array<i32>} : memref<8x32xf32, #tpu.memory_space<vmem>>, vector<8x32xf32>,
    %c0_36 = arith.constant 0 : index
    %c0_37 = arith.constant 0 : index
    %60 = vector.load %arg11[%c0_36, %c0_37] : memref<8x32xf32, #tpu.memory_space<vmem>>, vector<8x32xf32>
    tpu.vector_store %arg11[%c0_36, %c0_37], %56 {strides = array<i32>} : memref<8x32xf32, #tpu.memory_space<vmem>>, vector<8x32xf32>,
    %61 = arith.index_cast %c0_i32 : i32 to index
    %c0_38 = arith.constant 0 : index
    %c0_39 = arith.constant 0 : index
    %62 = vector.load %arg8[%61, %c0_38, %c0_39] : memref<8x8x32xf32, #tpu.memory_space<vmem>>, vector<1x8x32xf32>
    %63 = vector.shape_cast %62 : vector<1x8x32xf32> to vector<8x32xf32>
    %64 = vector.shape_cast %58 : vector<8x32xf32> to vector<1x8x32xf32>
    tpu.vector_store %arg8[%61, %c0_38, %c0_39], %64 {strides = array<i32>} : memref<8x8x32xf32, #tpu.memory_space<vmem>>, vector<1x8x32xf32>,
    %65 = arith.index_cast %c0_i32 : i32 to index
    %c0_40 = arith.constant 0 : index
    %c0_41 = arith.constant 0 : index
    %66 = vector.load %arg9[%65, %c0_40, %c0_41] : memref<8x8x32xf32, #tpu.memory_space<vmem>>, vector<1x8x32xf32>
    %67 = vector.shape_cast %66 : vector<1x8x32xf32> to vector<8x32xf32>
    %68 = vector.shape_cast %56 : vector<8x32xf32> to vector<1x8x32xf32>
    tpu.vector_store %arg9[%65, %c0_40, %c0_41], %68 {strides = array<i32>} : memref<8x8x32xf32, #tpu.memory_space<vmem>>, vector<1x8x32xf32>,
    %c1_i32 = arith.constant 1 : i32
    %c0_42 = arith.constant 0 : index
    %c0_43 = arith.constant 0 : index
    %69 = vector.load %arg10[%c0_42, %c0_43] : memref<8x32xf32, #tpu.memory_space<vmem>>, vector<8x32xf32>
    %c0_44 = arith.constant 0 : index
    %c0_45 = arith.constant 0 : index
    %70 = vector.load %arg11[%c0_44, %c0_45] : memref<8x32xf32, #tpu.memory_space<vmem>>, vector<8x32xf32>
    %71 = arith.index_cast %c1_i32 : i32 to index
    %c0_46 = arith.constant 0 : index
    %c0_47 = arith.constant 0 : index
    %72 = vector.load %arg2[%71, %c0_46, %c0_47] : memref<8x8x1xf32, #tpu.memory_space<vmem>>, vector<1x8x1xf32>
    %73 = vector.shape_cast %72 : vector<1x8x1xf32> to vector<8x1xf32>
    %cst_48 = arith.constant dense<0.000000e+00> : vector<8x32xf32>
    %74 = tpu.matmul %70, %14, %cst_48 {dimension_numbers = #tpu.dot_dimension_numbers<[1], [0], [0], [1], [0, 0, 1, 1], [], []>} : vector<8x32xf32>, vector<32x32xf32>, vector<8x32xf32> -> vector<8x32xf32>
    %75 = vector.broadcast %15 : vector<1x32xf32> to vector<8x32xf32>
    %76 = arith.addf %74, %75 : vector<8x32xf32>
    %77 = math.tanh %76 : vector<8x32xf32>
    %78 = arith.subf %70, %77 : vector<8x32xf32>
    %79 = vector.broadcast %73 : vector<8x1xf32> to vector<8x32xf32>
    %80 = arith.mulf %79, %77 : vector<8x32xf32>
    %81 = arith.addf %78, %80 : vector<8x32xf32>
    %82 = arith.index_cast %c1_i32 : i32 to index
    %c0_49 = arith.constant 0 : index
    %c0_50 = arith.constant 0 : index
    %83 = vector.load %arg12[%82, %c0_49, %c0_50] : memref<8x8x128xf32, #tpu.memory_space<vmem>>, vector<1x8x128xf32>
    %84 = vector.shape_cast %83 : vector<1x8x128xf32> to vector<8x128xf32>
    %cst_51 = arith.constant dense<0.000000e+00> : vector<8x128xf32>
    %85 = tpu.matmul %69, %13, %cst_51 {dimension_numbers = #tpu.dot_dimension_numbers<[1], [0], [0], [1], [0, 0, 1, 1], [], []>} : vector<8x32xf32>, vector<32x128xf32>, vector<8x128xf32> -> vector<8x128xf32>
    %86 = arith.addf %84, %85 : vector<8x128xf32>
    %87 = vector.extract_strided_slice %86 {offsets = [0, 0], sizes = [8, 32], strides = [1, 1]} : vector<8x128xf32> to vector<8x32xf32>
    %88 = arith.negf %87 : vector<8x32xf32>
    %89 = math.exp %88 : vector<8x32xf32>
    %cst_52 = arith.constant 1.000000e+00 : f32
    %90 = vector.broadcast %cst_52 : f32 to vector<8x32xf32>
    %91 = arith.addf %90, %89 : vector<8x32xf32>
    %92 = arith.divf %90, %91 : vector<8x32xf32>
    %93 = vector.extract_strided_slice %86 {offsets = [0, 32], sizes = [8, 32], strides = [1, 1]} : vector<8x128xf32> to vector<8x32xf32>
    %94 = arith.negf %93 : vector<8x32xf32>
    %95 = math.exp %94 : vector<8x32xf32>
    %cst_53 = arith.constant 1.000000e+00 : f32
    %96 = vector.broadcast %cst_53 : f32 to vector<8x32xf32>
    %97 = arith.addf %96, %95 : vector<8x32xf32>
    %98 = arith.divf %96, %97 : vector<8x32xf32>
    %99 = vector.extract_strided_slice %86 {offsets = [0, 64], sizes = [8, 32], strides = [1, 1]} : vector<8x128xf32> to vector<8x32xf32>
    %100 = arith.negf %99 : vector<8x32xf32>
    %101 = math.exp %100 : vector<8x32xf32>
    %cst_54 = arith.constant 1.000000e+00 : f32
    %102 = vector.broadcast %cst_54 : f32 to vector<8x32xf32>
    %103 = arith.addf %102, %101 : vector<8x32xf32>
    %104 = arith.divf %102, %103 : vector<8x32xf32>
    %105 = vector.extract_strided_slice %86 {offsets = [0, 96], sizes = [8, 32], strides = [1, 1]} : vector<8x128xf32> to vector<8x32xf32>
    %106 = math.tanh %105 : vector<8x32xf32>
    %107 = arith.mulf %98, %81 : vector<8x32xf32>
    %108 = arith.mulf %92, %106 : vector<8x32xf32>
    %109 = arith.addf %107, %108 : vector<8x32xf32>
    %110 = math.tanh %109 : vector<8x32xf32>
    %111 = arith.mulf %104, %110 : vector<8x32xf32>
    %c0_55 = arith.constant 0 : index
    %c0_56 = arith.constant 0 : index
    %112 = vector.load %arg10[%c0_55, %c0_56] : memref<8x32xf32, #tpu.memory_space<vmem>>, vector<8x32xf32>
    tpu.vector_store %arg10[%c0_55, %c0_56], %111 {strides = array<i32>} : memref<8x32xf32, #tpu.memory_space<vmem>>, vector<8x32xf32>,
    %c0_57 = arith.constant 0 : index
    %c0_58 = arith.constant 0 : index
    %113 = vector.load %arg11[%c0_57, %c0_58] : memref<8x32xf32, #tpu.memory_space<vmem>>, vector<8x32xf32>
    tpu.vector_store %arg11[%c0_57, %c0_58], %109 {strides = array<i32>} : memref<8x32xf32, #tpu.memory_space<vmem>>, vector<8x32xf32>,
    %114 = arith.index_cast %c1_i32 : i32 to index
    %c0_59 = arith.constant 0 : index
    %c0_60 = arith.constant 0 : index
    %115 = vector.load %arg8[%114, %c0_59, %c0_60] : memref<8x8x32xf32, #tpu.memory_space<vmem>>, vector<1x8x32xf32>
    %116 = vector.shape_cast %115 : vector<1x8x32xf32> to vector<8x32xf32>
    %117 = vector.shape_cast %111 : vector<8x32xf32> to vector<1x8x32xf32>
    tpu.vector_store %arg8[%114, %c0_59, %c0_60], %117 {strides = array<i32>} : memref<8x8x32xf32, #tpu.memory_space<vmem>>, vector<1x8x32xf32>,
    %118 = arith.index_cast %c1_i32 : i32 to index
    %c0_61 = arith.constant 0 : index
    %c0_62 = arith.constant 0 : index
    %119 = vector.load %arg9[%118, %c0_61, %c0_62] : memref<8x8x32xf32, #tpu.memory_space<vmem>>, vector<1x8x32xf32>
    %120 = vector.shape_cast %119 : vector<1x8x32xf32> to vector<8x32xf32>
    %121 = vector.shape_cast %109 : vector<8x32xf32> to vector<1x8x32xf32>
    tpu.vector_store %arg9[%118, %c0_61, %c0_62], %121 {strides = array<i32>} : memref<8x8x32xf32, #tpu.memory_space<vmem>>, vector<1x8x32xf32>,
    %c2_i32 = arith.constant 2 : i32
    %c0_63 = arith.constant 0 : index
    %c0_64 = arith.constant 0 : index
    %122 = vector.load %arg10[%c0_63, %c0_64] : memref<8x32xf32, #tpu.memory_space<vmem>>, vector<8x32xf32>
    %c0_65 = arith.constant 0 : index
    %c0_66 = arith.constant 0 : index
    %123 = vector.load %arg11[%c0_65, %c0_66] : memref<8x32xf32, #tpu.memory_space<vmem>>, vector<8x32xf32>
    %124 = arith.index_cast %c2_i32 : i32 to index
    %c0_67 = arith.constant 0 : index
    %c0_68 = arith.constant 0 : index
    %125 = vector.load %arg2[%124, %c0_67, %c0_68] : memref<8x8x1xf32, #tpu.memory_space<vmem>>, vector<1x8x1xf32>
    %126 = vector.shape_cast %125 : vector<1x8x1xf32> to vector<8x1xf32>
    %cst_69 = arith.constant dense<0.000000e+00> : vector<8x32xf32>
    %127 = tpu.matmul %123, %14, %cst_69 {dimension_numbers = #tpu.dot_dimension_numbers<[1], [0], [0], [1], [0, 0, 1, 1], [], []>} : vector<8x32xf32>, vector<32x32xf32>, vector<8x32xf32> -> vector<8x32xf32>
    %128 = vector.broadcast %15 : vector<1x32xf32> to vector<8x32xf32>
    %129 = arith.addf %127, %128 : vector<8x32xf32>
    %130 = math.tanh %129 : vector<8x32xf32>
    %131 = arith.subf %123, %130 : vector<8x32xf32>
    %132 = vector.broadcast %126 : vector<8x1xf32> to vector<8x32xf32>
    %133 = arith.mulf %132, %130 : vector<8x32xf32>
    %134 = arith.addf %131, %133 : vector<8x32xf32>
    %135 = arith.index_cast %c2_i32 : i32 to index
    %c0_70 = arith.constant 0 : index
    %c0_71 = arith.constant 0 : index
    %136 = vector.load %arg12[%135, %c0_70, %c0_71] : memref<8x8x128xf32, #tpu.memory_space<vmem>>, vector<1x8x128xf32>
    %137 = vector.shape_cast %136 : vector<1x8x128xf32> to vector<8x128xf32>
    %cst_72 = arith.constant dense<0.000000e+00> : vector<8x128xf32>
    %138 = tpu.matmul %122, %13, %cst_72 {dimension_numbers = #tpu.dot_dimension_numbers<[1], [0], [0], [1], [0, 0, 1, 1], [], []>} : vector<8x32xf32>, vector<32x128xf32>, vector<8x128xf32> -> vector<8x128xf32>
    %139 = arith.addf %137, %138 : vector<8x128xf32>
    %140 = vector.extract_strided_slice %139 {offsets = [0, 0], sizes = [8, 32], strides = [1, 1]} : vector<8x128xf32> to vector<8x32xf32>
    %141 = arith.negf %140 : vector<8x32xf32>
    %142 = math.exp %141 : vector<8x32xf32>
    %cst_73 = arith.constant 1.000000e+00 : f32
    %143 = vector.broadcast %cst_73 : f32 to vector<8x32xf32>
    %144 = arith.addf %143, %142 : vector<8x32xf32>
    %145 = arith.divf %143, %144 : vector<8x32xf32>
    %146 = vector.extract_strided_slice %139 {offsets = [0, 32], sizes = [8, 32], strides = [1, 1]} : vector<8x128xf32> to vector<8x32xf32>
    %147 = arith.negf %146 : vector<8x32xf32>
    %148 = math.exp %147 : vector<8x32xf32>
    %cst_74 = arith.constant 1.000000e+00 : f32
    %149 = vector.broadcast %cst_74 : f32 to vector<8x32xf32>
    %150 = arith.addf %149, %148 : vector<8x32xf32>
    %151 = arith.divf %149, %150 : vector<8x32xf32>
    %152 = vector.extract_strided_slice %139 {offsets = [0, 64], sizes = [8, 32], strides = [1, 1]} : vector<8x128xf32> to vector<8x32xf32>
    %153 = arith.negf %152 : vector<8x32xf32>
    %154 = math.exp %153 : vector<8x32xf32>
    %cst_75 = arith.constant 1.000000e+00 : f32
    %155 = vector.broadcast %cst_75 : f32 to vector<8x32xf32>
    %156 = arith.addf %155, %154 : vector<8x32xf32>
    %157 = arith.divf %155, %156 : vector<8x32xf32>
    %158 = vector.extract_strided_slice %139 {offsets = [0, 96], sizes = [8, 32], strides = [1, 1]} : vector<8x128xf32> to vector<8x32xf32>
    %159 = math.tanh %158 : vector<8x32xf32>
    %160 = arith.mulf %151, %134 : vector<8x32xf32>
    %161 = arith.mulf %145, %159 : vector<8x32xf32>
    %162 = arith.addf %160, %161 : vector<8x32xf32>
    %163 = math.tanh %162 : vector<8x32xf32>
    %164 = arith.mulf %157, %163 : vector<8x32xf32>
    %c0_76 = arith.constant 0 : index
    %c0_77 = arith.constant 0 : index
    %165 = vector.load %arg10[%c0_76, %c0_77] : memref<8x32xf32, #tpu.memory_space<vmem>>, vector<8x32xf32>
    tpu.vector_store %arg10[%c0_76, %c0_77], %164 {strides = array<i32>} : memref<8x32xf32, #tpu.memory_space<vmem>>, vector<8x32xf32>,
    %c0_78 = arith.constant 0 : index
    %c0_79 = arith.constant 0 : index
    %166 = vector.load %arg11[%c0_78, %c0_79] : memref<8x32xf32, #tpu.memory_space<vmem>>, vector<8x32xf32>
    tpu.vector_store %arg11[%c0_78, %c0_79], %162 {strides = array<i32>} : memref<8x32xf32, #tpu.memory_space<vmem>>, vector<8x32xf32>,
    %167 = arith.index_cast %c2_i32 : i32 to index
    %c0_80 = arith.constant 0 : index
    %c0_81 = arith.constant 0 : index
    %168 = vector.load %arg8[%167, %c0_80, %c0_81] : memref<8x8x32xf32, #tpu.memory_space<vmem>>, vector<1x8x32xf32>
    %169 = vector.shape_cast %168 : vector<1x8x32xf32> to vector<8x32xf32>
    %170 = vector.shape_cast %164 : vector<8x32xf32> to vector<1x8x32xf32>
    tpu.vector_store %arg8[%167, %c0_80, %c0_81], %170 {strides = array<i32>} : memref<8x8x32xf32, #tpu.memory_space<vmem>>, vector<1x8x32xf32>,
    %171 = arith.index_cast %c2_i32 : i32 to index
    %c0_82 = arith.constant 0 : index
    %c0_83 = arith.constant 0 : index
    %172 = vector.load %arg9[%171, %c0_82, %c0_83] : memref<8x8x32xf32, #tpu.memory_space<vmem>>, vector<1x8x32xf32>
    %173 = vector.shape_cast %172 : vector<1x8x32xf32> to vector<8x32xf32>
    %174 = vector.shape_cast %162 : vector<8x32xf32> to vector<1x8x32xf32>
    tpu.vector_store %arg9[%171, %c0_82, %c0_83], %174 {strides = array<i32>} : memref<8x8x32xf32, #tpu.memory_space<vmem>>, vector<1x8x32xf32>,
    %c3_i32 = arith.constant 3 : i32
    %c0_84 = arith.constant 0 : index
    %c0_85 = arith.constant 0 : index
    %175 = vector.load %arg10[%c0_84, %c0_85] : memref<8x32xf32, #tpu.memory_space<vmem>>, vector<8x32xf32>
    %c0_86 = arith.constant 0 : index
    %c0_87 = arith.constant 0 : index
    %176 = vector.load %arg11[%c0_86, %c0_87] : memref<8x32xf32, #tpu.memory_space<vmem>>, vector<8x32xf32>
    %177 = arith.index_cast %c3_i32 : i32 to index
    %c0_88 = arith.constant 0 : index
    %c0_89 = arith.constant 0 : index
    %178 = vector.load %arg2[%177, %c0_88, %c0_89] : memref<8x8x1xf32, #tpu.memory_space<vmem>>, vector<1x8x1xf32>
    %179 = vector.shape_cast %178 : vector<1x8x1xf32> to vector<8x1xf32>
    %cst_90 = arith.constant dense<0.000000e+00> : vector<8x32xf32>
    %180 = tpu.matmul %176, %14, %cst_90 {dimension_numbers = #tpu.dot_dimension_numbers<[1], [0], [0], [1], [0, 0, 1, 1], [], []>} : vector<8x32xf32>, vector<32x32xf32>, vector<8x32xf32> -> vector<8x32xf32>
    %181 = vector.broadcast %15 : vector<1x32xf32> to vector<8x32xf32>
    %182 = arith.addf %180, %181 : vector<8x32xf32>
    %183 = math.tanh %182 : vector<8x32xf32>
    %184 = arith.subf %176, %183 : vector<8x32xf32>
    %185 = vector.broadcast %179 : vector<8x1xf32> to vector<8x32xf32>
    %186 = arith.mulf %185, %183 : vector<8x32xf32>
    %187 = arith.addf %184, %186 : vector<8x32xf32>
    %188 = arith.index_cast %c3_i32 : i32 to index
    %c0_91 = arith.constant 0 : index
    %c0_92 = arith.constant 0 : index
    %189 = vector.load %arg12[%188, %c0_91, %c0_92] : memref<8x8x128xf32, #tpu.memory_space<vmem>>, vector<1x8x128xf32>
    %190 = vector.shape_cast %189 : vector<1x8x128xf32> to vector<8x128xf32>
    %cst_93 = arith.constant dense<0.000000e+00> : vector<8x128xf32>
    %191 = tpu.matmul %175, %13, %cst_93 {dimension_numbers = #tpu.dot_dimension_numbers<[1], [0], [0], [1], [0, 0, 1, 1], [], []>} : vector<8x32xf32>, vector<32x128xf32>, vector<8x128xf32> -> vector<8x128xf32>
    %192 = arith.addf %190, %191 : vector<8x128xf32>
    %193 = vector.extract_strided_slice %192 {offsets = [0, 0], sizes = [8, 32], strides = [1, 1]} : vector<8x128xf32> to vector<8x32xf32>
    %194 = arith.negf %193 : vector<8x32xf32>
    %195 = math.exp %194 : vector<8x32xf32>
    %cst_94 = arith.constant 1.000000e+00 : f32
    %196 = vector.broadcast %cst_94 : f32 to vector<8x32xf32>
    %197 = arith.addf %196, %195 : vector<8x32xf32>
    %198 = arith.divf %196, %197 : vector<8x32xf32>
    %199 = vector.extract_strided_slice %192 {offsets = [0, 32], sizes = [8, 32], strides = [1, 1]} : vector<8x128xf32> to vector<8x32xf32>
    %200 = arith.negf %199 : vector<8x32xf32>
    %201 = math.exp %200 : vector<8x32xf32>
    %cst_95 = arith.constant 1.000000e+00 : f32
    %202 = vector.broadcast %cst_95 : f32 to vector<8x32xf32>
    %203 = arith.addf %202, %201 : vector<8x32xf32>
    %204 = arith.divf %202, %203 : vector<8x32xf32>
    %205 = vector.extract_strided_slice %192 {offsets = [0, 64], sizes = [8, 32], strides = [1, 1]} : vector<8x128xf32> to vector<8x32xf32>
    %206 = arith.negf %205 : vector<8x32xf32>
    %207 = math.exp %206 : vector<8x32xf32>
    %cst_96 = arith.constant 1.000000e+00 : f32
    %208 = vector.broadcast %cst_96 : f32 to vector<8x32xf32>
    %209 = arith.addf %208, %207 : vector<8x32xf32>
    %210 = arith.divf %208, %209 : vector<8x32xf32>
    %211 = vector.extract_strided_slice %192 {offsets = [0, 96], sizes = [8, 32], strides = [1, 1]} : vector<8x128xf32> to vector<8x32xf32>
    %212 = math.tanh %211 : vector<8x32xf32>
    %213 = arith.mulf %204, %187 : vector<8x32xf32>
    %214 = arith.mulf %198, %212 : vector<8x32xf32>
    %215 = arith.addf %213, %214 : vector<8x32xf32>
    %216 = math.tanh %215 : vector<8x32xf32>
    %217 = arith.mulf %210, %216 : vector<8x32xf32>
    %c0_97 = arith.constant 0 : index
    %c0_98 = arith.constant 0 : index
    %218 = vector.load %arg10[%c0_97, %c0_98] : memref<8x32xf32, #tpu.memory_space<vmem>>, vector<8x32xf32>
    tpu.vector_store %arg10[%c0_97, %c0_98], %217 {strides = array<i32>} : memref<8x32xf32, #tpu.memory_space<vmem>>, vector<8x32xf32>,
    %c0_99 = arith.constant 0 : index
    %c0_100 = arith.constant 0 : index
    %219 = vector.load %arg11[%c0_99, %c0_100] : memref<8x32xf32, #tpu.memory_space<vmem>>, vector<8x32xf32>
    tpu.vector_store %arg11[%c0_99, %c0_100], %215 {strides = array<i32>} : memref<8x32xf32, #tpu.memory_space<vmem>>, vector<8x32xf32>,
    %220 = arith.index_cast %c3_i32 : i32 to index
    %c0_101 = arith.constant 0 : index
    %c0_102 = arith.constant 0 : index
    %221 = vector.load %arg8[%220, %c0_101, %c0_102] : memref<8x8x32xf32, #tpu.memory_space<vmem>>, vector<1x8x32xf32>
    %222 = vector.shape_cast %221 : vector<1x8x32xf32> to vector<8x32xf32>
    %223 = vector.shape_cast %217 : vector<8x32xf32> to vector<1x8x32xf32>
    tpu.vector_store %arg8[%220, %c0_101, %c0_102], %223 {strides = array<i32>} : memref<8x8x32xf32, #tpu.memory_space<vmem>>, vector<1x8x32xf32>,
    %224 = arith.index_cast %c3_i32 : i32 to index
    %c0_103 = arith.constant 0 : index
    %c0_104 = arith.constant 0 : index
    %225 = vector.load %arg9[%224, %c0_103, %c0_104] : memref<8x8x32xf32, #tpu.memory_space<vmem>>, vector<1x8x32xf32>
    %226 = vector.shape_cast %225 : vector<1x8x32xf32> to vector<8x32xf32>
    %227 = vector.shape_cast %215 : vector<8x32xf32> to vector<1x8x32xf32>
    tpu.vector_store %arg9[%224, %c0_103, %c0_104], %227 {strides = array<i32>} : memref<8x8x32xf32, #tpu.memory_space<vmem>>, vector<1x8x32xf32>,
    %c4_i32 = arith.constant 4 : i32
    %c0_105 = arith.constant 0 : index
    %c0_106 = arith.constant 0 : index
    %228 = vector.load %arg10[%c0_105, %c0_106] : memref<8x32xf32, #tpu.memory_space<vmem>>, vector<8x32xf32>
    %c0_107 = arith.constant 0 : index
    %c0_108 = arith.constant 0 : index
    %229 = vector.load %arg11[%c0_107, %c0_108] : memref<8x32xf32, #tpu.memory_space<vmem>>, vector<8x32xf32>
    %230 = arith.index_cast %c4_i32 : i32 to index
    %c0_109 = arith.constant 0 : index
    %c0_110 = arith.constant 0 : index
    %231 = vector.load %arg2[%230, %c0_109, %c0_110] : memref<8x8x1xf32, #tpu.memory_space<vmem>>, vector<1x8x1xf32>
    %232 = vector.shape_cast %231 : vector<1x8x1xf32> to vector<8x1xf32>
    %cst_111 = arith.constant dense<0.000000e+00> : vector<8x32xf32>
    %233 = tpu.matmul %229, %14, %cst_111 {dimension_numbers = #tpu.dot_dimension_numbers<[1], [0], [0], [1], [0, 0, 1, 1], [], []>} : vector<8x32xf32>, vector<32x32xf32>, vector<8x32xf32> -> vector<8x32xf32>
    %234 = vector.broadcast %15 : vector<1x32xf32> to vector<8x32xf32>
    %235 = arith.addf %233, %234 : vector<8x32xf32>
    %236 = math.tanh %235 : vector<8x32xf32>
    %237 = arith.subf %229, %236 : vector<8x32xf32>
    %238 = vector.broadcast %232 : vector<8x1xf32> to vector<8x32xf32>
    %239 = arith.mulf %238, %236 : vector<8x32xf32>
    %240 = arith.addf %237, %239 : vector<8x32xf32>
    %241 = arith.index_cast %c4_i32 : i32 to index
    %c0_112 = arith.constant 0 : index
    %c0_113 = arith.constant 0 : index
    %242 = vector.load %arg12[%241, %c0_112, %c0_113] : memref<8x8x128xf32, #tpu.memory_space<vmem>>, vector<1x8x128xf32>
    %243 = vector.shape_cast %242 : vector<1x8x128xf32> to vector<8x128xf32>
    %cst_114 = arith.constant dense<0.000000e+00> : vector<8x128xf32>
    %244 = tpu.matmul %228, %13, %cst_114 {dimension_numbers = #tpu.dot_dimension_numbers<[1], [0], [0], [1], [0, 0, 1, 1], [], []>} : vector<8x32xf32>, vector<32x128xf32>, vector<8x128xf32> -> vector<8x128xf32>
    %245 = arith.addf %243, %244 : vector<8x128xf32>
    %246 = vector.extract_strided_slice %245 {offsets = [0, 0], sizes = [8, 32], strides = [1, 1]} : vector<8x128xf32> to vector<8x32xf32>
    %247 = arith.negf %246 : vector<8x32xf32>
    %248 = math.exp %247 : vector<8x32xf32>
    %cst_115 = arith.constant 1.000000e+00 : f32
    %249 = vector.broadcast %cst_115 : f32 to vector<8x32xf32>
    %250 = arith.addf %249, %248 : vector<8x32xf32>
    %251 = arith.divf %249, %250 : vector<8x32xf32>
    %252 = vector.extract_strided_slice %245 {offsets = [0, 32], sizes = [8, 32], strides = [1, 1]} : vector<8x128xf32> to vector<8x32xf32>
    %253 = arith.negf %252 : vector<8x32xf32>
    %254 = math.exp %253 : vector<8x32xf32>
    %cst_116 = arith.constant 1.000000e+00 : f32
    %255 = vector.broadcast %cst_116 : f32 to vector<8x32xf32>
    %256 = arith.addf %255, %254 : vector<8x32xf32>
    %257 = arith.divf %255, %256 : vector<8x32xf32>
    %258 = vector.extract_strided_slice %245 {offsets = [0, 64], sizes = [8, 32], strides = [1, 1]} : vector<8x128xf32> to vector<8x32xf32>
    %259 = arith.negf %258 : vector<8x32xf32>
    %260 = math.exp %259 : vector<8x32xf32>
    %cst_117 = arith.constant 1.000000e+00 : f32
    %261 = vector.broadcast %cst_117 : f32 to vector<8x32xf32>
    %262 = arith.addf %261, %260 : vector<8x32xf32>
    %263 = arith.divf %261, %262 : vector<8x32xf32>
    %264 = vector.extract_strided_slice %245 {offsets = [0, 96], sizes = [8, 32], strides = [1, 1]} : vector<8x128xf32> to vector<8x32xf32>
    %265 = math.tanh %264 : vector<8x32xf32>
    %266 = arith.mulf %257, %240 : vector<8x32xf32>
    %267 = arith.mulf %251, %265 : vector<8x32xf32>
    %268 = arith.addf %266, %267 : vector<8x32xf32>
    %269 = math.tanh %268 : vector<8x32xf32>
    %270 = arith.mulf %263, %269 : vector<8x32xf32>
    %c0_118 = arith.constant 0 : index
    %c0_119 = arith.constant 0 : index
    %271 = vector.load %arg10[%c0_118, %c0_119] : memref<8x32xf32, #tpu.memory_space<vmem>>, vector<8x32xf32>
    tpu.vector_store %arg10[%c0_118, %c0_119], %270 {strides = array<i32>} : memref<8x32xf32, #tpu.memory_space<vmem>>, vector<8x32xf32>,
    %c0_120 = arith.constant 0 : index
    %c0_121 = arith.constant 0 : index
    %272 = vector.load %arg11[%c0_120, %c0_121] : memref<8x32xf32, #tpu.memory_space<vmem>>, vector<8x32xf32>
    tpu.vector_store %arg11[%c0_120, %c0_121], %268 {strides = array<i32>} : memref<8x32xf32, #tpu.memory_space<vmem>>, vector<8x32xf32>,
    %273 = arith.index_cast %c4_i32 : i32 to index
    %c0_122 = arith.constant 0 : index
    %c0_123 = arith.constant 0 : index
    %274 = vector.load %arg8[%273, %c0_122, %c0_123] : memref<8x8x32xf32, #tpu.memory_space<vmem>>, vector<1x8x32xf32>
    %275 = vector.shape_cast %274 : vector<1x8x32xf32> to vector<8x32xf32>
    %276 = vector.shape_cast %270 : vector<8x32xf32> to vector<1x8x32xf32>
    tpu.vector_store %arg8[%273, %c0_122, %c0_123], %276 {strides = array<i32>} : memref<8x8x32xf32, #tpu.memory_space<vmem>>, vector<1x8x32xf32>,
    %277 = arith.index_cast %c4_i32 : i32 to index
    %c0_124 = arith.constant 0 : index
    %c0_125 = arith.constant 0 : index
    %278 = vector.load %arg9[%277, %c0_124, %c0_125] : memref<8x8x32xf32, #tpu.memory_space<vmem>>, vector<1x8x32xf32>
    %279 = vector.shape_cast %278 : vector<1x8x32xf32> to vector<8x32xf32>
    %280 = vector.shape_cast %268 : vector<8x32xf32> to vector<1x8x32xf32>
    tpu.vector_store %arg9[%277, %c0_124, %c0_125], %280 {strides = array<i32>} : memref<8x8x32xf32, #tpu.memory_space<vmem>>, vector<1x8x32xf32>,
    %c5_i32 = arith.constant 5 : i32
    %c0_126 = arith.constant 0 : index
    %c0_127 = arith.constant 0 : index
    %281 = vector.load %arg10[%c0_126, %c0_127] : memref<8x32xf32, #tpu.memory_space<vmem>>, vector<8x32xf32>
    %c0_128 = arith.constant 0 : index
    %c0_129 = arith.constant 0 : index
    %282 = vector.load %arg11[%c0_128, %c0_129] : memref<8x32xf32, #tpu.memory_space<vmem>>, vector<8x32xf32>
    %283 = arith.index_cast %c5_i32 : i32 to index
    %c0_130 = arith.constant 0 : index
    %c0_131 = arith.constant 0 : index
    %284 = vector.load %arg2[%283, %c0_130, %c0_131] : memref<8x8x1xf32, #tpu.memory_space<vmem>>, vector<1x8x1xf32>
    %285 = vector.shape_cast %284 : vector<1x8x1xf32> to vector<8x1xf32>
    %cst_132 = arith.constant dense<0.000000e+00> : vector<8x32xf32>
    %286 = tpu.matmul %282, %14, %cst_132 {dimension_numbers = #tpu.dot_dimension_numbers<[1], [0], [0], [1], [0, 0, 1, 1], [], []>} : vector<8x32xf32>, vector<32x32xf32>, vector<8x32xf32> -> vector<8x32xf32>
    %287 = vector.broadcast %15 : vector<1x32xf32> to vector<8x32xf32>
    %288 = arith.addf %286, %287 : vector<8x32xf32>
    %289 = math.tanh %288 : vector<8x32xf32>
    %290 = arith.subf %282, %289 : vector<8x32xf32>
    %291 = vector.broadcast %285 : vector<8x1xf32> to vector<8x32xf32>
    %292 = arith.mulf %291, %289 : vector<8x32xf32>
    %293 = arith.addf %290, %292 : vector<8x32xf32>
    %294 = arith.index_cast %c5_i32 : i32 to index
    %c0_133 = arith.constant 0 : index
    %c0_134 = arith.constant 0 : index
    %295 = vector.load %arg12[%294, %c0_133, %c0_134] : memref<8x8x128xf32, #tpu.memory_space<vmem>>, vector<1x8x128xf32>
    %296 = vector.shape_cast %295 : vector<1x8x128xf32> to vector<8x128xf32>
    %cst_135 = arith.constant dense<0.000000e+00> : vector<8x128xf32>
    %297 = tpu.matmul %281, %13, %cst_135 {dimension_numbers = #tpu.dot_dimension_numbers<[1], [0], [0], [1], [0, 0, 1, 1], [], []>} : vector<8x32xf32>, vector<32x128xf32>, vector<8x128xf32> -> vector<8x128xf32>
    %298 = arith.addf %296, %297 : vector<8x128xf32>
    %299 = vector.extract_strided_slice %298 {offsets = [0, 0], sizes = [8, 32], strides = [1, 1]} : vector<8x128xf32> to vector<8x32xf32>
    %300 = arith.negf %299 : vector<8x32xf32>
    %301 = math.exp %300 : vector<8x32xf32>
    %cst_136 = arith.constant 1.000000e+00 : f32
    %302 = vector.broadcast %cst_136 : f32 to vector<8x32xf32>
    %303 = arith.addf %302, %301 : vector<8x32xf32>
    %304 = arith.divf %302, %303 : vector<8x32xf32>
    %305 = vector.extract_strided_slice %298 {offsets = [0, 32], sizes = [8, 32], strides = [1, 1]} : vector<8x128xf32> to vector<8x32xf32>
    %306 = arith.negf %305 : vector<8x32xf32>
    %307 = math.exp %306 : vector<8x32xf32>
    %cst_137 = arith.constant 1.000000e+00 : f32
    %308 = vector.broadcast %cst_137 : f32 to vector<8x32xf32>
    %309 = arith.addf %308, %307 : vector<8x32xf32>
    %310 = arith.divf %308, %309 : vector<8x32xf32>
    %311 = vector.extract_strided_slice %298 {offsets = [0, 64], sizes = [8, 32], strides = [1, 1]} : vector<8x128xf32> to vector<8x32xf32>
    %312 = arith.negf %311 : vector<8x32xf32>
    %313 = math.exp %312 : vector<8x32xf32>
    %cst_138 = arith.constant 1.000000e+00 : f32
    %314 = vector.broadcast %cst_138 : f32 to vector<8x32xf32>
    %315 = arith.addf %314, %313 : vector<8x32xf32>
    %316 = arith.divf %314, %315 : vector<8x32xf32>
    %317 = vector.extract_strided_slice %298 {offsets = [0, 96], sizes = [8, 32], strides = [1, 1]} : vector<8x128xf32> to vector<8x32xf32>
    %318 = math.tanh %317 : vector<8x32xf32>
    %319 = arith.mulf %310, %293 : vector<8x32xf32>
    %320 = arith.mulf %304, %318 : vector<8x32xf32>
    %321 = arith.addf %319, %320 : vector<8x32xf32>
    %322 = math.tanh %321 : vector<8x32xf32>
    %323 = arith.mulf %316, %322 : vector<8x32xf32>
    %c0_139 = arith.constant 0 : index
    %c0_140 = arith.constant 0 : index
    %324 = vector.load %arg10[%c0_139, %c0_140] : memref<8x32xf32, #tpu.memory_space<vmem>>, vector<8x32xf32>
    tpu.vector_store %arg10[%c0_139, %c0_140], %323 {strides = array<i32>} : memref<8x32xf32, #tpu.memory_space<vmem>>, vector<8x32xf32>,
    %c0_141 = arith.constant 0 : index
    %c0_142 = arith.constant 0 : index
    %325 = vector.load %arg11[%c0_141, %c0_142] : memref<8x32xf32, #tpu.memory_space<vmem>>, vector<8x32xf32>
    tpu.vector_store %arg11[%c0_141, %c0_142], %321 {strides = array<i32>} : memref<8x32xf32, #tpu.memory_space<vmem>>, vector<8x32xf32>,
    %326 = arith.index_cast %c5_i32 : i32 to index
    %c0_143 = arith.constant 0 : index
    %c0_144 = arith.constant 0 : index
    %327 = vector.load %arg8[%326, %c0_143, %c0_144] : memref<8x8x32xf32, #tpu.memory_space<vmem>>, vector<1x8x32xf32>
    %328 = vector.shape_cast %327 : vector<1x8x32xf32> to vector<8x32xf32>
    %329 = vector.shape_cast %323 : vector<8x32xf32> to vector<1x8x32xf32>
    tpu.vector_store %arg8[%326, %c0_143, %c0_144], %329 {strides = array<i32>} : memref<8x8x32xf32, #tpu.memory_space<vmem>>, vector<1x8x32xf32>,
    %330 = arith.index_cast %c5_i32 : i32 to index
    %c0_145 = arith.constant 0 : index
    %c0_146 = arith.constant 0 : index
    %331 = vector.load %arg9[%330, %c0_145, %c0_146] : memref<8x8x32xf32, #tpu.memory_space<vmem>>, vector<1x8x32xf32>
    %332 = vector.shape_cast %331 : vector<1x8x32xf32> to vector<8x32xf32>
    %333 = vector.shape_cast %321 : vector<8x32xf32> to vector<1x8x32xf32>
    tpu.vector_store %arg9[%330, %c0_145, %c0_146], %333 {strides = array<i32>} : memref<8x8x32xf32, #tpu.memory_space<vmem>>, vector<1x8x32xf32>,
    %c6_i32 = arith.constant 6 : i32
    %c0_147 = arith.constant 0 : index
    %c0_148 = arith.constant 0 : index
    %334 = vector.load %arg10[%c0_147, %c0_148] : memref<8x32xf32, #tpu.memory_space<vmem>>, vector<8x32xf32>
    %c0_149 = arith.constant 0 : index
    %c0_150 = arith.constant 0 : index
    %335 = vector.load %arg11[%c0_149, %c0_150] : memref<8x32xf32, #tpu.memory_space<vmem>>, vector<8x32xf32>
    %336 = arith.index_cast %c6_i32 : i32 to index
    %c0_151 = arith.constant 0 : index
    %c0_152 = arith.constant 0 : index
    %337 = vector.load %arg2[%336, %c0_151, %c0_152] : memref<8x8x1xf32, #tpu.memory_space<vmem>>, vector<1x8x1xf32>
    %338 = vector.shape_cast %337 : vector<1x8x1xf32> to vector<8x1xf32>
    %cst_153 = arith.constant dense<0.000000e+00> : vector<8x32xf32>
    %339 = tpu.matmul %335, %14, %cst_153 {dimension_numbers = #tpu.dot_dimension_numbers<[1], [0], [0], [1], [0, 0, 1, 1], [], []>} : vector<8x32xf32>, vector<32x32xf32>, vector<8x32xf32> -> vector<8x32xf32>
    %340 = vector.broadcast %15 : vector<1x32xf32> to vector<8x32xf32>
    %341 = arith.addf %339, %340 : vector<8x32xf32>
    %342 = math.tanh %341 : vector<8x32xf32>
    %343 = arith.subf %335, %342 : vector<8x32xf32>
    %344 = vector.broadcast %338 : vector<8x1xf32> to vector<8x32xf32>
    %345 = arith.mulf %344, %342 : vector<8x32xf32>
    %346 = arith.addf %343, %345 : vector<8x32xf32>
    %347 = arith.index_cast %c6_i32 : i32 to index
    %c0_154 = arith.constant 0 : index
    %c0_155 = arith.constant 0 : index
    %348 = vector.load %arg12[%347, %c0_154, %c0_155] : memref<8x8x128xf32, #tpu.memory_space<vmem>>, vector<1x8x128xf32>
    %349 = vector.shape_cast %348 : vector<1x8x128xf32> to vector<8x128xf32>
    %cst_156 = arith.constant dense<0.000000e+00> : vector<8x128xf32>
    %350 = tpu.matmul %334, %13, %cst_156 {dimension_numbers = #tpu.dot_dimension_numbers<[1], [0], [0], [1], [0, 0, 1, 1], [], []>} : vector<8x32xf32>, vector<32x128xf32>, vector<8x128xf32> -> vector<8x128xf32>
    %351 = arith.addf %349, %350 : vector<8x128xf32>
    %352 = vector.extract_strided_slice %351 {offsets = [0, 0], sizes = [8, 32], strides = [1, 1]} : vector<8x128xf32> to vector<8x32xf32>
    %353 = arith.negf %352 : vector<8x32xf32>
    %354 = math.exp %353 : vector<8x32xf32>
    %cst_157 = arith.constant 1.000000e+00 : f32
    %355 = vector.broadcast %cst_157 : f32 to vector<8x32xf32>
    %356 = arith.addf %355, %354 : vector<8x32xf32>
    %357 = arith.divf %355, %356 : vector<8x32xf32>
    %358 = vector.extract_strided_slice %351 {offsets = [0, 32], sizes = [8, 32], strides = [1, 1]} : vector<8x128xf32> to vector<8x32xf32>
    %359 = arith.negf %358 : vector<8x32xf32>
    %360 = math.exp %359 : vector<8x32xf32>
    %cst_158 = arith.constant 1.000000e+00 : f32
    %361 = vector.broadcast %cst_158 : f32 to vector<8x32xf32>
    %362 = arith.addf %361, %360 : vector<8x32xf32>
    %363 = arith.divf %361, %362 : vector<8x32xf32>
    %364 = vector.extract_strided_slice %351 {offsets = [0, 64], sizes = [8, 32], strides = [1, 1]} : vector<8x128xf32> to vector<8x32xf32>
    %365 = arith.negf %364 : vector<8x32xf32>
    %366 = math.exp %365 : vector<8x32xf32>
    %cst_159 = arith.constant 1.000000e+00 : f32
    %367 = vector.broadcast %cst_159 : f32 to vector<8x32xf32>
    %368 = arith.addf %367, %366 : vector<8x32xf32>
    %369 = arith.divf %367, %368 : vector<8x32xf32>
    %370 = vector.extract_strided_slice %351 {offsets = [0, 96], sizes = [8, 32], strides = [1, 1]} : vector<8x128xf32> to vector<8x32xf32>
    %371 = math.tanh %370 : vector<8x32xf32>
    %372 = arith.mulf %363, %346 : vector<8x32xf32>
    %373 = arith.mulf %357, %371 : vector<8x32xf32>
    %374 = arith.addf %372, %373 : vector<8x32xf32>
    %375 = math.tanh %374 : vector<8x32xf32>
    %376 = arith.mulf %369, %375 : vector<8x32xf32>
    %c0_160 = arith.constant 0 : index
    %c0_161 = arith.constant 0 : index
    %377 = vector.load %arg10[%c0_160, %c0_161] : memref<8x32xf32, #tpu.memory_space<vmem>>, vector<8x32xf32>
    tpu.vector_store %arg10[%c0_160, %c0_161], %376 {strides = array<i32>} : memref<8x32xf32, #tpu.memory_space<vmem>>, vector<8x32xf32>,
    %c0_162 = arith.constant 0 : index
    %c0_163 = arith.constant 0 : index
    %378 = vector.load %arg11[%c0_162, %c0_163] : memref<8x32xf32, #tpu.memory_space<vmem>>, vector<8x32xf32>
    tpu.vector_store %arg11[%c0_162, %c0_163], %374 {strides = array<i32>} : memref<8x32xf32, #tpu.memory_space<vmem>>, vector<8x32xf32>,
    %379 = arith.index_cast %c6_i32 : i32 to index
    %c0_164 = arith.constant 0 : index
    %c0_165 = arith.constant 0 : index
    %380 = vector.load %arg8[%379, %c0_164, %c0_165] : memref<8x8x32xf32, #tpu.memory_space<vmem>>, vector<1x8x32xf32>
    %381 = vector.shape_cast %380 : vector<1x8x32xf32> to vector<8x32xf32>
    %382 = vector.shape_cast %376 : vector<8x32xf32> to vector<1x8x32xf32>
    tpu.vector_store %arg8[%379, %c0_164, %c0_165], %382 {strides = array<i32>} : memref<8x8x32xf32, #tpu.memory_space<vmem>>, vector<1x8x32xf32>,
    %383 = arith.index_cast %c6_i32 : i32 to index
    %c0_166 = arith.constant 0 : index
    %c0_167 = arith.constant 0 : index
    %384 = vector.load %arg9[%383, %c0_166, %c0_167] : memref<8x8x32xf32, #tpu.memory_space<vmem>>, vector<1x8x32xf32>
    %385 = vector.shape_cast %384 : vector<1x8x32xf32> to vector<8x32xf32>
    %386 = vector.shape_cast %374 : vector<8x32xf32> to vector<1x8x32xf32>
    tpu.vector_store %arg9[%383, %c0_166, %c0_167], %386 {strides = array<i32>} : memref<8x8x32xf32, #tpu.memory_space<vmem>>, vector<1x8x32xf32>,
    %c7_i32 = arith.constant 7 : i32
    %c0_168 = arith.constant 0 : index
    %c0_169 = arith.constant 0 : index
    %387 = vector.load %arg10[%c0_168, %c0_169] : memref<8x32xf32, #tpu.memory_space<vmem>>, vector<8x32xf32>
    %c0_170 = arith.constant 0 : index
    %c0_171 = arith.constant 0 : index
    %388 = vector.load %arg11[%c0_170, %c0_171] : memref<8x32xf32, #tpu.memory_space<vmem>>, vector<8x32xf32>
    %389 = arith.index_cast %c7_i32 : i32 to index
    %c0_172 = arith.constant 0 : index
    %c0_173 = arith.constant 0 : index
    %390 = vector.load %arg2[%389, %c0_172, %c0_173] : memref<8x8x1xf32, #tpu.memory_space<vmem>>, vector<1x8x1xf32>
    %391 = vector.shape_cast %390 : vector<1x8x1xf32> to vector<8x1xf32>
    %cst_174 = arith.constant dense<0.000000e+00> : vector<8x32xf32>
    %392 = tpu.matmul %388, %14, %cst_174 {dimension_numbers = #tpu.dot_dimension_numbers<[1], [0], [0], [1], [0, 0, 1, 1], [], []>} : vector<8x32xf32>, vector<32x32xf32>, vector<8x32xf32> -> vector<8x32xf32>
    %393 = vector.broadcast %15 : vector<1x32xf32> to vector<8x32xf32>
    %394 = arith.addf %392, %393 : vector<8x32xf32>
    %395 = math.tanh %394 : vector<8x32xf32>
    %396 = arith.subf %388, %395 : vector<8x32xf32>
    %397 = vector.broadcast %391 : vector<8x1xf32> to vector<8x32xf32>
    %398 = arith.mulf %397, %395 : vector<8x32xf32>
    %399 = arith.addf %396, %398 : vector<8x32xf32>
    %400 = arith.index_cast %c7_i32 : i32 to index
    %c0_175 = arith.constant 0 : index
    %c0_176 = arith.constant 0 : index
    %401 = vector.load %arg12[%400, %c0_175, %c0_176] : memref<8x8x128xf32, #tpu.memory_space<vmem>>, vector<1x8x128xf32>
    %402 = vector.shape_cast %401 : vector<1x8x128xf32> to vector<8x128xf32>
    %cst_177 = arith.constant dense<0.000000e+00> : vector<8x128xf32>
    %403 = tpu.matmul %387, %13, %cst_177 {dimension_numbers = #tpu.dot_dimension_numbers<[1], [0], [0], [1], [0, 0, 1, 1], [], []>} : vector<8x32xf32>, vector<32x128xf32>, vector<8x128xf32> -> vector<8x128xf32>
    %404 = arith.addf %402, %403 : vector<8x128xf32>
    %405 = vector.extract_strided_slice %404 {offsets = [0, 0], sizes = [8, 32], strides = [1, 1]} : vector<8x128xf32> to vector<8x32xf32>
    %406 = arith.negf %405 : vector<8x32xf32>
    %407 = math.exp %406 : vector<8x32xf32>
    %cst_178 = arith.constant 1.000000e+00 : f32
    %408 = vector.broadcast %cst_178 : f32 to vector<8x32xf32>
    %409 = arith.addf %408, %407 : vector<8x32xf32>
    %410 = arith.divf %408, %409 : vector<8x32xf32>
    %411 = vector.extract_strided_slice %404 {offsets = [0, 32], sizes = [8, 32], strides = [1, 1]} : vector<8x128xf32> to vector<8x32xf32>
    %412 = arith.negf %411 : vector<8x32xf32>
    %413 = math.exp %412 : vector<8x32xf32>
    %cst_179 = arith.constant 1.000000e+00 : f32
    %414 = vector.broadcast %cst_179 : f32 to vector<8x32xf32>
    %415 = arith.addf %414, %413 : vector<8x32xf32>
    %416 = arith.divf %414, %415 : vector<8x32xf32>
    %417 = vector.extract_strided_slice %404 {offsets = [0, 64], sizes = [8, 32], strides = [1, 1]} : vector<8x128xf32> to vector<8x32xf32>
    %418 = arith.negf %417 : vector<8x32xf32>
    %419 = math.exp %418 : vector<8x32xf32>
    %cst_180 = arith.constant 1.000000e+00 : f32
    %420 = vector.broadcast %cst_180 : f32 to vector<8x32xf32>
    %421 = arith.addf %420, %419 : vector<8x32xf32>
    %422 = arith.divf %420, %421 : vector<8x32xf32>
    %423 = vector.extract_strided_slice %404 {offsets = [0, 96], sizes = [8, 32], strides = [1, 1]} : vector<8x128xf32> to vector<8x32xf32>
    %424 = math.tanh %423 : vector<8x32xf32>
    %425 = arith.mulf %416, %399 : vector<8x32xf32>
    %426 = arith.mulf %410, %424 : vector<8x32xf32>
    %427 = arith.addf %425, %426 : vector<8x32xf32>
    %428 = math.tanh %427 : vector<8x32xf32>
    %429 = arith.mulf %422, %428 : vector<8x32xf32>
    %c0_181 = arith.constant 0 : index
    %c0_182 = arith.constant 0 : index
    %430 = vector.load %arg10[%c0_181, %c0_182] : memref<8x32xf32, #tpu.memory_space<vmem>>, vector<8x32xf32>
    tpu.vector_store %arg10[%c0_181, %c0_182], %429 {strides = array<i32>} : memref<8x32xf32, #tpu.memory_space<vmem>>, vector<8x32xf32>,
    %c0_183 = arith.constant 0 : index
    %c0_184 = arith.constant 0 : index
    %431 = vector.load %arg11[%c0_183, %c0_184] : memref<8x32xf32, #tpu.memory_space<vmem>>, vector<8x32xf32>
    tpu.vector_store %arg11[%c0_183, %c0_184], %427 {strides = array<i32>} : memref<8x32xf32, #tpu.memory_space<vmem>>, vector<8x32xf32>,
    %432 = arith.index_cast %c7_i32 : i32 to index
    %c0_185 = arith.constant 0 : index
    %c0_186 = arith.constant 0 : index
    %433 = vector.load %arg8[%432, %c0_185, %c0_186] : memref<8x8x32xf32, #tpu.memory_space<vmem>>, vector<1x8x32xf32>
    %434 = vector.shape_cast %433 : vector<1x8x32xf32> to vector<8x32xf32>
    %435 = vector.shape_cast %429 : vector<8x32xf32> to vector<1x8x32xf32>
    tpu.vector_store %arg8[%432, %c0_185, %c0_186], %435 {strides = array<i32>} : memref<8x8x32xf32, #tpu.memory_space<vmem>>, vector<1x8x32xf32>,
    %436 = arith.index_cast %c7_i32 : i32 to index
    %c0_187 = arith.constant 0 : index
    %c0_188 = arith.constant 0 : index
    %437 = vector.load %arg9[%436, %c0_187, %c0_188] : memref<8x8x32xf32, #tpu.memory_space<vmem>>, vector<1x8x32xf32>
    %438 = vector.shape_cast %437 : vector<1x8x32xf32> to vector<8x32xf32>
    %439 = vector.shape_cast %427 : vector<8x32xf32> to vector<1x8x32xf32>
    tpu.vector_store %arg9[%436, %c0_187, %c0_188], %439 {strides = array<i32>} : memref<8x8x32xf32, #tpu.memory_space<vmem>>, vector<1x8x32xf32>,
    %c8_i32 = arith.constant 8 : i32
    return
  }
  func.func @transform_0(%arg0: i32) -> (i32, i32, i32) {
    %c0_i32 = arith.constant 0 : i32
    %c0_i32_0 = arith.constant 0 : i32
    %c0_i32_1 = arith.constant 0 : i32
    %c0_i32_2 = arith.constant 0 : i32
    return %c0_i32, %c0_i32_0, %c0_i32_1 : i32, i32, i32
  }
  func.func @transform_1(%arg0: i32) -> (i32, i32, i32) {
    %c0_i32 = arith.constant 0 : i32
    %c0_i32_0 = arith.constant 0 : i32
    %c0_i32_1 = arith.constant 0 : i32
    %c0_i32_2 = arith.constant 0 : i32
    return %c0_i32, %c0_i32_0, %c0_i32_1 : i32, i32, i32
  }
  func.func @transform_2(%arg0: i32) -> (i32, i32) {
    %c0_i32 = arith.constant 0 : i32
    %c0_i32_0 = arith.constant 0 : i32
    %c0_i32_1 = arith.constant 0 : i32
    return %c0_i32, %c0_i32_0 : i32, i32
  }
  func.func @transform_3(%arg0: i32) -> (i32, i32) {
    %c0_i32 = arith.constant 0 : i32
    %c0_i32_0 = arith.constant 0 : i32
    %c0_i32_1 = arith.constant 0 : i32
    return %c0_i32, %c0_i32_0 : i32, i32
  }
  func.func @transform_4(%arg0: i32) -> (i32, i32) {
    %c0_i32 = arith.constant 0 : i32
    %c0_i32_0 = arith.constant 0 : i32
    %c0_i32_1 = arith.constant 0 : i32
    return %c0_i32, %c0_i32_0 : i32, i32
  }
  func.func @transform_5(%arg0: i32) -> (i32, i32) {
    %c0_i32 = arith.constant 0 : i32
    %c0_i32_0 = arith.constant 0 : i32
    %c0_i32_1 = arith.constant 0 : i32
    return %c0_i32, %c0_i32_0 : i32, i32
  }
  func.func @transform_6(%arg0: i32) -> (i32, i32) {
    %c0_i32 = arith.constant 0 : i32
    %c0_i32_0 = arith.constant 0 : i32
    %c0_i32_1 = arith.constant 0 : i32
    return %c0_i32, %c0_i32_0 : i32, i32
  }
  func.func @transform_7(%arg0: i32) -> (i32, i32, i32) {
    %c0_i32 = arith.constant 0 : i32
    %c0_i32_0 = arith.constant 0 : i32
    %c0_i32_1 = arith.constant 0 : i32
    %c0_i32_2 = arith.constant 0 : i32
    return %c0_i32, %c0_i32_0, %c0_i32_1 : i32, i32, i32
  }
  func.func @transform_8(%arg0: i32) -> (i32, i32, i32) {
    %c0_i32 = arith.constant 0 : i32
    %c0_i32_0 = arith.constant 0 : i32
    %c0_i32_1 = arith.constant 0 : i32
    %c0_i32_2 = arith.constant 0 : i32
    return %c0_i32, %c0_i32_0, %c0_i32_1 : i32, i32, i32
  }
}

</mosaic_0001>

<bundles_post_ra>
// kernel: stacked_tlstm_forward.2
= control target key start
LH: loop header
LB: loop body
LE: loop exit
PB: predicated region body
PF: predicated region fallthrough
CT: control target
= control target key end

     0   :  { %vm183_vm0 = vcmask 261120   ;;  %v2363_v0 = vmov 0.0|0.0   ;;  %vm2364_vm1 = vmmov 0   ;;  %v2365_v4 = vmov 0.0   ;;  %s2369_s20 = smov 64   ;;  %s2800_s5 = inlined_call_operand.vmem [shape: f32[32,32], index: 5, kind: input, shape index: {}]   ;;  %s2801_s2 = inlined_call_operand.vmem [shape: f32[16,128], index: 2, kind: input, shape index: {}]   ;;  %s2802_s0 = inlined_call_operand.vmem [shape: f32[8,8,16], index: 0, kind: input, shape index: {}]   ;;  %s2803_s3 = inlined_call_operand.vmem [shape: f32[32,128], index: 3, kind: input, shape index: {}]   ;;  %s2804_s1 = inlined_call_operand.vmem [shape: f32[8,8,1], index: 1, kind: input, shape index: {}]   ;;  %s2805_s6 = inlined_call_operand.vmem [shape: f32[1,32], index: 6, kind: input, shape index: {}]   ;;  %s2806_s4 = inlined_call_operand.vmem [shape: f32[1,128], index: 4, kind: input, shape index: {}]   ;;  %s2807_s8 = inlined_call_operand.vmem [shape: f32[8,8,32], index: 8, kind: output, shape index: {1}]   ;;  %s2808_s7 = inlined_call_operand.vmem [shape: f32[8,8,32], index: 7, kind: output, shape index: {0}]  }
   0x1   :  { %2178 = vmatprep.subr.bf16.mxu1 %v2363_v0  ;;  %v190_v1 = vld [vmem:[%s2800_s5] sm:$0xff]  ;;  %v191_v2 = vld [vmem:[%s2800_s5 + $0x8] sm:$0xff]  ;;  %v192_v3 = vld [vmem:[%s2800_s5 + $0x10] sm:$0xff]  ;;  %2006 = vmatprep.mubr.msk.f32.mxu1 %vm2364_vm1, %v2365_v4  ;;  %185 = vst.msk [vmem:[#allocation3] sm:$0xff] %vm183_vm0, %v2365_v4  ;;  %vm45_vm2 = vcmask 130048   ;;  %v2366_v9 = vmov 0  }
   0x2   :  { %184 = vst.msk [vmem:[#allocation2] sm:$0xff] %vm183_vm0, %v2365_v4  ;;  %v2431_v5 = vpack.c.bf16 %v191_v2, %v190_v1  ;;  %v193_v6 = vld [vmem:[%s2800_s5 + $0x18] sm:$0xff]  ;;  %v36_v7 = vld [vmem:[%s2801_s2] sm:$0xff]  ;;  %v37_v8 = vld [vmem:[%s2801_s2 + $0x8] sm:$0xff]  ;;  %2281 = vset.pattern.permute.xlu0 %v2366_v9  ;;  %2282 = vset.pattern.permute.xlu1 %v2366_v9  ;;  %s2368_s2 = smov 96  }
   0x3   :  { %v2174_v10 = vpack.c.bf16 %v37_v8, %v36_v7  ;;  %v28_v11 = vld [vmem:[%s2802_s0] sm:$0xff]  ;;  %v2446_v12 = vpack.c.bf16 %v193_v6, %v192_v3  ;;  %v187_v14 = vld [vmem:[%s2803_s3 + $0x8] sm:$0xff]  ;;  %v188_v19 = vld [vmem:[%s2803_s3 + $0x10] sm:$0xff] }
   0x4   :  { %2180 = vmatpush3.bf16.msra.mxu1 %v2431_v5  ;;  %1986 = vmatprep.mubr.msk.f32.mxu0 %vm45_vm2, %v28_v11  ;;  %v186_v13 = vld [vmem:[%s2803_s3] sm:$0xff]  ;;  %v29_v16 = vld [vmem:[%s2802_s0 + $0x8] sm:$0xff]  ;;  %v189_v20 = vld [vmem:[%s2803_s3 + $0x18] sm:$0xff] }
   0x5   :  { %2181 = vmatprep.subr.bf16.mxu1 %v2363_v0  ;;  %2175 = vmatprep.subr.bf16.mxu0 %v2174_v10  ;;  %v197_v15 = vld [vmem:[%s2804_s1] sm:$0xff]  ;;  %v2464_v18 = vpack.c.bf16 %v187_v14, %v186_v13  ;;  %v2478_v21 = vpack.c.bf16 %v189_v20, %v188_v19  ;;  %v30_v46 = vld [vmem:[%s2802_s0 + $0x10] sm:$0xff]  ;;  %v31_v50 = vld [vmem:[%s2802_s0 + $0x18] sm:$0xff] }
   0x6   :  { %2177 = vmatpush3.bf16.msra.mxu0 %v2174_v10  ;;  %281 = vperm.xlu0 %2281, %v197_v15   ;;  %v2497_v23 = vld [vmem:[%s2805_s6] ss:$0 sm:$0xff]  ;;  %s2367_s6 = smov 32   ;;  %v33_v53 = vld [vmem:[%s2802_s0 + $0x28] sm:$0xff]  ;;  %v34_v54 = vld [vmem:[%s2802_s0 + $0x30] sm:$0xff] }
   0x7   :  { %2190 = vmatprep.subr.bf16.mxu0 %v2363_v0  ;;  %v2505_v29 = vld [vmem:[%s2806_s4] ss:$0 sm:$0xff]  ;;  %v35_v55 = vld [vmem:[%s2802_s0 + $0x38] sm:$0xff]  ;;  %v1850_v60 = vld [vmem:[%s2804_s1 + $0x8] sm:$0xff] }
   0x8   :  { %2183 = vmatpush3.bf16.msra.mxu1 %v2446_v12  ;;  %v196_v17 = vld [vmem:[#allocation3] sm:$0xff]  ;;  %v32_v52 = vld [vmem:[%s2802_s0 + $0x20] sm:$0xff] }
   0x9   :  { %2184 = vmatprep.subr.bf16.mxu1 %v2363_v0  ;;  %1987 = vmatmul.mubr.msk.f32.vlgmr.msra.gmra.mrb[0].mxu0 %vm45_vm2, %v29_v16  ;;  %v195_v22 = vld [vmem:[#allocation2] sm:$0xff] }
   0xa   :  { %2192 = vmatpush3.bf16.msra.mxu0 %v2431_v5  ;;  %1989 = vmatprep.mubr.msk.f32.mxu0 %vm45_vm2, %v30_v46 }
   0xb   :  { %2007 = vmatmul.mubr.msk.f32.vlgmr.msra.gmra.mrb[0].mxu1 %vm183_vm0, %v196_v17  ;;  %2193 = vmatprep.subr.bf16.mxu0 %v2363_v0 }
   0xc   :  { %2186 = vmatpush3.bf16.msra.mxu1 %v2464_v18  ;;  %2017 = vmatprep.mubr.msk.f32.mxu1 %vm2364_vm1, %v2365_v4 }
   0xd   :  { %2187 = vmatprep.subr.bf16.mxu1 %v2363_v0  ;;  %1990 = vmatmul.mubr.msk.f32.gmra.mrb[2].mxu0 %vm45_vm2, %v31_v50 }
   0xe   :  { %2195 = vmatpush3.bf16.msra.mxu0 %v2446_v12  ;;  %1992 = vmatprep.mubr.msk.f32.mxu0 %vm45_vm2, %v32_v52 }
   0xf   :  { %2202 = vmatprep.subr.bf16.mxu0 %v2363_v0 }
  0x10   :  { %2189 = vmatpush3.bf16.msra.mxu1 %v2478_v21 }
  0x11   :  { %2196 = vmatprep.subr.bf16.mxu1 %v2363_v0  ;;  %1993 = vmatmul.mubr.msk.f32.gmra.mrb[4].mxu0 %vm45_vm2, %v33_v53 }
  0x12   :  { %1995 = vmatprep.mubr.msk.f32.mxu0 %vm45_vm2, %v34_v54 }
  0x13   :  { %2018 = vmatmul.mubr.msk.f32.vlgmr.msra.gmra.mrb[2].mxu1 %vm183_vm0, %v195_v22 }
  0x14   :  { %2198 = vmatpush3.bf16.msra.mxu1 %v2464_v18  ;;  %2039 = vmatprep.mubr.msk.f32.mxu1 %vm2364_vm1, %v2365_v4 }
  0x15   :  { %2199 = vmatprep.subr.bf16.mxu1 %v2363_v0  ;;  %1996 = vmatmul.mubr.msk.f32.gmra.mrb[6].mxu0 %vm45_vm2, %v35_v55 }
  0x16   :  { %2028 = vmatprep.mubr.msk.f32.mxu0 %vm2364_vm1, %v2365_v4 }
  0x18   :  { %2201 = vmatpush3.bf16.msra.mxu1 %v2478_v21 }
  0x19   :  { %2208 = vmatprep.subr.bf16.mxu1 %v2363_v0 }
  0x85   :  { %v282_v34 = vpop.permute.xlu0 %281 }
  0xdc   :  { %v2499_v24 = vpop.f32.mrb[0].mxu0 }
  0xdd   :  { %v136_v25 = vpop.f32.mrb[1].mxu0  ;;  %v142_v19 = vadd.f32 %v2499_v24, %v2505_v29 }
  0xde   :  { %v273_v26 = vpop.f32.mrb[0].mxu1  ;;  %v137_v30 = vadd.f32 %v2505_v29, %v136_v25 }
  0xdf   :  { %v274_v27 = vadd.f32 %v2497_v23, %v273_v26  ;;  %v2008_v28 = vpop.f32.mrb[1].mxu1 }
  0xe0   :  { %v2555_v62 = vpop.f32.mrb[2].mxu0 }
  0xe1   :  { %2283 = vtanh.f32 %v274_v27  ;;  %v2557_v63 = vpop.f32.mrb[3].mxu0 }
  0xe2   :  { %v147_v53 = vadd.f32 %v2505_v29, %v2557_v63 }
  0xe4   :  { %v2559_v1 = vpop.f32.mrb[4].mxu0 }
  0xe5   :  { %v2561_v2 = vpop.f32.mrb[5].mxu0 }
  0xe6   :  { %v356_v31 = vpop.f32.mrb[2].mxu1 }
  0xe7   :  { %v360_v32 = vadd.f32 %v356_v31, %v137_v30  ;;  %v2019_v33 = vpop.f32.mrb[3].mxu1 }
  0xe8   :  { %v2563_v3 = vpop.f32.mrb[6].mxu0 }
  0xe9   :  { %2285 = vtanh.f32 %v360_v32  ;;  %v1849_v40 = vmul.f32 -1.442695, %v360_v32  ;;  %v2565_v6 = vpop.f32.mrb[7].mxu0 }
  0xeb   :  { %v2284_v35 = vpop.eup %2283  ;;  %2287 = vpow2.f32 %v1849_v40 }
  0xec   :  { %v284_v36 = vmul.f32 %v2284_v35, %v282_v34  ;;  %v278_v37 = vsub.f32 %v196_v17, %v2284_v35 }
  0xee   :  { %v285_v38 = vadd.f32 %v284_v36, %v278_v37 }
  0xf0   :  { %369 = vrot.lane.b32.xlu1 %v285_v38, %s2367_s6 }
  0xf3   :  { %v2286_v39 = vpop.eup %2285 }
  0xf4   :  { %374 = vrot.lane.b32.xlu0 %v2286_v39, %s2367_s6 }
  0xf5   :  { %v2288_v41 = vpop.eup %2287 }
  0xf6   :  { %v364_v42 = vadd.f32 1.0, %v2288_v41  ;;  %v1856_v41 = vld [vmem:[%s2804_s1 + $0x10] sm:$0xff] }
  0xf8   :  { %2289 = vrcp.f32 %v364_v42 }
 0x102   :  { %v2290_v43 = vpop.eup %2289 }
 0x162   :  { %v370_v47 = vpop.permute.xlu1 %369 }
 0x163   :  { %v372_v48 = vmul.f32 %v2290_v43, %v370_v47 }
 0x166   :  { %v375_v44 = vpop.permute.xlu0 %374 }
 0x167   :  { %v377_v45 = vmul.f32 %v2290_v43, %v375_v44 }
 0x169   :  { %379 = vrot.lane.b32.xlu1 %v377_v45, %s2367_s6 }
 0x1db   :  { %v380_v49 = vpop.permute.xlu1 %379 }
 0x1dc   :  { %v382_v51 = vadd.f32 %v380_v49, %v372_v48 }
 0x1de   :  { %2291 = vtanh.f32 %v382_v51 }
 0x1e8   :  { %v2292_v56 = vpop.eup %2291 }
 0x1e9   :  { %385 = vrot.lane.b32.xlu0 %v2292_v56, %s2367_s6 }
 0x1ed   :  { %395 = vrot.lane.b32.xlu0 %v382_v51, %s2368_s2 }
 0x25b   :  { %v386_v57 = vpop.permute.xlu0 %385 }
 0x25c   :  { %v388_v58 = vmul.f32 %v2290_v43, %v386_v57 }
 0x25e   :  { %390 = vrot.lane.b32.xlu1 %v388_v58, %s2369_s20 }
 0x25f   :  { %v396_v59 = vpop.permute.xlu0 %395 }
 0x260   :  { %398 = vst.msk [vmem:[#allocation3] sm:$0xff] %vm183_vm0, %v396_v59  ;;  %400 = vst.msk [vmem:[%s2807_s8] sm:$0xff] %vm183_vm0, %v396_v59 }
 0x262   :  { %482 = vperm.xlu1 %2282, %v1850_v60  }
 0x267   :  { %v402_v61 = vld [vmem:[#allocation3] sm:$0xff] }
 0x268   :  { %2029 = vmatmul.mubr.msk.f32.vlgmr.msra.gmra.mrb[8].mxu0 %vm183_vm0, %v402_v61 }
 0x269   :  { %2204 = vmatpush3.bf16.msra.mxu0 %v2431_v5  ;;  %2050 = vmatprep.mubr.msk.f32.mxu0 %vm2364_vm1, %v2365_v4 }
 0x26a   :  { %2205 = vmatprep.subr.bf16.mxu0 %v2363_v0 }
 0x26d   :  { %2207 = vmatpush3.bf16.msra.mxu0 %v2446_v12 }
 0x26e   :  { %2214 = vmatprep.subr.bf16.mxu0 %v2363_v0 }
 0x2d0   :  { %v391_v7 = vpop.permute.xlu1 %390 }
 0x2d1   :  { %393 = vst.msk [vmem:[#allocation2] sm:$0xff] %vm183_vm0, %v391_v7  ;;  %399 = vst.msk [vmem:[%s2808_s7] sm:$0xff] %vm183_vm0, %v391_v7 }
 0x2d8   :  { %v401_v8 = vld [vmem:[#allocation2] sm:$0xff] }
 0x2d9   :  { %2040 = vmatmul.mubr.msk.f32.vlgmr.msra.gmra.mrb[4].mxu1 %vm183_vm0, %v401_v8 }
 0x2da   :  { %2210 = vmatpush3.bf16.msra.mxu1 %v2464_v18  ;;  %2061 = vmatprep.mubr.msk.f32.mxu1 %vm2364_vm1, %v2365_v4 }
 0x2db   :  { %2211 = vmatprep.subr.bf16.mxu1 %v2363_v0 }
 0x2de   :  { %2213 = vmatpush3.bf16.msra.mxu1 %v2478_v21 }
 0x2df   :  { %2220 = vmatprep.subr.bf16.mxu1 %v2363_v0 }
 0x2e1   :  { %v483_v13 = vpop.permute.xlu1 %482 }
 0x33b   :  { %v474_v9 = vpop.f32.mrb[8].mxu0 }
 0x33c   :  { %v475_v10 = vadd.f32 %v2497_v23, %v474_v9  ;;  %v2030_v11 = vpop.f32.mrb[9].mxu0 }
 0x33e   :  { %2293 = vtanh.f32 %v475_v10 }
 0x348   :  { %v2294_v14 = vpop.eup %2293 }
 0x349   :  { %v479_v15 = vsub.f32 %v402_v61, %v2294_v14  ;;  %v485_v16 = vmul.f32 %v2294_v14, %v483_v13 }
 0x34b   :  { %v486_v17 = vadd.f32 %v485_v16, %v479_v15 }
 0x34d   :  { %571 = vrot.lane.b32.xlu1 %v486_v17, %s2367_s6  ;;  %v1862_v17 = vld [vmem:[%s2804_s1 + $0x18] sm:$0xff] }
 0x3ac   :  { %v558_v20 = vpop.f32.mrb[4].mxu1 }
 0x3ad   :  { %v562_v22 = vadd.f32 %v558_v20, %v142_v19  ;;  %v2041_v25 = vpop.f32.mrb[5].mxu1 }
 0x3af   :  { %2295 = vtanh.f32 %v562_v22  ;;  %v1853_v27 = vmul.f32 -1.442695, %v562_v22 }
 0x3b1   :  { %2297 = vpow2.f32 %v1853_v27 }
 0x3b9   :  { %v2296_v26 = vpop.eup %2295 }
 0x3ba   :  { %576 = vrot.lane.b32.xlu0 %v2296_v26, %s2367_s6 }
 0x3bb   :  { %v2298_v28 = vpop.eup %2297 }
 0x3bc   :  { %v566_v30 = vadd.f32 1.0, %v2298_v28 }
 0x3be   :  { %2299 = vrcp.f32 %v566_v30 }
 0x3bf   :  { %v572_v34 = vpop.permute.xlu1 %571 }
 0x3c8   :  { %v2300_v31 = vpop.eup %2299 }
 0x3c9   :  { %v574_v35 = vmul.f32 %v2300_v31, %v572_v34  ;;  %v152_v34 = vadd.f32 %v2555_v62, %v2505_v29 }
 0x42c   :  { %v577_v32 = vpop.permute.xlu0 %576 }
 0x42d   :  { %v579_v33 = vmul.f32 %v2300_v31, %v577_v32 }
 0x42f   :  { %581 = vrot.lane.b32.xlu0 %v579_v33, %s2367_s6 }
 0x4a1   :  { %v582_v24 = vpop.permute.xlu0 %581 }
 0x4a2   :  { %v584_v36 = vadd.f32 %v582_v24, %v574_v35 }
 0x4a4   :  { %2301 = vtanh.f32 %v584_v36 }
 0x4ae   :  { %v2302_v37 = vpop.eup %2301 }
 0x4af   :  { %587 = vrot.lane.b32.xlu1 %v2302_v37, %s2367_s6 }
 0x4b3   :  { %597 = vrot.lane.b32.xlu1 %v584_v36, %s2368_s2 }
 0x521   :  { %v588_v38 = vpop.permute.xlu1 %587 }
 0x522   :  { %v590_v39 = vmul.f32 %v2300_v31, %v588_v38 }
 0x524   :  { %592 = vrot.lane.b32.xlu0 %v590_v39, %s2369_s20 }
 0x525   :  { %v598_v40 = vpop.permute.xlu1 %597 }
 0x526   :  { %600 = vst.msk [vmem:[#allocation3] sm:$0xff] %vm183_vm0, %v598_v40  ;;  %1855 = vst.msk [vmem:[%s2807_s8 + $0x8] sm:$0xff] %vm183_vm0, %v598_v40 }
 0x528   :  { %686 = vperm.xlu0 %2281, %v1856_v41  }
 0x52d   :  { %v606_v42 = vld [vmem:[#allocation3] sm:$0xff] }
 0x52e   :  { %2051 = vmatmul.mubr.msk.f32.vlgmr.msra.gmra.mrb[10].mxu0 %vm183_vm0, %v606_v42 }
 0x52f   :  { %2216 = vmatpush3.bf16.msra.mxu0 %v2431_v5  ;;  %2072 = vmatprep.mubr.msk.f32.mxu0 %vm2364_vm1, %v2365_v4 }
 0x530   :  { %2217 = vmatprep.subr.bf16.mxu0 %v2363_v0 }
 0x533   :  { %2219 = vmatpush3.bf16.msra.mxu0 %v2446_v12 }
 0x534   :  { %2226 = vmatprep.subr.bf16.mxu0 %v2363_v0 }
 0x596   :  { %v593_v43 = vpop.permute.xlu0 %592 }
 0x597   :  { %595 = vst.msk [vmem:[#allocation2] sm:$0xff] %vm183_vm0, %v593_v43  ;;  %1854 = vst.msk [vmem:[%s2808_s7 + $0x8] sm:$0xff] %vm183_vm0, %v593_v43 }
 0x59e   :  { %v605_v44 = vld [vmem:[#allocation2] sm:$0xff] }
 0x59f   :  { %2062 = vmatmul.mubr.msk.f32.vlgmr.msra.gmra.mrb[6].mxu1 %vm183_vm0, %v605_v44 }
 0x5a0   :  { %2222 = vmatpush3.bf16.msra.mxu1 %v2464_v18  ;;  %2083 = vmatprep.mubr.msk.f32.mxu1 %vm2364_vm1, %v2365_v4 }
 0x5a1   :  { %2223 = vmatprep.subr.bf16.mxu1 %v2363_v0 }
 0x5a4   :  { %2225 = vmatpush3.bf16.msra.mxu1 %v2478_v21 }
 0x5a5   :  { %2232 = vmatprep.subr.bf16.mxu1 %v2363_v0 }
 0x5a7   :  { %v687_v49 = vpop.permute.xlu0 %686 }
 0x601   :  { %v678_v45 = vpop.f32.mrb[10].mxu0 }
 0x602   :  { %v679_v46 = vadd.f32 %v2497_v23, %v678_v45  ;;  %v2052_v47 = vpop.f32.mrb[11].mxu0 }
 0x604   :  { %2303 = vtanh.f32 %v679_v46 }
 0x60e   :  { %v2304_v48 = vpop.eup %2303 }
 0x60f   :  { %v683_v50 = vsub.f32 %v606_v42, %v2304_v48  ;;  %v689_v51 = vmul.f32 %v2304_v48, %v687_v49 }
 0x611   :  { %v690_v52 = vadd.f32 %v689_v51, %v683_v50  ;;  %v1868_v51 = vld [vmem:[%s2804_s1 + $0x20] sm:$0xff] }
 0x613   :  { %775 = vrot.lane.b32.xlu0 %v690_v52, %s2367_s6 }
 0x672   :  { %v762_v54 = vpop.f32.mrb[6].mxu1 }
 0x673   :  { %v766_v55 = vadd.f32 %v762_v54, %v147_v53  ;;  %v2063_v56 = vpop.f32.mrb[7].mxu1 }
 0x675   :  { %2305 = vtanh.f32 %v766_v55  ;;  %v1859_v58 = vmul.f32 -1.442695, %v766_v55 }
 0x677   :  { %2307 = vpow2.f32 %v1859_v58 }
 0x67f   :  { %v2306_v57 = vpop.eup %2305 }
 0x680   :  { %780 = vrot.lane.b32.xlu1 %v2306_v57, %s2367_s6 }
 0x681   :  { %v2308_v59 = vpop.eup %2307 }
 0x682   :  { %v770_v60 = vadd.f32 1.0, %v2308_v59 }
 0x684   :  { %2309 = vrcp.f32 %v770_v60 }
 0x685   :  { %v776_v9 = vpop.permute.xlu0 %775 }
 0x68e   :  { %v2310_v61 = vpop.eup %2309 }
 0x68f   :  { %v778_v10 = vmul.f32 %v2310_v61, %v776_v9 }
 0x6f2   :  { %v781_v7 = vpop.permute.xlu1 %780 }
 0x6f3   :  { %v783_v8 = vmul.f32 %v2310_v61, %v781_v7 }
 0x6f5   :  { %785 = vrot.lane.b32.xlu1 %v783_v8, %s2367_s6  ;;  %v157_v8 = vadd.f32 %v2505_v29, %v2561_v2 }
 0x767   :  { %v786_v63 = vpop.permute.xlu1 %785 }
 0x768   :  { %v788_v11 = vadd.f32 %v786_v63, %v778_v10 }
 0x76a   :  { %2311 = vtanh.f32 %v788_v11 }
 0x774   :  { %v2312_v13 = vpop.eup %2311 }
 0x775   :  { %791 = vrot.lane.b32.xlu0 %v2312_v13, %s2367_s6 }
 0x779   :  { %801 = vrot.lane.b32.xlu0 %v788_v11, %s2368_s2 }
 0x7e7   :  { %v792_v14 = vpop.permute.xlu0 %791 }
 0x7e8   :  { %v794_v15 = vmul.f32 %v2310_v61, %v792_v14 }
 0x7ea   :  { %796 = vrot.lane.b32.xlu1 %v794_v15, %s2369_s20 }
 0x7eb   :  { %v802_v16 = vpop.permute.xlu0 %801 }
 0x7ec   :  { %804 = vst.msk [vmem:[#allocation3] sm:$0xff] %vm183_vm0, %v802_v16  ;;  %1861 = vst.msk [vmem:[%s2807_s8 + $0x10] sm:$0xff] %vm183_vm0, %v802_v16 }
 0x7ee   :  { %890 = vperm.xlu1 %2282, %v1862_v17  }
 0x7f3   :  { %v810_v19 = vld [vmem:[#allocation3] sm:$0xff] }
 0x7f4   :  { %2073 = vmatmul.mubr.msk.f32.vlgmr.msra.gmra.mrb[12].mxu0 %vm183_vm0, %v810_v19 }
 0x7f5   :  { %2228 = vmatpush3.bf16.msra.mxu0 %v2431_v5  ;;  %2094 = vmatprep.mubr.msk.f32.mxu0 %vm2364_vm1, %v2365_v4 }
 0x7f6   :  { %2229 = vmatprep.subr.bf16.mxu0 %v2363_v0 }
 0x7f9   :  { %2231 = vmatpush3.bf16.msra.mxu0 %v2446_v12 }
 0x7fa   :  { %2238 = vmatprep.subr.bf16.mxu0 %v2363_v0 }
 0x85c   :  { %v797_v20 = vpop.permute.xlu1 %796 }
 0x85d   :  { %799 = vst.msk [vmem:[#allocation2] sm:$0xff] %vm183_vm0, %v797_v20  ;;  %1860 = vst.msk [vmem:[%s2808_s7 + $0x10] sm:$0xff] %vm183_vm0, %v797_v20 }
 0x864   :  { %v809_v22 = vld [vmem:[#allocation2] sm:$0xff] }
 0x865   :  { %2084 = vmatmul.mubr.msk.f32.vlgmr.msra.gmra.mrb[8].mxu1 %vm183_vm0, %v809_v22 }
 0x866   :  { %2234 = vmatpush3.bf16.msra.mxu1 %v2464_v18  ;;  %2105 = vmatprep.mubr.msk.f32.mxu1 %vm2364_vm1, %v2365_v4 }
 0x867   :  { %2235 = vmatprep.subr.bf16.mxu1 %v2363_v0 }
 0x86a   :  { %2237 = vmatpush3.bf16.msra.mxu1 %v2478_v21 }
 0x86b   :  { %2244 = vmatprep.subr.bf16.mxu1 %v2363_v0 }
 0x86d   :  { %v891_v30 = vpop.permute.xlu1 %890 }
 0x8c7   :  { %v882_v25 = vpop.f32.mrb[12].mxu0 }
 0x8c8   :  { %v883_v26 = vadd.f32 %v2497_v23, %v882_v25  ;;  %v2074_v27 = vpop.f32.mrb[13].mxu0 }
 0x8ca   :  { %2313 = vtanh.f32 %v883_v26 }
 0x8d4   :  { %v2314_v28 = vpop.eup %2313 }
 0x8d5   :  { %v887_v31 = vsub.f32 %v810_v19, %v2314_v28  ;;  %v893_v32 = vmul.f32 %v2314_v28, %v891_v30 }
 0x8d7   :  { %v894_v33 = vadd.f32 %v893_v32, %v887_v31  ;;  %v1874_v31 = vld [vmem:[%s2804_s1 + $0x28] sm:$0xff] }
 0x8d9   :  { %979 = vrot.lane.b32.xlu1 %v894_v33, %s2367_s6 }
 0x938   :  { %v966_v35 = vpop.f32.mrb[8].mxu1 }
 0x939   :  { %v970_v24 = vadd.f32 %v966_v35, %v152_v34  ;;  %v2085_v36 = vpop.f32.mrb[9].mxu1 }
 0x93b   :  { %2315 = vtanh.f32 %v970_v24  ;;  %v1865_v38 = vmul.f32 -1.442695, %v970_v24 }
 0x93d   :  { %2317 = vpow2.f32 %v1865_v38 }
 0x945   :  { %v2316_v37 = vpop.eup %2315 }
 0x946   :  { %984 = vrot.lane.b32.xlu0 %v2316_v37, %s2367_s6 }
 0x947   :  { %v2318_v39 = vpop.eup %2317 }
 0x948   :  { %v974_v40 = vadd.f32 1.0, %v2318_v39 }
 0x94a   :  { %2319 = vrcp.f32 %v974_v40 }
 0x94b   :  { %v980_v44 = vpop.permute.xlu1 %979 }
 0x954   :  { %v2320_v41 = vpop.eup %2319 }
 0x955   :  { %v982_v45 = vmul.f32 %v2320_v41, %v980_v44 }
 0x9b8   :  { %v985_v42 = vpop.permute.xlu0 %984 }
 0x9b9   :  { %v987_v43 = vmul.f32 %v2320_v41, %v985_v42  ;;  %v162_v42 = vadd.f32 %v2559_v1, %v2505_v29 }
 0x9bb   :  { %989 = vrot.lane.b32.xlu0 %v987_v43, %s2367_s6 }
 0xa2d   :  { %v990_v62 = vpop.permute.xlu0 %989 }
 0xa2e   :  { %v992_v46 = vadd.f32 %v990_v62, %v982_v45 }
 0xa30   :  { %2321 = vtanh.f32 %v992_v46 }
 0xa3a   :  { %v2322_v47 = vpop.eup %2321 }
 0xa3b   :  { %995 = vrot.lane.b32.xlu1 %v2322_v47, %s2367_s6 }
 0xa3f   :  { %1005 = vrot.lane.b32.xlu1 %v992_v46, %s2368_s2 }
 0xaad   :  { %v996_v48 = vpop.permute.xlu1 %995 }
 0xaae   :  { %v998_v49 = vmul.f32 %v2320_v41, %v996_v48 }
 0xab0   :  { %1000 = vrot.lane.b32.xlu0 %v998_v49, %s2369_s20 }
 0xab1   :  { %v1006_v50 = vpop.permute.xlu1 %1005 }
 0xab2   :  { %1008 = vst.msk [vmem:[#allocation3] sm:$0xff] %vm183_vm0, %v1006_v50  ;;  %1867 = vst.msk [vmem:[%s2807_s8 + $0x18] sm:$0xff] %vm183_vm0, %v1006_v50 }
 0xab4   :  { %1094 = vperm.xlu0 %2281, %v1868_v51  }
 0xab9   :  { %v1014_v52 = vld [vmem:[#allocation3] sm:$0xff] }
 0xaba   :  { %2095 = vmatmul.mubr.msk.f32.vlgmr.msra.gmra.mrb[14].mxu0 %vm183_vm0, %v1014_v52 }
 0xabb   :  { %2240 = vmatpush3.bf16.msra.mxu0 %v2431_v5  ;;  %2116 = vmatprep.mubr.msk.f32.mxu0 %vm2364_vm1, %v2365_v4 }
 0xabc   :  { %2241 = vmatprep.subr.bf16.mxu0 %v2363_v0 }
 0xabf   :  { %2243 = vmatpush3.bf16.msra.mxu0 %v2446_v12 }
 0xac0   :  { %2250 = vmatprep.subr.bf16.mxu0 %v2363_v0 }
 0xb22   :  { %v1001_v53 = vpop.permute.xlu0 %1000 }
 0xb23   :  { %1003 = vst.msk [vmem:[#allocation2] sm:$0xff] %vm183_vm0, %v1001_v53  ;;  %1866 = vst.msk [vmem:[%s2808_s7 + $0x18] sm:$0xff] %vm183_vm0, %v1001_v53 }
 0xb2a   :  { %v1013_v54 = vld [vmem:[#allocation2] sm:$0xff] }
 0xb2b   :  { %2106 = vmatmul.mubr.msk.f32.vlgmr.msra.gmra.mrb[10].mxu1 %vm183_vm0, %v1013_v54 }
 0xb2c   :  { %2246 = vmatpush3.bf16.msra.mxu1 %v2464_v18  ;;  %2127 = vmatprep.mubr.msk.f32.mxu1 %vm2364_vm1, %v2365_v4 }
 0xb2d   :  { %2247 = vmatprep.subr.bf16.mxu1 %v2363_v0 }
 0xb30   :  { %2249 = vmatpush3.bf16.msra.mxu1 %v2478_v21 }
 0xb31   :  { %2256 = vmatprep.subr.bf16.mxu1 %v2363_v0 }
 0xb33   :  { %v1095_v59 = vpop.permute.xlu0 %1094 }
 0xb8d   :  { %v1086_v55 = vpop.f32.mrb[14].mxu0 }
 0xb8e   :  { %v1087_v56 = vadd.f32 %v2497_v23, %v1086_v55  ;;  %v2096_v57 = vpop.f32.mrb[15].mxu0 }
 0xb90   :  { %2323 = vtanh.f32 %v1087_v56 }
 0xb9a   :  { %v2324_v58 = vpop.eup %2323 }
 0xb9b   :  { %v1091_v60 = vsub.f32 %v1014_v52, %v2324_v58  ;;  %v1097_v61 = vmul.f32 %v2324_v58, %v1095_v59  ;;  %v1880_v59 = vld [vmem:[%s2804_s1 + $0x30] sm:$0xff] }
 0xb9d   :  { %v1098_v7 = vadd.f32 %v1097_v61, %v1091_v60 }
 0xb9f   :  { %1183 = vrot.lane.b32.xlu0 %v1098_v7, %s2367_s6 }
 0xbfe   :  { %v1170_v9 = vpop.f32.mrb[10].mxu1 }
 0xbff   :  { %v1174_v10 = vadd.f32 %v1170_v9, %v157_v8  ;;  %v2107_v63 = vpop.f32.mrb[11].mxu1 }
 0xc01   :  { %2325 = vtanh.f32 %v1174_v10  ;;  %v1871_v13 = vmul.f32 -1.442695, %v1174_v10 }
 0xc03   :  { %2327 = vpow2.f32 %v1871_v13 }
 0xc0b   :  { %v2326_v11 = vpop.eup %2325 }
 0xc0c   :  { %1188 = vrot.lane.b32.xlu1 %v2326_v11, %s2367_s6 }
 0xc0d   :  { %v2328_v14 = vpop.eup %2327 }
 0xc0e   :  { %v1178_v15 = vadd.f32 1.0, %v2328_v14 }
 0xc10   :  { %2329 = vrcp.f32 %v1178_v15 }
 0xc11   :  { %v1184_v20 = vpop.permute.xlu0 %1183 }
 0xc1a   :  { %v2330_v16 = vpop.eup %2329 }
 0xc1b   :  { %v1186_v22 = vmul.f32 %v2330_v16, %v1184_v20 }
 0xc7e   :  { %v1189_v17 = vpop.permute.xlu1 %1188 }
 0xc7f   :  { %v1191_v19 = vmul.f32 %v2330_v16, %v1189_v17 }
 0xc81   :  { %1193 = vrot.lane.b32.xlu1 %v1191_v19, %s2367_s6 }
 0xcf3   :  { %v1194_v2 = vpop.permute.xlu1 %1193 }
 0xcf4   :  { %v1196_v25 = vadd.f32 %v1194_v2, %v1186_v22 }
 0xcf6   :  { %2331 = vtanh.f32 %v1196_v25 }
 0xd00   :  { %v2332_v26 = vpop.eup %2331 }
 0xd01   :  { %1199 = vrot.lane.b32.xlu0 %v2332_v26, %s2367_s6 }
 0xd05   :  { %1209 = vrot.lane.b32.xlu0 %v1196_v25, %s2368_s2 }
 0xd73   :  { %v1200_v27 = vpop.permute.xlu0 %1199 }
 0xd74   :  { %v1202_v28 = vmul.f32 %v2330_v16, %v1200_v27 }
 0xd76   :  { %1204 = vrot.lane.b32.xlu1 %v1202_v28, %s2369_s20 }
 0xd77   :  { %v1210_v30 = vpop.permute.xlu0 %1209 }
 0xd78   :  { %1212 = vst.msk [vmem:[#allocation3] sm:$0xff] %vm183_vm0, %v1210_v30  ;;  %1873 = vst.msk [vmem:[%s2807_s8 + $0x20] sm:$0xff] %vm183_vm0, %v1210_v30 }
 0xd7a   :  { %1298 = vperm.xlu1 %2282, %v1874_v31  }
 0xd7f   :  { %v1218_v32 = vld [vmem:[#allocation3] sm:$0xff] }
 0xd80   :  { %2117 = vmatmul.mubr.msk.f32.vlgmr.msra.gmra.mrb[16].mxu0 %vm183_vm0, %v1218_v32 }
 0xd81   :  { %2252 = vmatpush3.bf16.msra.mxu0 %v2431_v5  ;;  %2138 = vmatprep.mubr.msk.f32.mxu0 %vm2364_vm1, %v2365_v4 }
 0xd82   :  { %2253 = vmatprep.subr.bf16.mxu0 %v2363_v0 }
 0xd85   :  { %2255 = vmatpush3.bf16.msra.mxu0 %v2446_v12 }
 0xd86   :  { %2262 = vmatprep.subr.bf16.mxu0 %v2363_v0 }
 0xde8   :  { %v1205_v33 = vpop.permute.xlu1 %1204 }
 0xde9   :  { %1207 = vst.msk [vmem:[#allocation2] sm:$0xff] %vm183_vm0, %v1205_v33  ;;  %1872 = vst.msk [vmem:[%s2808_s7 + $0x20] sm:$0xff] %vm183_vm0, %v1205_v33 }
 0xdf0   :  { %v1217_v34 = vld [vmem:[#allocation2] sm:$0xff] }
 0xdf1   :  { %2128 = vmatmul.mubr.msk.f32.vlgmr.msra.gmra.mrb[12].mxu1 %vm183_vm0, %v1217_v34 }
 0xdf2   :  { %2258 = vmatpush3.bf16.msra.mxu1 %v2464_v18  ;;  %2149 = vmatprep.mubr.msk.f32.mxu1 %vm2364_vm1, %v2365_v4 }
 0xdf3   :  { %2259 = vmatprep.subr.bf16.mxu1 %v2363_v0 }
 0xdf6   :  { %2261 = vmatpush3.bf16.msra.mxu1 %v2478_v21 }
 0xdf7   :  { %2268 = vmatprep.subr.bf16.mxu1 %v2363_v0 }
 0xdf9   :  { %v1299_v38 = vpop.permute.xlu1 %1298 }
 0xe53   :  { %v1290_v35 = vpop.f32.mrb[16].mxu0 }
 0xe54   :  { %v1291_v24 = vadd.f32 %v2497_v23, %v1290_v35  ;;  %v2118_v36 = vpop.f32.mrb[17].mxu0 }
 0xe56   :  { %2333 = vtanh.f32 %v1291_v24 }
 0xe60   :  { %v2334_v37 = vpop.eup %2333 }
 0xe61   :  { %v1295_v39 = vsub.f32 %v1218_v32, %v2334_v37  ;;  %v1301_v40 = vmul.f32 %v2334_v37, %v1299_v38  ;;  %v1886_v32 = vld [vmem:[%s2804_s1 + $0x38] sm:$0xff] }
 0xe63   :  { %v1302_v41 = vadd.f32 %v1301_v40, %v1295_v39 }
 0xe65   :  { %1387 = vrot.lane.b32.xlu1 %v1302_v41, %s2367_s6 }
 0xec4   :  { %v1374_v43 = vpop.f32.mrb[12].mxu1 }
 0xec5   :  { %v1378_v44 = vadd.f32 %v1374_v43, %v162_v42  ;;  %v2129_v45 = vpop.f32.mrb[13].mxu1  ;;  %v172_v43 = vadd.f32 %v2563_v3, %v2505_v29 }
 0xec7   :  { %2335 = vtanh.f32 %v1378_v44  ;;  %v1877_v46 = vmul.f32 -1.442695, %v1378_v44 }
 0xec9   :  { %2337 = vpow2.f32 %v1877_v46 }
 0xed1   :  { %v2336_v62 = vpop.eup %2335 }
 0xed2   :  { %1392 = vrot.lane.b32.xlu0 %v2336_v62, %s2367_s6 }
 0xed3   :  { %v2338_v47 = vpop.eup %2337 }
 0xed4   :  { %v1382_v48 = vadd.f32 1.0, %v2338_v47 }
 0xed6   :  { %2339 = vrcp.f32 %v1382_v48 }
 0xed7   :  { %v1388_v52 = vpop.permute.xlu1 %1387 }
 0xee0   :  { %v2340_v49 = vpop.eup %2339 }
 0xee1   :  { %v1390_v53 = vmul.f32 %v2340_v49, %v1388_v52 }
 0xf44   :  { %v1393_v50 = vpop.permute.xlu0 %1392 }
 0xf45   :  { %v1395_v51 = vmul.f32 %v2340_v49, %v1393_v50 }
 0xf47   :  { %1397 = vrot.lane.b32.xlu0 %v1395_v51, %s2367_s6 }
 0xfb9   :  { %v1398_v1 = vpop.permute.xlu0 %1397 }
 0xfba   :  { %v1400_v54 = vadd.f32 %v1398_v1, %v1390_v53 }
 0xfbc   :  { %2341 = vtanh.f32 %v1400_v54 }
 0xfc6   :  { %v2342_v55 = vpop.eup %2341 }
 0xfc7   :  { %1403 = vrot.lane.b32.xlu1 %v2342_v55, %s2367_s6 }
 0xfcb   :  { %1413 = vrot.lane.b32.xlu1 %v1400_v54, %s2368_s2 }
0x1039   :  { %v1404_v56 = vpop.permute.xlu1 %1403 }
0x103a   :  { %v1406_v57 = vmul.f32 %v2340_v49, %v1404_v56 }
0x103c   :  { %1408 = vrot.lane.b32.xlu0 %v1406_v57, %s2369_s20 }
0x103d   :  { %v1414_v58 = vpop.permute.xlu1 %1413 }
0x103e   :  { %1416 = vst.msk [vmem:[#allocation3] sm:$0xff] %vm183_vm0, %v1414_v58  ;;  %1879 = vst.msk [vmem:[%s2807_s8 + $0x28] sm:$0xff] %vm183_vm0, %v1414_v58 }
0x1040   :  { %1502 = vperm.xlu0 %2281, %v1880_v59  }
0x1045   :  { %v1422_v60 = vld [vmem:[#allocation3] sm:$0xff] }
0x1046   :  { %2139 = vmatmul.mubr.msk.f32.vlgmr.msra.gmra.mrb[18].mxu0 %vm183_vm0, %v1422_v60 }
0x1047   :  { %2264 = vmatpush3.bf16.msra.mxu0 %v2431_v5  ;;  %2160 = vmatprep.mubr.msk.f32.mxu0 %vm2364_vm1, %v2365_v4 }
0x1048   :  { %2265 = vmatprep.subr.bf16.mxu0 %v2363_v0 }
0x104b   :  { %2267 = vmatpush3.bf16.msra.mxu0 %v2446_v12 }
0x10ae   :  { %v1409_v61 = vpop.permute.xlu0 %1408 }
0x10af   :  { %1411 = vst.msk [vmem:[#allocation2] sm:$0xff] %vm183_vm0, %v1409_v61  ;;  %1878 = vst.msk [vmem:[%s2808_s7 + $0x28] sm:$0xff] %vm183_vm0, %v1409_v61 }
0x10b6   :  { %v1421_v7 = vld [vmem:[#allocation2] sm:$0xff] }
0x10b7   :  { %2150 = vmatmul.mubr.msk.f32.vlgmr.msra.gmra.mrb[14].mxu1 %vm183_vm0, %v1421_v7 }
0x10b8   :  { %2270 = vmatpush3.bf16.msra.mxu1 %v2464_v18  ;;  %2171 = vmatprep.mubr.msk.f32.mxu1 %vm2364_vm1, %v2365_v4  ;;  %v167_v18 = vadd.f32 %v2505_v29, %v2565_v6 }
0x10b9   :  { %2271 = vmatprep.subr.bf16.mxu1 %v2363_v0 }
0x10bc   :  { %2273 = vmatpush3.bf16.msra.mxu1 %v2478_v21 }
0x10bf   :  { %v1503_v10 = vpop.permute.xlu0 %1502 }
0x1119   :  { %v1494_v5 = vpop.f32.mrb[18].mxu0 }
0x111a   :  { %v1495_v12 = vadd.f32 %v2497_v23, %v1494_v5  ;;  %v2140_v8 = vpop.f32.mrb[19].mxu0 }
0x111c   :  { %2343 = vtanh.f32 %v1495_v12 }
0x1126   :  { %v2344_v9 = vpop.eup %2343 }
0x1127   :  { %v1499_v63 = vsub.f32 %v1422_v60, %v2344_v9  ;;  %v1505_v11 = vmul.f32 %v2344_v9, %v1503_v10 }
0x1129   :  { %v1506_v13 = vadd.f32 %v1505_v11, %v1499_v63 }
0x112b   :  { %1591 = vrot.lane.b32.xlu0 %v1506_v13, %s2367_s6 }
0x118a   :  { %v1578_v4 = vpop.f32.mrb[14].mxu1 }
0x118b   :  { %v1582_v14 = vadd.f32 %v1578_v4, %v167_v18  ;;  %v2151_v0 = vpop.f32.mrb[15].mxu1 }
0x118d   :  { %2345 = vtanh.f32 %v1582_v14  ;;  %v1883_v15 = vmul.f32 -1.442695, %v1582_v14 }
0x118f   :  { %2347 = vpow2.f32 %v1883_v15 }
0x1197   :  { %v2346_v21 = vpop.eup %2345 }
0x1198   :  { %1596 = vrot.lane.b32.xlu1 %v2346_v21, %s2367_s6 }
0x1199   :  { %v2348_v16 = vpop.eup %2347 }
0x119a   :  { %v1586_v17 = vadd.f32 1.0, %v2348_v16 }
0x119c   :  { %2349 = vrcp.f32 %v1586_v17 }
0x119d   :  { %v1592_v2 = vpop.permute.xlu0 %1591 }
0x11a6   :  { %v2350_v19 = vpop.eup %2349 }
0x11a7   :  { %v1594_v25 = vmul.f32 %v2350_v19, %v1592_v2 }
0x120a   :  { %v1597_v20 = vpop.permute.xlu1 %1596 }
0x120b   :  { %v1599_v22 = vmul.f32 %v2350_v19, %v1597_v20 }
0x120d   :  { %1601 = vrot.lane.b32.xlu1 %v1599_v22, %s2367_s6 }
0x127f   :  { %v1602_v6 = vpop.permute.xlu1 %1601 }
0x1280   :  { %v1604_v26 = vadd.f32 %v1602_v6, %v1594_v25 }
0x1282   :  { %2351 = vtanh.f32 %v1604_v26 }
0x128c   :  { %v2352_v27 = vpop.eup %2351 }
0x128d   :  { %1607 = vrot.lane.b32.xlu0 %v2352_v27, %s2367_s6 }
0x1291   :  { %1617 = vrot.lane.b32.xlu0 %v1604_v26, %s2368_s2 }
0x12ff   :  { %v1608_v28 = vpop.permute.xlu0 %1607 }
0x1300   :  { %v1610_v30 = vmul.f32 %v2350_v19, %v1608_v28 }
0x1302   :  { %1612 = vrot.lane.b32.xlu1 %v1610_v30, %s2369_s20 }
0x1303   :  { %v1618_v31 = vpop.permute.xlu0 %1617 }
0x1304   :  { %1620 = vst.msk [vmem:[#allocation3] sm:$0xff] %vm183_vm0, %v1618_v31  ;;  %1885 = vst.msk [vmem:[%s2807_s8 + $0x30] sm:$0xff] %vm183_vm0, %v1618_v31 }
0x1306   :  { %1706 = vperm.xlu1 %2282, %v1886_v32  }
0x130b   :  { %v1626_v33 = vld [vmem:[#allocation3] sm:$0xff] }
0x130c   :  { %2161 = vmatmul.mubr.msk.f32.vlgmr.msra.gmra.mrb[20].mxu0 %vm183_vm0, %v1626_v33 }
0x1374   :  { %v1613_v34 = vpop.permute.xlu1 %1612 }
0x1375   :  { %1615 = vst.msk [vmem:[#allocation2] sm:$0xff] %vm183_vm0, %v1613_v34  ;;  %1884 = vst.msk [vmem:[%s2808_s7 + $0x30] sm:$0xff] %vm183_vm0, %v1613_v34 }
0x137c   :  { %v1625_v35 = vld [vmem:[#allocation2] sm:$0xff] }
0x137d   :  { %2172 = vmatmul.mubr.msk.f32.vlgmr.msra.gmra.mrb[16].mxu1 %vm183_vm0, %v1625_v35 }
0x1385   :  { %v1707_v39 = vpop.permute.xlu1 %1706 }
0x13df   :  { %v1698_v24 = vpop.f32.mrb[20].mxu0 }
0x13e0   :  { %v1699_v36 = vadd.f32 %v2497_v23, %v1698_v24  ;;  %v2162_v37 = vpop.f32.mrb[21].mxu0 }
0x13e2   :  { %2353 = vtanh.f32 %v1699_v36 }
0x13ec   :  { %v2354_v38 = vpop.eup %2353 }
0x13ed   :  { %v1703_v40 = vsub.f32 %v1626_v33, %v2354_v38  ;;  %v1709_v41 = vmul.f32 %v2354_v38, %v1707_v39 }
0x13ef   :  { %v1710_v42 = vadd.f32 %v1709_v41, %v1703_v40 }
0x13f1   :  { %1795 = vrot.lane.b32.xlu1 %v1710_v42, %s2367_s6 }
0x1450   :  { %v1782_v44 = vpop.f32.mrb[16].mxu1 }
0x1451   :  { %v1786_v45 = vadd.f32 %v1782_v44, %v172_v43  ;;  %v2173_v62 = vpop.f32.mrb[17].mxu1 }
0x1453   :  { %2355 = vtanh.f32 %v1786_v45  ;;  %v1889_v23 = vmul.f32 -1.442695, %v1786_v45 }
0x1455   :  { %2357 = vpow2.f32 %v1889_v23 }
0x145d   :  { %v2356_v46 = vpop.eup %2355 }
0x145e   :  { %1800 = vrot.lane.b32.xlu0 %v2356_v46, %s2367_s6 }
0x145f   :  { %v2358_v47 = vpop.eup %2357 }
0x1460   :  { %v1790_v48 = vadd.f32 1.0, %v2358_v47 }
0x1462   :  { %2359 = vrcp.f32 %v1790_v48 }
0x1463   :  { %v1796_v52 = vpop.permute.xlu1 %1795 }
0x146c   :  { %v2360_v49 = vpop.eup %2359 }
0x146d   :  { %v1798_v53 = vmul.f32 %v2360_v49, %v1796_v52 }
0x14d0   :  { %v1801_v50 = vpop.permute.xlu0 %1800 }
0x14d1   :  { %v1803_v51 = vmul.f32 %v2360_v49, %v1801_v50 }
0x14d3   :  { %1805 = vrot.lane.b32.xlu0 %v1803_v51, %s2367_s6 }
0x1545   :  { %v1806_v29 = vpop.permute.xlu0 %1805 }
0x1546   :  { %v1808_v3 = vadd.f32 %v1806_v29, %v1798_v53 }
0x1548   :  { %2361 = vtanh.f32 %v1808_v3 }
0x1552   :  { %v2362_v1 = vpop.eup %2361 }
0x1553   :  { %1811 = vrot.lane.b32.xlu1 %v2362_v1, %s2367_s6 }
0x1557   :  { %1821 = vrot.lane.b32.xlu1 %v1808_v3, %s2368_s2 }
0x15c5   :  { %v1812_v54 = vpop.permute.xlu1 %1811 }
0x15c6   :  { %v1814_v55 = vmul.f32 %v2360_v49, %v1812_v54 }
0x15c8   :  { %1816 = vrot.lane.b32.xlu0 %v1814_v55, %s2369_s20 }
0x15c9   :  { %v1822_v56 = vpop.permute.xlu1 %1821 }
0x15ca   :  { %1824 = vst.msk [vmem:[#allocation3] sm:$0xff] %vm183_vm0, %v1822_v56  ;;  %1891 = vst.msk [vmem:[%s2807_s8 + $0x38] sm:$0xff] %vm183_vm0, %v1822_v56 }
0x163a   :  { %v1817_v57 = vpop.permute.xlu0 %1816 }
0x163b   :  { %1819 = vst.msk [vmem:[#allocation2] sm:$0xff] %vm183_vm0, %v1817_v57  ;;  %1890 = vst.msk [vmem:[%s2808_s7 + $0x38] sm:$0xff] %vm183_vm0, %v1817_v57 }

// kernel: stacked_tlstm_forward.3
= control target key start
LH: loop header
LB: loop body
LE: loop exit
PB: predicated region body
PF: predicated region fallthrough
CT: control target
= control target key end

     0   :  { %vm47_vm0 = vcmask 261120   ;;  %v2374_v0 = vmov 0.0|0.0   ;;  %vm2375_vm1 = vmmov 0   ;;  %v2376_v4 = vmov 0.0   ;;  %s2379_s24 = smov 96   ;;  %s2380_s25 = smov 64   ;;  %s2817_s5 = inlined_call_operand.vmem [shape: f32[32,32], index: 5, kind: input, shape index: {}]   ;;  %s2818_s2 = inlined_call_operand.vmem [shape: f32[32,128], index: 2, kind: input, shape index: {}]   ;;  %s2819_s0 = inlined_call_operand.vmem [shape: f32[8,8,32], index: 0, kind: input, shape index: {}]   ;;  %s2820_s3 = inlined_call_operand.vmem [shape: f32[32,128], index: 3, kind: input, shape index: {}]   ;;  %s2821_s1 = inlined_call_operand.vmem [shape: f32[8,8,1], index: 1, kind: input, shape index: {}]   ;;  %s2822_s6 = inlined_call_operand.vmem [shape: f32[1,32], index: 6, kind: input, shape index: {}]   ;;  %s2823_s4 = inlined_call_operand.vmem [shape: f32[1,128], index: 4, kind: input, shape index: {}]   ;;  %s2824_s8 = inlined_call_operand.vmem [shape: f32[8,8,32], index: 8, kind: output, shape index: {1}]   ;;  %s2825_s7 = inlined_call_operand.vmem [shape: f32[8,8,32], index: 7, kind: output, shape index: {0}]  }
   0x1   :  { %2189 = vmatprep.subr.bf16.mxu1 %v2374_v0  ;;  %v191_v1 = vld [vmem:[%s2817_s5] sm:$0xff]  ;;  %v192_v2 = vld [vmem:[%s2817_s5 + $0x8] sm:$0xff]  ;;  %2013 = vmatprep.mubr.msk.f32.mxu1 %vm2375_vm1, %v2376_v4  ;;  %186 = vst.msk [vmem:[#allocation3] sm:$0xff] %vm47_vm0, %v2376_v4  ;;  %185 = vst.msk [vmem:[#allocation2] sm:$0xff] %vm47_vm0, %v2376_v4  ;;  %v2377_v9 = vmov 0  }
   0x2   :  { %v36_v3 = vld [vmem:[%s2818_s2] sm:$0xff]  ;;  %v2442_v5 = vpack.c.bf16 %v192_v2, %v191_v1  ;;  %v37_v6 = vld [vmem:[%s2818_s2 + $0x8] sm:$0xff]  ;;  %v193_v7 = vld [vmem:[%s2817_s5 + $0x10] sm:$0xff]  ;;  %2292 = vset.pattern.permute.xlu0 %v2377_v9  ;;  %2293 = vset.pattern.permute.xlu1 %v2377_v9 }
   0x3   :  { %v194_v8 = vld [vmem:[%s2817_s5 + $0x18] sm:$0xff]  ;;  %v2181_v10 = vpack.c.bf16 %v37_v6, %v36_v3  ;;  %v38_v11 = vld [vmem:[%s2818_s2 + $0x10] sm:$0xff]  ;;  %v28_v15 = vld [vmem:[%s2819_s0] sm:$0xff] }
   0x4   :  { %v39_v12 = vld [vmem:[%s2818_s2 + $0x18] sm:$0xff]  ;;  %2191 = vmatpush3.bf16.msra.mxu1 %v2442_v5  ;;  %v2460_v13 = vpack.c.bf16 %v194_v8, %v193_v7  ;;  %v187_v16 = vld [vmem:[%s2820_s3] sm:$0xff]  ;;  %v188_v17 = vld [vmem:[%s2820_s3 + $0x8] sm:$0xff]  ;;  %1993 = vmatprep.mubr.msk.f32.mxu0 %vm47_vm0, %v28_v15 }
   0x5   :  { %v2185_v14 = vpack.c.bf16 %v39_v12, %v38_v11  ;;  %2182 = vmatprep.subr.bf16.mxu0 %v2181_v10  ;;  %2192 = vmatprep.subr.bf16.mxu1 %v2374_v0  ;;  %v198_v18 = vld [vmem:[%s2821_s1] sm:$0xff]  ;;  %v2477_v20 = vpack.c.bf16 %v188_v17, %v187_v16  ;;  %v189_v21 = vld [vmem:[%s2820_s3 + $0x10] sm:$0xff]  ;;  %v190_v22 = vld [vmem:[%s2820_s3 + $0x18] sm:$0xff] }
   0x6   :  { %2184 = vmatpush3.bf16.msra.mxu0 %v2181_v10  ;;  %282 = vperm.xlu0 %2292, %v198_v18   ;;  %v29_v23 = vld [vmem:[%s2819_s0 + $0x8] sm:$0xff]  ;;  %v2492_v24 = vpack.c.bf16 %v190_v22, %v189_v21  ;;  %v2514_v26 = vld [vmem:[%s2822_s6] ss:$0 sm:$0xff]  ;;  %s2378_s6 = smov 32   ;;  %v30_v49 = vld [vmem:[%s2819_s0 + $0x10] sm:$0xff] }
   0x7   :  { %2186 = vmatprep.subr.bf16.mxu0 %v2185_v14  ;;  %v2522_v31 = vld [vmem:[%s2823_s4] ss:$0 sm:$0xff]  ;;  %v31_v53 = vld [vmem:[%s2819_s0 + $0x18] sm:$0xff]  ;;  %v33_v56 = vld [vmem:[%s2819_s0 + $0x28] sm:$0xff] }
   0x8   :  { %2194 = vmatpush3.bf16.msra.mxu1 %v2460_v13  ;;  %v197_v19 = vld [vmem:[#allocation3] sm:$0xff]  ;;  %v196_v25 = vld [vmem:[#allocation2] sm:$0xff]  ;;  %v34_v57 = vld [vmem:[%s2819_s0 + $0x30] sm:$0xff] }
   0x9   :  { %2195 = vmatprep.subr.bf16.mxu1 %v2374_v0  ;;  %v32_v55 = vld [vmem:[%s2819_s0 + $0x20] sm:$0xff]  ;;  %v35_v58 = vld [vmem:[%s2819_s0 + $0x38] sm:$0xff]  ;;  %v1851_v63 = vld [vmem:[%s2821_s1 + $0x8] sm:$0xff] }
   0xa   :  { %2188 = vmatpush3.bf16.msra.mxu0 %v2185_v14 }
   0xb   :  { %2014 = vmatmul.mubr.msk.f32.vlgmr.msra.gmra.mrb[0].mxu1 %vm47_vm0, %v197_v19  ;;  %2201 = vmatprep.subr.bf16.mxu0 %v2374_v0 }
   0xc   :  { %2197 = vmatpush3.bf16.msra.mxu1 %v2477_v20  ;;  %2024 = vmatprep.mubr.msk.f32.mxu1 %vm2375_vm1, %v2376_v4 }
   0xd   :  { %1994 = vmatmul.mubr.msk.f32.vlgmr.msra.gmra.mrb[0].mxu0 %vm47_vm0, %v29_v23  ;;  %2198 = vmatprep.subr.bf16.mxu1 %v2374_v0 }
   0xe   :  { %2203 = vmatpush3.bf16.msra.mxu0 %v2442_v5  ;;  %1996 = vmatprep.mubr.msk.f32.mxu0 %vm47_vm0, %v30_v49 }
   0xf   :  { %2204 = vmatprep.subr.bf16.mxu0 %v2374_v0 }
  0x10   :  { %2200 = vmatpush3.bf16.msra.mxu1 %v2492_v24 }
  0x11   :  { %2207 = vmatprep.subr.bf16.mxu1 %v2374_v0  ;;  %1997 = vmatmul.mubr.msk.f32.gmra.mrb[2].mxu0 %vm47_vm0, %v31_v53 }
  0x12   :  { %2206 = vmatpush3.bf16.msra.mxu0 %v2460_v13  ;;  %1999 = vmatprep.mubr.msk.f32.mxu0 %vm47_vm0, %v32_v55 }
  0x13   :  { %2025 = vmatmul.mubr.msk.f32.vlgmr.msra.gmra.mrb[2].mxu1 %vm47_vm0, %v196_v25  ;;  %2213 = vmatprep.subr.bf16.mxu0 %v2374_v0 }
  0x14   :  { %2209 = vmatpush3.bf16.msra.mxu1 %v2477_v20  ;;  %2046 = vmatprep.mubr.msk.f32.mxu1 %vm2375_vm1, %v2376_v4 }
  0x15   :  { %2210 = vmatprep.subr.bf16.mxu1 %v2374_v0  ;;  %2000 = vmatmul.mubr.msk.f32.gmra.mrb[4].mxu0 %vm47_vm0, %v33_v56 }
  0x16   :  { %2002 = vmatprep.mubr.msk.f32.mxu0 %vm47_vm0, %v34_v57 }
  0x18   :  { %2212 = vmatpush3.bf16.msra.mxu1 %v2492_v24 }
  0x19   :  { %2219 = vmatprep.subr.bf16.mxu1 %v2374_v0  ;;  %2003 = vmatmul.mubr.msk.f32.gmra.mrb[6].mxu0 %vm47_vm0, %v35_v58 }
  0x1a   :  { %2035 = vmatprep.mubr.msk.f32.mxu0 %vm2375_vm1, %v2376_v4 }
  0x85   :  { %v283_v37 = vpop.permute.xlu0 %282 }
  0xde   :  { %v274_v27 = vpop.f32.mrb[0].mxu1 }
  0xdf   :  { %v275_v28 = vadd.f32 %v2514_v26, %v274_v27  ;;  %v2015_v29 = vpop.f32.mrb[1].mxu1 }
  0xe0   :  { %v2517_v30 = vpop.f32.mrb[0].mxu0 }
  0xe1   :  { %2294 = vtanh.f32 %v275_v28  ;;  %v138_v32 = vpop.f32.mrb[1].mxu0  ;;  %v144_v22 = vadd.f32 %v2517_v30, %v2522_v31 }
  0xe2   :  { %v139_v33 = vadd.f32 %v2522_v31, %v138_v32 }
  0xe4   :  { %v2572_v2 = vpop.f32.mrb[2].mxu0 }
  0xe5   :  { %v2574_v3 = vpop.f32.mrb[3].mxu0 }
  0xe6   :  { %v357_v34 = vpop.f32.mrb[2].mxu1  ;;  %v149_v56 = vadd.f32 %v2522_v31, %v2574_v3 }
  0xe7   :  { %v361_v35 = vadd.f32 %v357_v34, %v139_v33  ;;  %v2026_v36 = vpop.f32.mrb[3].mxu1 }
  0xe8   :  { %v2576_v6 = vpop.f32.mrb[4].mxu0 }
  0xe9   :  { %2296 = vtanh.f32 %v361_v35  ;;  %v1850_v43 = vmul.f32 -1.442695, %v361_v35  ;;  %v2578_v7 = vpop.f32.mrb[5].mxu0 }
  0xeb   :  { %v2295_v38 = vpop.eup %2294  ;;  %2298 = vpow2.f32 %v1850_v43 }
  0xec   :  { %v285_v39 = vmul.f32 %v2295_v38, %v283_v37  ;;  %v279_v40 = vsub.f32 %v197_v19, %v2295_v38  ;;  %v2580_v8 = vpop.f32.mrb[6].mxu0 }
  0xed   :  { %v2582_v9 = vpop.f32.mrb[7].mxu0 }
  0xee   :  { %v286_v41 = vadd.f32 %v285_v39, %v279_v40 }
  0xf0   :  { %370 = vrot.lane.b32.xlu1 %v286_v41, %s2378_s6 }
  0xf3   :  { %v2297_v42 = vpop.eup %2296 }
  0xf4   :  { %375 = vrot.lane.b32.xlu0 %v2297_v42, %s2378_s6 }
  0xf5   :  { %v2299_v44 = vpop.eup %2298 }
  0xf6   :  { %v365_v45 = vadd.f32 1.0, %v2299_v44  ;;  %v1857_v44 = vld [vmem:[%s2821_s1 + $0x10] sm:$0xff] }
  0xf8   :  { %2300 = vrcp.f32 %v365_v45 }
 0x102   :  { %v2301_v46 = vpop.eup %2300 }
 0x162   :  { %v371_v50 = vpop.permute.xlu1 %370 }
 0x163   :  { %v373_v51 = vmul.f32 %v2301_v46, %v371_v50 }
 0x166   :  { %v376_v47 = vpop.permute.xlu0 %375 }
 0x167   :  { %v378_v48 = vmul.f32 %v2301_v46, %v376_v47 }
 0x169   :  { %380 = vrot.lane.b32.xlu1 %v378_v48, %s2378_s6 }
 0x1db   :  { %v381_v52 = vpop.permute.xlu1 %380 }
 0x1dc   :  { %v383_v54 = vadd.f32 %v381_v52, %v373_v51 }
 0x1de   :  { %2302 = vtanh.f32 %v383_v54 }
 0x1e8   :  { %v2303_v59 = vpop.eup %2302 }
 0x1e9   :  { %386 = vrot.lane.b32.xlu0 %v2303_v59, %s2378_s6 }
 0x1ed   :  { %396 = vrot.lane.b32.xlu0 %v383_v54, %s2379_s24 }
 0x25b   :  { %v387_v60 = vpop.permute.xlu0 %386 }
 0x25c   :  { %v389_v61 = vmul.f32 %v2301_v46, %v387_v60 }
 0x25e   :  { %391 = vrot.lane.b32.xlu1 %v389_v61, %s2380_s25 }
 0x25f   :  { %v397_v62 = vpop.permute.xlu0 %396 }
 0x260   :  { %399 = vst.msk [vmem:[#allocation3] sm:$0xff] %vm47_vm0, %v397_v62  ;;  %401 = vst.msk [vmem:[%s2824_s8] sm:$0xff] %vm47_vm0, %v397_v62 }
 0x262   :  { %483 = vperm.xlu1 %2293, %v1851_v63  }
 0x267   :  { %v403_v1 = vld [vmem:[#allocation3] sm:$0xff] }
 0x268   :  { %2036 = vmatmul.mubr.msk.f32.vlgmr.msra.gmra.mrb[8].mxu0 %vm47_vm0, %v403_v1 }
 0x269   :  { %2215 = vmatpush3.bf16.msra.mxu0 %v2442_v5  ;;  %2057 = vmatprep.mubr.msk.f32.mxu0 %vm2375_vm1, %v2376_v4 }
 0x26a   :  { %2216 = vmatprep.subr.bf16.mxu0 %v2374_v0 }
 0x26d   :  { %2218 = vmatpush3.bf16.msra.mxu0 %v2460_v13 }
 0x26e   :  { %2225 = vmatprep.subr.bf16.mxu0 %v2374_v0 }
 0x2d0   :  { %v392_v10 = vpop.permute.xlu1 %391 }
 0x2d1   :  { %394 = vst.msk [vmem:[#allocation2] sm:$0xff] %vm47_vm0, %v392_v10  ;;  %400 = vst.msk [vmem:[%s2825_s7] sm:$0xff] %vm47_vm0, %v392_v10 }
 0x2d8   :  { %v402_v11 = vld [vmem:[#allocation2] sm:$0xff] }
 0x2d9   :  { %2047 = vmatmul.mubr.msk.f32.vlgmr.msra.gmra.mrb[4].mxu1 %vm47_vm0, %v402_v11 }
 0x2da   :  { %2221 = vmatpush3.bf16.msra.mxu1 %v2477_v20  ;;  %2068 = vmatprep.mubr.msk.f32.mxu1 %vm2375_vm1, %v2376_v4 }
 0x2db   :  { %2222 = vmatprep.subr.bf16.mxu1 %v2374_v0 }
 0x2de   :  { %2224 = vmatpush3.bf16.msra.mxu1 %v2492_v24 }
 0x2df   :  { %2231 = vmatprep.subr.bf16.mxu1 %v2374_v0 }
 0x2e1   :  { %v484_v16 = vpop.permute.xlu1 %483 }
 0x33b   :  { %v475_v12 = vpop.f32.mrb[8].mxu0 }
 0x33c   :  { %v476_v14 = vadd.f32 %v2514_v26, %v475_v12  ;;  %v2037_v15 = vpop.f32.mrb[9].mxu0 }
 0x33e   :  { %2304 = vtanh.f32 %v476_v14 }
 0x348   :  { %v2305_v17 = vpop.eup %2304 }
 0x349   :  { %v480_v18 = vsub.f32 %v403_v1, %v2305_v17  ;;  %v486_v19 = vmul.f32 %v2305_v17, %v484_v16 }
 0x34b   :  { %v487_v21 = vadd.f32 %v486_v19, %v480_v18 }
 0x34d   :  { %572 = vrot.lane.b32.xlu1 %v487_v21, %s2378_s6  ;;  %v1863_v21 = vld [vmem:[%s2821_s1 + $0x18] sm:$0xff] }
 0x3ac   :  { %v559_v23 = vpop.f32.mrb[4].mxu1 }
 0x3ad   :  { %v563_v25 = vadd.f32 %v559_v23, %v144_v22  ;;  %v2048_v27 = vpop.f32.mrb[5].mxu1 }
 0x3af   :  { %2306 = vtanh.f32 %v563_v25  ;;  %v1854_v29 = vmul.f32 -1.442695, %v563_v25 }
 0x3b1   :  { %2308 = vpow2.f32 %v1854_v29 }
 0x3b9   :  { %v2307_v28 = vpop.eup %2306 }
 0x3ba   :  { %577 = vrot.lane.b32.xlu0 %v2307_v28, %s2378_s6 }
 0x3bb   :  { %v2309_v32 = vpop.eup %2308 }
 0x3bc   :  { %v567_v33 = vadd.f32 1.0, %v2309_v32 }
 0x3be   :  { %2310 = vrcp.f32 %v567_v33 }
 0x3bf   :  { %v573_v37 = vpop.permute.xlu1 %572 }
 0x3c8   :  { %v2311_v34 = vpop.eup %2310 }
 0x3c9   :  { %v575_v38 = vmul.f32 %v2311_v34, %v573_v37  ;;  %v154_v37 = vadd.f32 %v2572_v2, %v2522_v31 }
 0x42c   :  { %v578_v35 = vpop.permute.xlu0 %577 }
 0x42d   :  { %v580_v36 = vmul.f32 %v2311_v34, %v578_v35 }
 0x42f   :  { %582 = vrot.lane.b32.xlu0 %v580_v36, %s2378_s6 }
 0x4a1   :  { %v583_v30 = vpop.permute.xlu0 %582 }
 0x4a2   :  { %v585_v39 = vadd.f32 %v583_v30, %v575_v38 }
 0x4a4   :  { %2312 = vtanh.f32 %v585_v39 }
 0x4ae   :  { %v2313_v40 = vpop.eup %2312 }
 0x4af   :  { %588 = vrot.lane.b32.xlu1 %v2313_v40, %s2378_s6 }
 0x4b3   :  { %598 = vrot.lane.b32.xlu1 %v585_v39, %s2379_s24 }
 0x521   :  { %v589_v41 = vpop.permute.xlu1 %588 }
 0x522   :  { %v591_v42 = vmul.f32 %v2311_v34, %v589_v41 }
 0x524   :  { %593 = vrot.lane.b32.xlu0 %v591_v42, %s2380_s25 }
 0x525   :  { %v599_v43 = vpop.permute.xlu1 %598 }
 0x526   :  { %601 = vst.msk [vmem:[#allocation3] sm:$0xff] %vm47_vm0, %v599_v43  ;;  %1856 = vst.msk [vmem:[%s2824_s8 + $0x8] sm:$0xff] %vm47_vm0, %v599_v43 }
 0x528   :  { %687 = vperm.xlu0 %2292, %v1857_v44  }
 0x52d   :  { %v607_v45 = vld [vmem:[#allocation3] sm:$0xff] }
 0x52e   :  { %2058 = vmatmul.mubr.msk.f32.vlgmr.msra.gmra.mrb[10].mxu0 %vm47_vm0, %v607_v45 }
 0x52f   :  { %2227 = vmatpush3.bf16.msra.mxu0 %v2442_v5  ;;  %2079 = vmatprep.mubr.msk.f32.mxu0 %vm2375_vm1, %v2376_v4 }
 0x530   :  { %2228 = vmatprep.subr.bf16.mxu0 %v2374_v0 }
 0x533   :  { %2230 = vmatpush3.bf16.msra.mxu0 %v2460_v13 }
 0x534   :  { %2237 = vmatprep.subr.bf16.mxu0 %v2374_v0 }
 0x596   :  { %v594_v46 = vpop.permute.xlu0 %593 }
 0x597   :  { %596 = vst.msk [vmem:[#allocation2] sm:$0xff] %vm47_vm0, %v594_v46  ;;  %1855 = vst.msk [vmem:[%s2825_s7 + $0x8] sm:$0xff] %vm47_vm0, %v594_v46 }
 0x59e   :  { %v606_v47 = vld [vmem:[#allocation2] sm:$0xff] }
 0x59f   :  { %2069 = vmatmul.mubr.msk.f32.vlgmr.msra.gmra.mrb[6].mxu1 %vm47_vm0, %v606_v47 }
 0x5a0   :  { %2233 = vmatpush3.bf16.msra.mxu1 %v2477_v20  ;;  %2090 = vmatprep.mubr.msk.f32.mxu1 %vm2375_vm1, %v2376_v4 }
 0x5a1   :  { %2234 = vmatprep.subr.bf16.mxu1 %v2374_v0 }
 0x5a4   :  { %2236 = vmatpush3.bf16.msra.mxu1 %v2492_v24 }
 0x5a5   :  { %2243 = vmatprep.subr.bf16.mxu1 %v2374_v0 }
 0x5a7   :  { %v688_v52 = vpop.permute.xlu0 %687 }
 0x601   :  { %v679_v48 = vpop.f32.mrb[10].mxu0 }
 0x602   :  { %v680_v49 = vadd.f32 %v2514_v26, %v679_v48  ;;  %v2059_v50 = vpop.f32.mrb[11].mxu0 }
 0x604   :  { %2314 = vtanh.f32 %v680_v49 }
 0x60e   :  { %v2315_v51 = vpop.eup %2314 }
 0x60f   :  { %v684_v53 = vsub.f32 %v607_v45, %v2315_v51  ;;  %v690_v54 = vmul.f32 %v2315_v51, %v688_v52 }
 0x611   :  { %v691_v55 = vadd.f32 %v690_v54, %v684_v53  ;;  %v1869_v54 = vld [vmem:[%s2821_s1 + $0x20] sm:$0xff] }
 0x613   :  { %776 = vrot.lane.b32.xlu0 %v691_v55, %s2378_s6 }
 0x672   :  { %v763_v57 = vpop.f32.mrb[6].mxu1 }
 0x673   :  { %v767_v58 = vadd.f32 %v763_v57, %v149_v56  ;;  %v2070_v59 = vpop.f32.mrb[7].mxu1 }
 0x675   :  { %2316 = vtanh.f32 %v767_v58  ;;  %v1860_v61 = vmul.f32 -1.442695, %v767_v58 }
 0x677   :  { %2318 = vpow2.f32 %v1860_v61 }
 0x67f   :  { %v2317_v60 = vpop.eup %2316 }
 0x680   :  { %781 = vrot.lane.b32.xlu1 %v2317_v60, %s2378_s6 }
 0x681   :  { %v2319_v62 = vpop.eup %2318 }
 0x682   :  { %v771_v63 = vadd.f32 1.0, %v2319_v62 }
 0x684   :  { %2320 = vrcp.f32 %v771_v63 }
 0x685   :  { %v777_v12 = vpop.permute.xlu0 %776 }
 0x68e   :  { %v2321_v1 = vpop.eup %2320 }
 0x68f   :  { %v779_v14 = vmul.f32 %v2321_v1, %v777_v12 }
 0x6f2   :  { %v782_v10 = vpop.permute.xlu1 %781 }
 0x6f3   :  { %v784_v11 = vmul.f32 %v2321_v1, %v782_v10 }
 0x6f5   :  { %786 = vrot.lane.b32.xlu1 %v784_v11, %s2378_s6  ;;  %v159_v11 = vadd.f32 %v2522_v31, %v2578_v7 }
 0x767   :  { %v787_v3 = vpop.permute.xlu1 %786 }
 0x768   :  { %v789_v15 = vadd.f32 %v787_v3, %v779_v14 }
 0x76a   :  { %2322 = vtanh.f32 %v789_v15 }
 0x774   :  { %v2323_v16 = vpop.eup %2322 }
 0x775   :  { %792 = vrot.lane.b32.xlu0 %v2323_v16, %s2378_s6 }
 0x779   :  { %802 = vrot.lane.b32.xlu0 %v789_v15, %s2379_s24 }
 0x7e7   :  { %v793_v17 = vpop.permute.xlu0 %792 }
 0x7e8   :  { %v795_v18 = vmul.f32 %v2321_v1, %v793_v17 }
 0x7ea   :  { %797 = vrot.lane.b32.xlu1 %v795_v18, %s2380_s25 }
 0x7eb   :  { %v803_v19 = vpop.permute.xlu0 %802 }
 0x7ec   :  { %805 = vst.msk [vmem:[#allocation3] sm:$0xff] %vm47_vm0, %v803_v19  ;;  %1862 = vst.msk [vmem:[%s2824_s8 + $0x10] sm:$0xff] %vm47_vm0, %v803_v19 }
 0x7ee   :  { %891 = vperm.xlu1 %2293, %v1863_v21  }
 0x7f3   :  { %v811_v22 = vld [vmem:[#allocation3] sm:$0xff] }
 0x7f4   :  { %2080 = vmatmul.mubr.msk.f32.vlgmr.msra.gmra.mrb[12].mxu0 %vm47_vm0, %v811_v22 }
 0x7f5   :  { %2239 = vmatpush3.bf16.msra.mxu0 %v2442_v5  ;;  %2101 = vmatprep.mubr.msk.f32.mxu0 %vm2375_vm1, %v2376_v4 }
 0x7f6   :  { %2240 = vmatprep.subr.bf16.mxu0 %v2374_v0 }
 0x7f9   :  { %2242 = vmatpush3.bf16.msra.mxu0 %v2460_v13 }
 0x7fa   :  { %2249 = vmatprep.subr.bf16.mxu0 %v2374_v0 }
 0x85c   :  { %v798_v23 = vpop.permute.xlu1 %797 }
 0x85d   :  { %800 = vst.msk [vmem:[#allocation2] sm:$0xff] %vm47_vm0, %v798_v23  ;;  %1861 = vst.msk [vmem:[%s2825_s7 + $0x10] sm:$0xff] %vm47_vm0, %v798_v23 }
 0x864   :  { %v810_v25 = vld [vmem:[#allocation2] sm:$0xff] }
 0x865   :  { %2091 = vmatmul.mubr.msk.f32.vlgmr.msra.gmra.mrb[8].mxu1 %vm47_vm0, %v810_v25 }
 0x866   :  { %2245 = vmatpush3.bf16.msra.mxu1 %v2477_v20  ;;  %2112 = vmatprep.mubr.msk.f32.mxu1 %vm2375_vm1, %v2376_v4 }
 0x867   :  { %2246 = vmatprep.subr.bf16.mxu1 %v2374_v0 }
 0x86a   :  { %2248 = vmatpush3.bf16.msra.mxu1 %v2492_v24 }
 0x86b   :  { %2255 = vmatprep.subr.bf16.mxu1 %v2374_v0 }
 0x86d   :  { %v892_v33 = vpop.permute.xlu1 %891 }
 0x8c7   :  { %v883_v27 = vpop.f32.mrb[12].mxu0 }
 0x8c8   :  { %v884_v28 = vadd.f32 %v2514_v26, %v883_v27  ;;  %v2081_v29 = vpop.f32.mrb[13].mxu0 }
 0x8ca   :  { %2324 = vtanh.f32 %v884_v28 }
 0x8d4   :  { %v2325_v32 = vpop.eup %2324 }
 0x8d5   :  { %v888_v34 = vsub.f32 %v811_v22, %v2325_v32  ;;  %v894_v35 = vmul.f32 %v2325_v32, %v892_v33 }
 0x8d7   :  { %v895_v36 = vadd.f32 %v894_v35, %v888_v34  ;;  %v1875_v34 = vld [vmem:[%s2821_s1 + $0x28] sm:$0xff] }
 0x8d9   :  { %980 = vrot.lane.b32.xlu1 %v895_v36, %s2378_s6 }
 0x938   :  { %v967_v38 = vpop.f32.mrb[8].mxu1 }
 0x939   :  { %v971_v30 = vadd.f32 %v967_v38, %v154_v37  ;;  %v2092_v39 = vpop.f32.mrb[9].mxu1 }
 0x93b   :  { %2326 = vtanh.f32 %v971_v30  ;;  %v1866_v41 = vmul.f32 -1.442695, %v971_v30 }
 0x93d   :  { %2328 = vpow2.f32 %v1866_v41 }
 0x945   :  { %v2327_v40 = vpop.eup %2326 }
 0x946   :  { %985 = vrot.lane.b32.xlu0 %v2327_v40, %s2378_s6 }
 0x947   :  { %v2329_v42 = vpop.eup %2328 }
 0x948   :  { %v975_v43 = vadd.f32 1.0, %v2329_v42 }
 0x94a   :  { %2330 = vrcp.f32 %v975_v43 }
 0x94b   :  { %v981_v47 = vpop.permute.xlu1 %980 }
 0x954   :  { %v2331_v44 = vpop.eup %2330 }
 0x955   :  { %v983_v48 = vmul.f32 %v2331_v44, %v981_v47 }
 0x9b8   :  { %v986_v45 = vpop.permute.xlu0 %985 }
 0x9b9   :  { %v988_v46 = vmul.f32 %v2331_v44, %v986_v45  ;;  %v164_v45 = vadd.f32 %v2576_v6, %v2522_v31 }
 0x9bb   :  { %990 = vrot.lane.b32.xlu0 %v988_v46, %s2378_s6 }
 0xa2d   :  { %v991_v2 = vpop.permute.xlu0 %990 }
 0xa2e   :  { %v993_v49 = vadd.f32 %v991_v2, %v983_v48 }
 0xa30   :  { %2332 = vtanh.f32 %v993_v49 }
 0xa3a   :  { %v2333_v50 = vpop.eup %2332 }
 0xa3b   :  { %996 = vrot.lane.b32.xlu1 %v2333_v50, %s2378_s6 }
 0xa3f   :  { %1006 = vrot.lane.b32.xlu1 %v993_v49, %s2379_s24 }
 0xaad   :  { %v997_v51 = vpop.permute.xlu1 %996 }
 0xaae   :  { %v999_v52 = vmul.f32 %v2331_v44, %v997_v51 }
 0xab0   :  { %1001 = vrot.lane.b32.xlu0 %v999_v52, %s2380_s25 }
 0xab1   :  { %v1007_v53 = vpop.permute.xlu1 %1006 }
 0xab2   :  { %1009 = vst.msk [vmem:[#allocation3] sm:$0xff] %vm47_vm0, %v1007_v53  ;;  %1868 = vst.msk [vmem:[%s2824_s8 + $0x18] sm:$0xff] %vm47_vm0, %v1007_v53 }
 0xab4   :  { %1095 = vperm.xlu0 %2292, %v1869_v54  }
 0xab9   :  { %v1015_v55 = vld [vmem:[#allocation3] sm:$0xff] }
 0xaba   :  { %2102 = vmatmul.mubr.msk.f32.vlgmr.msra.gmra.mrb[14].mxu0 %vm47_vm0, %v1015_v55 }
 0xabb   :  { %2251 = vmatpush3.bf16.msra.mxu0 %v2442_v5  ;;  %2123 = vmatprep.mubr.msk.f32.mxu0 %vm2375_vm1, %v2376_v4 }
 0xabc   :  { %2252 = vmatprep.subr.bf16.mxu0 %v2374_v0 }
 0xabf   :  { %2254 = vmatpush3.bf16.msra.mxu0 %v2460_v13 }
 0xac0   :  { %2261 = vmatprep.subr.bf16.mxu0 %v2374_v0 }
 0xb22   :  { %v1002_v56 = vpop.permute.xlu0 %1001 }
 0xb23   :  { %1004 = vst.msk [vmem:[#allocation2] sm:$0xff] %vm47_vm0, %v1002_v56  ;;  %1867 = vst.msk [vmem:[%s2825_s7 + $0x18] sm:$0xff] %vm47_vm0, %v1002_v56 }
 0xb2a   :  { %v1014_v57 = vld [vmem:[#allocation2] sm:$0xff] }
 0xb2b   :  { %2113 = vmatmul.mubr.msk.f32.vlgmr.msra.gmra.mrb[10].mxu1 %vm47_vm0, %v1014_v57 }
 0xb2c   :  { %2257 = vmatpush3.bf16.msra.mxu1 %v2477_v20  ;;  %2134 = vmatprep.mubr.msk.f32.mxu1 %vm2375_vm1, %v2376_v4 }
 0xb2d   :  { %2258 = vmatprep.subr.bf16.mxu1 %v2374_v0 }
 0xb30   :  { %2260 = vmatpush3.bf16.msra.mxu1 %v2492_v24 }
 0xb31   :  { %2267 = vmatprep.subr.bf16.mxu1 %v2374_v0 }
 0xb33   :  { %v1096_v62 = vpop.permute.xlu0 %1095 }
 0xb8d   :  { %v1087_v58 = vpop.f32.mrb[14].mxu0 }
 0xb8e   :  { %v1088_v59 = vadd.f32 %v2514_v26, %v1087_v58  ;;  %v2103_v60 = vpop.f32.mrb[15].mxu0 }
 0xb90   :  { %2334 = vtanh.f32 %v1088_v59 }
 0xb9a   :  { %v2335_v61 = vpop.eup %2334 }
 0xb9b   :  { %v1092_v63 = vsub.f32 %v1015_v55, %v2335_v61  ;;  %v1098_v1 = vmul.f32 %v2335_v61, %v1096_v62  ;;  %v1881_v62 = vld [vmem:[%s2821_s1 + $0x30] sm:$0xff] }
 0xb9d   :  { %v1099_v10 = vadd.f32 %v1098_v1, %v1092_v63 }
 0xb9f   :  { %1184 = vrot.lane.b32.xlu0 %v1099_v10, %s2378_s6 }
 0xbfe   :  { %v1171_v12 = vpop.f32.mrb[10].mxu1 }
 0xbff   :  { %v1175_v14 = vadd.f32 %v1171_v12, %v159_v11  ;;  %v2114_v3 = vpop.f32.mrb[11].mxu1 }
 0xc01   :  { %2336 = vtanh.f32 %v1175_v14  ;;  %v1872_v16 = vmul.f32 -1.442695, %v1175_v14 }
 0xc03   :  { %2338 = vpow2.f32 %v1872_v16 }
 0xc0b   :  { %v2337_v15 = vpop.eup %2336 }
 0xc0c   :  { %1189 = vrot.lane.b32.xlu1 %v2337_v15, %s2378_s6 }
 0xc0d   :  { %v2339_v17 = vpop.eup %2338 }
 0xc0e   :  { %v1179_v18 = vadd.f32 1.0, %v2339_v17 }
 0xc10   :  { %2340 = vrcp.f32 %v1179_v18 }
 0xc11   :  { %v1185_v23 = vpop.permute.xlu0 %1184 }
 0xc1a   :  { %v2341_v19 = vpop.eup %2340 }
 0xc1b   :  { %v1187_v25 = vmul.f32 %v2341_v19, %v1185_v23 }
 0xc7e   :  { %v1190_v21 = vpop.permute.xlu1 %1189 }
 0xc7f   :  { %v1192_v22 = vmul.f32 %v2341_v19, %v1190_v21 }
 0xc81   :  { %1194 = vrot.lane.b32.xlu1 %v1192_v22, %s2378_s6 }
 0xcf3   :  { %v1195_v7 = vpop.permute.xlu1 %1194 }
 0xcf4   :  { %v1197_v27 = vadd.f32 %v1195_v7, %v1187_v25 }
 0xcf6   :  { %2342 = vtanh.f32 %v1197_v27 }
 0xd00   :  { %v2343_v28 = vpop.eup %2342 }
 0xd01   :  { %1200 = vrot.lane.b32.xlu0 %v2343_v28, %s2378_s6 }
 0xd05   :  { %1210 = vrot.lane.b32.xlu0 %v1197_v27, %s2379_s24 }
 0xd73   :  { %v1201_v29 = vpop.permute.xlu0 %1200 }
 0xd74   :  { %v1203_v32 = vmul.f32 %v2341_v19, %v1201_v29 }
 0xd76   :  { %1205 = vrot.lane.b32.xlu1 %v1203_v32, %s2380_s25 }
 0xd77   :  { %v1211_v33 = vpop.permute.xlu0 %1210 }
 0xd78   :  { %1213 = vst.msk [vmem:[#allocation3] sm:$0xff] %vm47_vm0, %v1211_v33  ;;  %1874 = vst.msk [vmem:[%s2824_s8 + $0x20] sm:$0xff] %vm47_vm0, %v1211_v33 }
 0xd7a   :  { %1299 = vperm.xlu1 %2293, %v1875_v34  }
 0xd7f   :  { %v1219_v35 = vld [vmem:[#allocation3] sm:$0xff] }
 0xd80   :  { %2124 = vmatmul.mubr.msk.f32.vlgmr.msra.gmra.mrb[16].mxu0 %vm47_vm0, %v1219_v35 }
 0xd81   :  { %2263 = vmatpush3.bf16.msra.mxu0 %v2442_v5  ;;  %2145 = vmatprep.mubr.msk.f32.mxu0 %vm2375_vm1, %v2376_v4 }
 0xd82   :  { %2264 = vmatprep.subr.bf16.mxu0 %v2374_v0 }
 0xd85   :  { %2266 = vmatpush3.bf16.msra.mxu0 %v2460_v13 }
 0xd86   :  { %2273 = vmatprep.subr.bf16.mxu0 %v2374_v0 }
 0xde8   :  { %v1206_v36 = vpop.permute.xlu1 %1205 }
 0xde9   :  { %1208 = vst.msk [vmem:[#allocation2] sm:$0xff] %vm47_vm0, %v1206_v36  ;;  %1873 = vst.msk [vmem:[%s2825_s7 + $0x20] sm:$0xff] %vm47_vm0, %v1206_v36 }
 0xdf0   :  { %v1218_v37 = vld [vmem:[#allocation2] sm:$0xff] }
 0xdf1   :  { %2135 = vmatmul.mubr.msk.f32.vlgmr.msra.gmra.mrb[12].mxu1 %vm47_vm0, %v1218_v37 }
 0xdf2   :  { %2269 = vmatpush3.bf16.msra.mxu1 %v2477_v20  ;;  %2156 = vmatprep.mubr.msk.f32.mxu1 %vm2375_vm1, %v2376_v4 }
 0xdf3   :  { %2270 = vmatprep.subr.bf16.mxu1 %v2374_v0 }
 0xdf6   :  { %2272 = vmatpush3.bf16.msra.mxu1 %v2492_v24 }
 0xdf7   :  { %2279 = vmatprep.subr.bf16.mxu1 %v2374_v0 }
 0xdf9   :  { %v1300_v41 = vpop.permute.xlu1 %1299 }
 0xe53   :  { %v1291_v38 = vpop.f32.mrb[16].mxu0 }
 0xe54   :  { %v1292_v30 = vadd.f32 %v2514_v26, %v1291_v38  ;;  %v2125_v39 = vpop.f32.mrb[17].mxu0 }
 0xe56   :  { %2344 = vtanh.f32 %v1292_v30 }
 0xe60   :  { %v2345_v40 = vpop.eup %2344 }
 0xe61   :  { %v1296_v42 = vsub.f32 %v1219_v35, %v2345_v40  ;;  %v1302_v43 = vmul.f32 %v2345_v40, %v1300_v41  ;;  %v1887_v35 = vld [vmem:[%s2821_s1 + $0x38] sm:$0xff] }
 0xe63   :  { %v1303_v44 = vadd.f32 %v1302_v43, %v1296_v42 }
 0xe65   :  { %1388 = vrot.lane.b32.xlu1 %v1303_v44, %s2378_s6 }
 0xec4   :  { %v1375_v46 = vpop.f32.mrb[12].mxu1 }
 0xec5   :  { %v1379_v47 = vadd.f32 %v1375_v46, %v164_v45  ;;  %v2136_v48 = vpop.f32.mrb[13].mxu1  ;;  %v174_v46 = vadd.f32 %v2580_v8, %v2522_v31 }
 0xec7   :  { %2346 = vtanh.f32 %v1379_v47  ;;  %v1878_v49 = vmul.f32 -1.442695, %v1379_v47 }
 0xec9   :  { %2348 = vpow2.f32 %v1878_v49 }
 0xed1   :  { %v2347_v2 = vpop.eup %2346 }
 0xed2   :  { %1393 = vrot.lane.b32.xlu0 %v2347_v2, %s2378_s6 }
 0xed3   :  { %v2349_v50 = vpop.eup %2348 }
 0xed4   :  { %v1383_v51 = vadd.f32 1.0, %v2349_v50 }
 0xed6   :  { %2350 = vrcp.f32 %v1383_v51 }
 0xed7   :  { %v1389_v55 = vpop.permute.xlu1 %1388 }
 0xee0   :  { %v2351_v52 = vpop.eup %2350 }
 0xee1   :  { %v1391_v56 = vmul.f32 %v2351_v52, %v1389_v55 }
 0xf44   :  { %v1394_v53 = vpop.permute.xlu0 %1393 }
 0xf45   :  { %v1396_v54 = vmul.f32 %v2351_v52, %v1394_v53 }
 0xf47   :  { %1398 = vrot.lane.b32.xlu0 %v1396_v54, %s2378_s6 }
 0xfb9   :  { %v1399_v6 = vpop.permute.xlu0 %1398 }
 0xfba   :  { %v1401_v57 = vadd.f32 %v1399_v6, %v1391_v56 }
 0xfbc   :  { %2352 = vtanh.f32 %v1401_v57 }
 0xfc6   :  { %v2353_v58 = vpop.eup %2352 }
 0xfc7   :  { %1404 = vrot.lane.b32.xlu1 %v2353_v58, %s2378_s6 }
 0xfcb   :  { %1414 = vrot.lane.b32.xlu1 %v1401_v57, %s2379_s24 }
0x1039   :  { %v1405_v59 = vpop.permute.xlu1 %1404 }
0x103a   :  { %v1407_v60 = vmul.f32 %v2351_v52, %v1405_v59 }
0x103c   :  { %1409 = vrot.lane.b32.xlu0 %v1407_v60, %s2380_s25 }
0x103d   :  { %v1415_v61 = vpop.permute.xlu1 %1414 }
0x103e   :  { %1417 = vst.msk [vmem:[#allocation3] sm:$0xff] %vm47_vm0, %v1415_v61  ;;  %1880 = vst.msk [vmem:[%s2824_s8 + $0x28] sm:$0xff] %vm47_vm0, %v1415_v61 }
0x1040   :  { %1503 = vperm.xlu0 %2292, %v1881_v62  }
0x1045   :  { %v1423_v63 = vld [vmem:[#allocation3] sm:$0xff] }
0x1046   :  { %2146 = vmatmul.mubr.msk.f32.vlgmr.msra.gmra.mrb[18].mxu0 %vm47_vm0, %v1423_v63 }
0x1047   :  { %2275 = vmatpush3.bf16.msra.mxu0 %v2442_v5  ;;  %2167 = vmatprep.mubr.msk.f32.mxu0 %vm2375_vm1, %v2376_v4 }
0x1048   :  { %2276 = vmatprep.subr.bf16.mxu0 %v2374_v0 }
0x104b   :  { %2278 = vmatpush3.bf16.msra.mxu0 %v2460_v13 }
0x10ae   :  { %v1410_v1 = vpop.permute.xlu0 %1409 }
0x10af   :  { %1412 = vst.msk [vmem:[#allocation2] sm:$0xff] %vm47_vm0, %v1410_v1  ;;  %1879 = vst.msk [vmem:[%s2825_s7 + $0x28] sm:$0xff] %vm47_vm0, %v1410_v1 }
0x10b6   :  { %v1422_v10 = vld [vmem:[#allocation2] sm:$0xff] }
0x10b7   :  { %2157 = vmatmul.mubr.msk.f32.vlgmr.msra.gmra.mrb[14].mxu1 %vm47_vm0, %v1422_v10 }
0x10b8   :  { %2281 = vmatpush3.bf16.msra.mxu1 %v2477_v20  ;;  %2178 = vmatprep.mubr.msk.f32.mxu1 %vm2375_vm1, %v2376_v4  ;;  %v169_v20 = vadd.f32 %v2522_v31, %v2582_v9 }
0x10b9   :  { %2282 = vmatprep.subr.bf16.mxu1 %v2374_v0 }
0x10bc   :  { %2284 = vmatpush3.bf16.msra.mxu1 %v2492_v24 }
0x10bf   :  { %v1504_v14 = vpop.permute.xlu0 %1503 }
0x1119   :  { %v1495_v5 = vpop.f32.mrb[18].mxu0 }
0x111a   :  { %v1496_v13 = vadd.f32 %v2514_v26, %v1495_v5  ;;  %v2147_v11 = vpop.f32.mrb[19].mxu0 }
0x111c   :  { %2354 = vtanh.f32 %v1496_v13 }
0x1126   :  { %v2355_v12 = vpop.eup %2354 }
0x1127   :  { %v1500_v3 = vsub.f32 %v1423_v63, %v2355_v12  ;;  %v1506_v15 = vmul.f32 %v2355_v12, %v1504_v14 }
0x1129   :  { %v1507_v16 = vadd.f32 %v1506_v15, %v1500_v3 }
0x112b   :  { %1592 = vrot.lane.b32.xlu0 %v1507_v16, %s2378_s6 }
0x118a   :  { %v1579_v4 = vpop.f32.mrb[14].mxu1 }
0x118b   :  { %v1583_v17 = vadd.f32 %v1579_v4, %v169_v20  ;;  %v2158_v0 = vpop.f32.mrb[15].mxu1 }
0x118d   :  { %2356 = vtanh.f32 %v1583_v17  ;;  %v1884_v18 = vmul.f32 -1.442695, %v1583_v17 }
0x118f   :  { %2358 = vpow2.f32 %v1884_v18 }
0x1197   :  { %v2357_v24 = vpop.eup %2356 }
0x1198   :  { %1597 = vrot.lane.b32.xlu1 %v2357_v24, %s2378_s6 }
0x1199   :  { %v2359_v19 = vpop.eup %2358 }
0x119a   :  { %v1587_v21 = vadd.f32 1.0, %v2359_v19 }
0x119c   :  { %2360 = vrcp.f32 %v1587_v21 }
0x119d   :  { %v1593_v7 = vpop.permute.xlu0 %1592 }
0x11a6   :  { %v2361_v22 = vpop.eup %2360 }
0x11a7   :  { %v1595_v27 = vmul.f32 %v2361_v22, %v1593_v7 }
0x120a   :  { %v1598_v23 = vpop.permute.xlu1 %1597 }
0x120b   :  { %v1600_v25 = vmul.f32 %v2361_v22, %v1598_v23 }
0x120d   :  { %1602 = vrot.lane.b32.xlu1 %v1600_v25, %s2378_s6 }
0x127f   :  { %v1603_v9 = vpop.permute.xlu1 %1602 }
0x1280   :  { %v1605_v28 = vadd.f32 %v1603_v9, %v1595_v27 }
0x1282   :  { %2362 = vtanh.f32 %v1605_v28 }
0x128c   :  { %v2363_v29 = vpop.eup %2362 }
0x128d   :  { %1608 = vrot.lane.b32.xlu0 %v2363_v29, %s2378_s6 }
0x1291   :  { %1618 = vrot.lane.b32.xlu0 %v1605_v28, %s2379_s24 }
0x12ff   :  { %v1609_v32 = vpop.permute.xlu0 %1608 }
0x1300   :  { %v1611_v33 = vmul.f32 %v2361_v22, %v1609_v32 }
0x1302   :  { %1613 = vrot.lane.b32.xlu1 %v1611_v33, %s2380_s25 }
0x1303   :  { %v1619_v34 = vpop.permute.xlu0 %1618 }
0x1304   :  { %1621 = vst.msk [vmem:[#allocation3] sm:$0xff] %vm47_vm0, %v1619_v34  ;;  %1886 = vst.msk [vmem:[%s2824_s8 + $0x30] sm:$0xff] %vm47_vm0, %v1619_v34 }
0x1306   :  { %1707 = vperm.xlu1 %2293, %v1887_v35  }
0x130b   :  { %v1627_v36 = vld [vmem:[#allocation3] sm:$0xff] }
0x130c   :  { %2168 = vmatmul.mubr.msk.f32.vlgmr.msra.gmra.mrb[20].mxu0 %vm47_vm0, %v1627_v36 }
0x1374   :  { %v1614_v37 = vpop.permute.xlu1 %1613 }
0x1375   :  { %1616 = vst.msk [vmem:[#allocation2] sm:$0xff] %vm47_vm0, %v1614_v37  ;;  %1885 = vst.msk [vmem:[%s2825_s7 + $0x30] sm:$0xff] %vm47_vm0, %v1614_v37 }
0x137c   :  { %v1626_v38 = vld [vmem:[#allocation2] sm:$0xff] }
0x137d   :  { %2179 = vmatmul.mubr.msk.f32.vlgmr.msra.gmra.mrb[16].mxu1 %vm47_vm0, %v1626_v38 }
0x1385   :  { %v1708_v42 = vpop.permute.xlu1 %1707 }
0x13df   :  { %v1699_v30 = vpop.f32.mrb[20].mxu0 }
0x13e0   :  { %v1700_v39 = vadd.f32 %v2514_v26, %v1699_v30  ;;  %v2169_v40 = vpop.f32.mrb[21].mxu0 }
0x13e2   :  { %2364 = vtanh.f32 %v1700_v39 }
0x13ec   :  { %v2365_v41 = vpop.eup %2364 }
0x13ed   :  { %v1704_v43 = vsub.f32 %v1627_v36, %v2365_v41  ;;  %v1710_v44 = vmul.f32 %v2365_v41, %v1708_v42 }
0x13ef   :  { %v1711_v45 = vadd.f32 %v1710_v44, %v1704_v43 }
0x13f1   :  { %1796 = vrot.lane.b32.xlu1 %v1711_v45, %s2378_s6 }
0x1450   :  { %v1783_v47 = vpop.f32.mrb[16].mxu1 }
0x1451   :  { %v1787_v48 = vadd.f32 %v1783_v47, %v174_v46  ;;  %v2180_v2 = vpop.f32.mrb[17].mxu1 }
0x1453   :  { %2366 = vtanh.f32 %v1787_v48  ;;  %v1890_v26 = vmul.f32 -1.442695, %v1787_v48 }
0x1455   :  { %2368 = vpow2.f32 %v1890_v26 }
0x145d   :  { %v2367_v49 = vpop.eup %2366 }
0x145e   :  { %1801 = vrot.lane.b32.xlu0 %v2367_v49, %s2378_s6 }
0x145f   :  { %v2369_v50 = vpop.eup %2368 }
0x1460   :  { %v1791_v51 = vadd.f32 1.0, %v2369_v50 }
0x1462   :  { %2370 = vrcp.f32 %v1791_v51 }
0x1463   :  { %v1797_v55 = vpop.permute.xlu1 %1796 }
0x146c   :  { %v2371_v52 = vpop.eup %2370 }
0x146d   :  { %v1799_v56 = vmul.f32 %v2371_v52, %v1797_v55 }
0x14d0   :  { %v1802_v53 = vpop.permute.xlu0 %1801 }
0x14d1   :  { %v1804_v54 = vmul.f32 %v2371_v52, %v1802_v53 }
0x14d3   :  { %1806 = vrot.lane.b32.xlu0 %v1804_v54, %s2378_s6 }
0x1545   :  { %v1807_v31 = vpop.permute.xlu0 %1806 }
0x1546   :  { %v1809_v8 = vadd.f32 %v1807_v31, %v1799_v56 }
0x1548   :  { %2372 = vtanh.f32 %v1809_v8 }
0x1552   :  { %v2373_v6 = vpop.eup %2372 }
0x1553   :  { %1812 = vrot.lane.b32.xlu1 %v2373_v6, %s2378_s6 }
0x1557   :  { %1822 = vrot.lane.b32.xlu1 %v1809_v8, %s2379_s24 }
0x15c5   :  { %v1813_v57 = vpop.permute.xlu1 %1812 }
0x15c6   :  { %v1815_v58 = vmul.f32 %v2371_v52, %v1813_v57 }
0x15c8   :  { %1817 = vrot.lane.b32.xlu0 %v1815_v58, %s2380_s25 }
0x15c9   :  { %v1823_v59 = vpop.permute.xlu1 %1822 }
0x15ca   :  { %1825 = vst.msk [vmem:[#allocation3] sm:$0xff] %vm47_vm0, %v1823_v59  ;;  %1892 = vst.msk [vmem:[%s2824_s8 + $0x38] sm:$0xff] %vm47_vm0, %v1823_v59 }
0x163a   :  { %v1818_v60 = vpop.permute.xlu0 %1817 }
0x163b   :  { %1820 = vst.msk [vmem:[#allocation2] sm:$0xff] %vm47_vm0, %v1818_v60  ;;  %1891 = vst.msk [vmem:[%s2825_s7 + $0x38] sm:$0xff] %vm47_vm0, %v1818_v60 }

</bundles_post_ra>
